<compile_context>
chip_gen: v7x
topology: tpu7x:2x2x1
jax: 0.10.0
libtpu: 0.0.40
codegen_flags: <defaults>
</compile_context>

<pallas_src>
import functools
import math

import jax
import jax.numpy as jnp
from jax.experimental import pallas as pl
from jax.experimental.pallas import tpu as pltpu

_EPS = 1e-5
_LEAKY_SLOPE = 0.01                      # F.leaky_relu default
_DROP_P = 0.2
_DROP_THRESHOLD_24 = int(round(_DROP_P * (1 << 24)))   # integer dropout threshold on 24 bits
_INV_KEEP = 1.0 / (1.0 - _DROP_P)


# ---------------------------------------------------------------------------
# In-kernel helpers
# ---------------------------------------------------------------------------

def _hash_i32(x, seed):
    """Stateless int32 hash (murmur3-finalizer style constants); wraps mod 2**32."""
    x = x * (-1640531527) + seed          # golden-ratio mix with the seed
    x = x ^ (x >> 16)
    x = x * (-2048144789)
    x = x ^ (x >> 13)
    x = x * (-1028477387)
    x = x ^ (x >> 16)
    return x


def _conv_tile(xp_ref, w_ref, h_i, tbh, w_img):
    """3x3 conv (padding=1, stride=1) on one tile of `tbh` image rows.

    xp_ref: (1, H+2, W+2, Cin) zero-padded image block (bf16), resident in VMEM.
    w_ref : (9, Cin, Cout) weights (bf16), tap index = kh*3 + kw.
    Taps are formed in-kernel (no im2col in HBM); accumulation is f32.
    """
    cin = xp_ref.shape[3]
    cout = w_ref.shape[2]
    tm = tbh * w_img
    acc = jnp.zeros((tm, cout), jnp.float32)
    for kh in range(3):
        for kw in range(3):
            tap = xp_ref[0, pl.ds(h_i * tbh + kh, tbh), pl.ds(kw, w_img), :]
            acc = acc + jnp.dot(tap.reshape(tm, cin), w_ref[kh * 3 + kw],
                                preferred_element_type=jnp.float32)
    return acc


# ---------------------------------------------------------------------------
# Pass 1: conv + batch-statistics accumulation (carried (2, C) accumulator)
# ---------------------------------------------------------------------------

def _conv_stats_kernel(xp_ref, w_ref, stats_ref, *, tbh, w_img, inv_m, eps):
    n_i = pl.program_id(0)
    h_i = pl.program_id(1)
    y = _conv_tile(xp_ref, w_ref, h_i, tbh, w_img)        # (tm, Cout) f32

    @pl.when((n_i == 0) & (h_i == 0))
    def _():
        stats_ref[...] = jnp.zeros_like(stats_ref)

    stats_ref[0:1, :] += jnp.sum(y, axis=0, keepdims=True)
    stats_ref[1:2, :] += jnp.sum(y * y, axis=0, keepdims=True)

    @pl.when((n_i == pl.num_programs(0) - 1) & (h_i == pl.num_programs(1) - 1))
    def _():
        mean = stats_ref[0:1, :] * inv_m
        var = stats_ref[1:2, :] * inv_m - mean * mean      # biased variance (training BN)
        stats_ref[0:1, :] = mean
        stats_ref[1:2, :] = jax.lax.rsqrt(var + eps)


# ---------------------------------------------------------------------------
# Pass 2 (conv1): recompute conv tile, BN-normalize, leaky_relu, dropout(0.2)
# ---------------------------------------------------------------------------

def _conv1_finalize_kernel(xp_ref, w_ref, stats_ref, g_ref, b_ref, seed_ref, out_ref,
                           *, tbh, w_img):
    n_i = pl.program_id(0)
    h_i = pl.program_id(1)
    y = _conv_tile(xp_ref, w_ref, h_i, tbh, w_img)        # (tm, Cout) f32

    h = (y - stats_ref[0:1, :]) * stats_ref[1:2, :] * g_ref[...] + b_ref[...]
    h = jnp.where(h >= 0.0, h, _LEAKY_SLOPE * h)           # leaky_relu

    # dropout(p=0.2), training mode: integer-threshold test on a per-element hash;
    # flat index includes the tile id so masks never repeat across tiles.
    tm, cout = h.shape
    row = jax.lax.broadcasted_iota(jnp.int32, (tm, cout), 0)
    col = jax.lax.broadcasted_iota(jnp.int32, (tm, cout), 1)
    tile_id = n_i * pl.num_programs(1) + h_i
    flat = (tile_id * tm + row) * cout + col
    r24 = _hash_i32(flat, seed_ref[0]) & 0x00FFFFFF
    keep = r24 >= _DROP_THRESHOLD_24
    h = jnp.where(keep, h * _INV_KEEP, 0.0)

    out_ref[...] = h.reshape(out_ref.shape).astype(out_ref.dtype)


# ---------------------------------------------------------------------------
# Pass 2 (conv2): recompute conv tile, BN-normalize, +identity, leaky_relu
# ---------------------------------------------------------------------------

def _conv2_finalize_kernel(hp_ref, w_ref, stats_ref, g_ref, b_ref, ident_ref, out_ref,
                           *, tbh, w_img):
    h_i = pl.program_id(1)
    y = _conv_tile(hp_ref, w_ref, h_i, tbh, w_img)         # (tm, Cout) f32

    out = (y - stats_ref[0:1, :]) * stats_ref[1:2, :] * g_ref[...] + b_ref[...]
    out = out + ident_ref[...].reshape(y.shape)             # residual (downsample=None)
    out = jnp.where(out >= 0.0, out, _LEAKY_SLOPE * out)    # leaky_relu
    out_ref[...] = out.reshape(out_ref.shape).astype(out_ref.dtype)


# ---------------------------------------------------------------------------
# Params / wrapper
# ---------------------------------------------------------------------------

def init_params(key, in_planes, out_planes):
    """xavier_uniform conv weights (torch OIHW -> (9, Cin, Cout)), BN gamma=1 / beta=0."""
    k1, k2 = jax.random.split(key)

    def xavier_conv(k, cout, cin):
        fan_in = cin * 9
        fan_out = cout * 9
        a = math.sqrt(6.0 / (fan_in + fan_out))
        w = jax.random.uniform(k, (cout, cin, 3, 3), jnp.float32, -a, a)   # torch OIHW
        # OIHW -> (kh, kw, Cin, Cout) -> (9, Cin, Cout); tap index = kh*3 + kw
        return jnp.transpose(w, (2, 3, 1, 0)).reshape(9, cin, cout)

    return dict(
        w1=xavier_conv(k1, out_planes, in_planes),
        w2=xavier_conv(k2, out_planes, out_planes),
        g1=jnp.ones((1, out_planes), jnp.float32),
        b1=jnp.zeros((1, out_planes), jnp.float32),
        g2=jnp.ones((1, out_planes), jnp.float32),
        b2=jnp.zeros((1, out_planes), jnp.float32),
    )


def _pick_tbh(h, w, target_rows=512):
    """Largest divisor of H whose tile (tbh*W rows) stays around the target row count."""
    best = 1
    for d in range(1, h + 1):
        if h % d == 0 and d * w <= target_rows:
            best = d
    return best


def residual_block_forward(x_nchw, params, seed=0):
    # TODO(synk): downsample is None in this configuration (in_planes == out_planes,
    #             stride == 1); a non-None downsample submodule is not implemented.
    # TODO(synk): for very large H*W the per-image resident block should become a
    #             manually-DMA'd row tile with a 1-row halo; not needed at these sizes.
    n, c_in, h_img, w_img = x_nchw.shape
    c_out = params["w1"].shape[-1]
    assert c_in == c_out, "residual path requires in_planes == out_planes (downsample=None)"

    tbh = _pick_tbh(h_img, w_img)
    n_hb = h_img // tbh
    grid = (n, n_hb)
    m_total = n * h_img * w_img
    hp_dim, wp_dim = h_img + 2, w_img + 2

    x_nhwc = jnp.transpose(x_nchw, (0, 2, 3, 1)).astype(jnp.float32)
    # NOTE (flagged numerics change): matmul operands are staged in bfloat16 for the MXU
    # (f32 accumulation); identity / BN / activation math stays in f32.
    xp = jnp.pad(x_nhwc, ((0, 0), (1, 1), (1, 1), (0, 0))).astype(jnp.bfloat16)
    w1 = params["w1"].astype(jnp.bfloat16)
    w2 = params["w2"].astype(jnp.bfloat16)
    seed_arr = jnp.array([seed], dtype=jnp.int32)

    # ---- BlockSpecs -------------------------------------------------------
    def img_spec(cdim):        # one padded image resident per n-step (re-used across h)
        return pl.BlockSpec((1, hp_dim, wp_dim, cdim), lambda ni, hi: (ni, 0, 0, 0))

    def w_spec(cdim):
        return pl.BlockSpec((9, cdim, c_out), lambda ni, hi: (0, 0, 0))

    def tile_spec(cdim):       # per-(n, row-tile) NHWC tile
        return pl.BlockSpec((1, tbh, w_img, cdim), lambda ni, hi: (ni, hi, 0, 0))

    stats_spec = pl.BlockSpec((2, c_out), lambda ni, hi: (0, 0))
    gb_spec = pl.BlockSpec((1, c_out), lambda ni, hi: (0, 0))
    smem_spec = pl.BlockSpec(memory_space=pltpu.MemorySpace.SMEM)

    stats_params = pltpu.CompilerParams(
        dimension_semantics=("arbitrary", "arbitrary"),   # carried stats accumulator
        vmem_limit_bytes=32 * 1024 * 1024)
    tile_params = pltpu.CompilerParams(
        dimension_semantics=("parallel", "parallel"),     # independent tiles (megacore)
        vmem_limit_bytes=32 * 1024 * 1024)

    # ---- conv1: pass 1 (batch stats), pass 2 (normalize + leaky_relu + dropout) ----
    stats1 = pl.pallas_call(
        functools.partial(_conv_stats_kernel, tbh=tbh, w_img=w_img,
                          inv_m=1.0 / m_total, eps=_EPS),
        grid=grid,
        in_specs=[img_spec(c_in), w_spec(c_in)],
        out_specs=stats_spec,
        out_shape=jax.ShapeDtypeStruct((2, c_out), jnp.float32),
        compiler_params=stats_params,
    )(xp, w1)

    h = pl.pallas_call(
        functools.partial(_conv1_finalize_kernel, tbh=tbh, w_img=w_img),
        grid=grid,
        in_specs=[img_spec(c_in), w_spec(c_in), stats_spec, gb_spec, gb_spec, smem_spec],
        out_specs=tile_spec(c_out),
        out_shape=jax.ShapeDtypeStruct((n, h_img, w_img, c_out), jnp.bfloat16),
        compiler_params=tile_params,
    )(xp, w1, stats1, params["g1"], params["b1"], seed_arr)

    # ---- conv2: same two passes, epilogue = residual add + leaky_relu ----
    hp = jnp.pad(h, ((0, 0), (1, 1), (1, 1), (0, 0)))      # padded bf16 activation

    stats2 = pl.pallas_call(
        functools.partial(_conv_stats_kernel, tbh=tbh, w_img=w_img,
                          inv_m=1.0 / m_total, eps=_EPS),
        grid=grid,
        in_specs=[img_spec(c_out), w_spec(c_out)],
        out_specs=stats_spec,
        out_shape=jax.ShapeDtypeStruct((2, c_out), jnp.float32),
        compiler_params=stats_params,
    )(hp, w2)

    out = pl.pallas_call(
        functools.partial(_conv2_finalize_kernel, tbh=tbh, w_img=w_img),
        grid=grid,
        in_specs=[img_spec(c_out), w_spec(c_out), stats_spec, gb_spec, gb_spec,
                  tile_spec(c_in)],
        out_specs=tile_spec(c_out),
        out_shape=jax.ShapeDtypeStruct((n, h_img, w_img, c_out), jnp.float32),
        compiler_params=tile_params,
    )(hp, w2, stats2, params["g2"], params["b2"], x_nhwc)

    return jnp.transpose(out, (0, 3, 1, 2))                # back to NCHW


if __name__ == "__main__":
    key = jax.random.PRNGKey(0)
    kx, kp = jax.random.split(key)

    N, C, H, W = 2, 4, 16, 16          # in_planes = out_planes = 4, stride = 1
    x = jax.random.normal(kx, (N, C, H, W), jnp.float32)
    params = init_params(kp, in_planes=C, out_planes=C)

    y = residual_block_forward(x, params, seed=1234)
    jax.block_until_ready(y)
    assert y.shape == (N, C, H, W) and y.dtype == jnp.float32
    assert bool(jnp.all(jnp.isfinite(y)))
    print("KERNEL_OK")
</pallas_src>

<mosaic_0001>
module attributes {stable_mosaic.version = 11 : i64} {
  func.func @_conv_stats_kernel(%arg0: i32, %arg1: i32, %arg2: memref<1x18x18x4xbf16, #tpu.memory_space<vmem>>, %arg3: memref<9x4x4xbf16, #tpu.memory_space<vmem>>, %arg4: memref<2x4xf32, #tpu.memory_space<vmem>>) attributes {dimension_semantics = [#tpu.dimension_semantics<arbitrary>, #tpu.dimension_semantics<arbitrary>], iteration_bounds = array<i64: 2, 1>, scalar_prefetch = 0 : i64, scratch_operands = 0 : i64, tpu.core_type = #tpu.core_type<tc>, window_params = [{transform_indices = @transform_0, window_bounds = array<i64: 1, 18, 18, 4>}, {pipeline_mode = #tpu.pipeline_mode<synchronous>, transform_indices = @transform_1, window_bounds = array<i64: 9, 4, 4>}, {pipeline_mode = #tpu.pipeline_mode<synchronous>, transform_indices = @transform_2, window_bounds = array<i64: 2, 4>}]} {
    %cst = arith.constant 0.000000e+00 : f32
    %0 = vector.broadcast %cst : f32 to vector<256x4xf32>
    %c16_i32 = arith.constant 16 : i32
    %1 = arith.muli %arg1, %c16_i32 : i32
    %c0_i32 = arith.constant 0 : i32
    %2 = arith.addi %1, %c0_i32 : i32
    %c0 = arith.constant 0 : index
    %3 = arith.index_cast %2 : i32 to index
    %c0_0 = arith.constant 0 : index
    %c0_1 = arith.constant 0 : index
    %4 = vector.load %arg2[%c0, %3, %c0_0, %c0_1] : memref<1x18x18x4xbf16, #tpu.memory_space<vmem>>, vector<1x16x16x4xbf16>
    %5 = vector.shape_cast %4 : vector<1x16x16x4xbf16> to vector<16x16x4xbf16>
    %6 = vector.shape_cast %5 : vector<16x16x4xbf16> to vector<256x4xbf16>
    %c0_2 = arith.constant 0 : index
    %c0_3 = arith.constant 0 : index
    %c0_4 = arith.constant 0 : index
    %7 = vector.load %arg3[%c0_2, %c0_3, %c0_4] : memref<9x4x4xbf16, #tpu.memory_space<vmem>>, vector<1x4x4xbf16>
    %8 = vector.shape_cast %7 : vector<1x4x4xbf16> to vector<4x4xbf16>
    %cst_5 = arith.constant dense<0.000000e+00> : vector<256x4xf32>
    %9 = tpu.matmul %6, %8, %cst_5 {dimension_numbers = #tpu.dot_dimension_numbers<[1], [0], [0], [1], [0, 0, 1, 1], [], []>} : vector<256x4xbf16>, vector<4x4xbf16>, vector<256x4xf32> -> vector<256x4xf32>
    %10 = arith.addf %0, %9 : vector<256x4xf32>
    %c16_i32_6 = arith.constant 16 : i32
    %11 = arith.muli %arg1, %c16_i32_6 : i32
    %c0_i32_7 = arith.constant 0 : i32
    %12 = arith.addi %11, %c0_i32_7 : i32
    %c0_8 = arith.constant 0 : index
    %13 = arith.index_cast %12 : i32 to index
    %c1 = arith.constant 1 : index
    %c0_9 = arith.constant 0 : index
    %14 = vector.load %arg2[%c0_8, %13, %c1, %c0_9] : memref<1x18x18x4xbf16, #tpu.memory_space<vmem>>, vector<1x16x16x4xbf16>
    %15 = vector.shape_cast %14 : vector<1x16x16x4xbf16> to vector<16x16x4xbf16>
    %16 = vector.shape_cast %15 : vector<16x16x4xbf16> to vector<256x4xbf16>
    %c1_10 = arith.constant 1 : index
    %c0_11 = arith.constant 0 : index
    %c0_12 = arith.constant 0 : index
    %17 = vector.load %arg3[%c1_10, %c0_11, %c0_12] : memref<9x4x4xbf16, #tpu.memory_space<vmem>>, vector<1x4x4xbf16>
    %18 = vector.shape_cast %17 : vector<1x4x4xbf16> to vector<4x4xbf16>
    %cst_13 = arith.constant dense<0.000000e+00> : vector<256x4xf32>
    %19 = tpu.matmul %16, %18, %cst_13 {dimension_numbers = #tpu.dot_dimension_numbers<[1], [0], [0], [1], [0, 0, 1, 1], [], []>} : vector<256x4xbf16>, vector<4x4xbf16>, vector<256x4xf32> -> vector<256x4xf32>
    %20 = arith.addf %10, %19 : vector<256x4xf32>
    %c16_i32_14 = arith.constant 16 : i32
    %21 = arith.muli %arg1, %c16_i32_14 : i32
    %c0_i32_15 = arith.constant 0 : i32
    %22 = arith.addi %21, %c0_i32_15 : i32
    %c0_16 = arith.constant 0 : index
    %23 = arith.index_cast %22 : i32 to index
    %c2 = arith.constant 2 : index
    %c0_17 = arith.constant 0 : index
    %24 = vector.load %arg2[%c0_16, %23, %c2, %c0_17] : memref<1x18x18x4xbf16, #tpu.memory_space<vmem>>, vector<1x16x16x4xbf16>
    %25 = vector.shape_cast %24 : vector<1x16x16x4xbf16> to vector<16x16x4xbf16>
    %26 = vector.shape_cast %25 : vector<16x16x4xbf16> to vector<256x4xbf16>
    %c2_18 = arith.constant 2 : index
    %c0_19 = arith.constant 0 : index
    %c0_20 = arith.constant 0 : index
    %27 = vector.load %arg3[%c2_18, %c0_19, %c0_20] : memref<9x4x4xbf16, #tpu.memory_space<vmem>>, vector<1x4x4xbf16>
    %28 = vector.shape_cast %27 : vector<1x4x4xbf16> to vector<4x4xbf16>
    %cst_21 = arith.constant dense<0.000000e+00> : vector<256x4xf32>
    %29 = tpu.matmul %26, %28, %cst_21 {dimension_numbers = #tpu.dot_dimension_numbers<[1], [0], [0], [1], [0, 0, 1, 1], [], []>} : vector<256x4xbf16>, vector<4x4xbf16>, vector<256x4xf32> -> vector<256x4xf32>
    %30 = arith.addf %20, %29 : vector<256x4xf32>
    %c16_i32_22 = arith.constant 16 : i32
    %31 = arith.muli %arg1, %c16_i32_22 : i32
    %c1_i32 = arith.constant 1 : i32
    %32 = arith.addi %31, %c1_i32 : i32
    %c0_23 = arith.constant 0 : index
    %33 = arith.index_cast %32 : i32 to index
    %c0_24 = arith.constant 0 : index
    %c0_25 = arith.constant 0 : index
    %34 = vector.load %arg2[%c0_23, %33, %c0_24, %c0_25] : memref<1x18x18x4xbf16, #tpu.memory_space<vmem>>, vector<1x16x16x4xbf16>
    %35 = vector.shape_cast %34 : vector<1x16x16x4xbf16> to vector<16x16x4xbf16>
    %36 = vector.shape_cast %35 : vector<16x16x4xbf16> to vector<256x4xbf16>
    %c3 = arith.constant 3 : index
    %c0_26 = arith.constant 0 : index
    %c0_27 = arith.constant 0 : index
    %37 = vector.load %arg3[%c3, %c0_26, %c0_27] : memref<9x4x4xbf16, #tpu.memory_space<vmem>>, vector<1x4x4xbf16>
    %38 = vector.shape_cast %37 : vector<1x4x4xbf16> to vector<4x4xbf16>
    %cst_28 = arith.constant dense<0.000000e+00> : vector<256x4xf32>
    %39 = tpu.matmul %36, %38, %cst_28 {dimension_numbers = #tpu.dot_dimension_numbers<[1], [0], [0], [1], [0, 0, 1, 1], [], []>} : vector<256x4xbf16>, vector<4x4xbf16>, vector<256x4xf32> -> vector<256x4xf32>
    %40 = arith.addf %30, %39 : vector<256x4xf32>
    %c16_i32_29 = arith.constant 16 : i32
    %41 = arith.muli %arg1, %c16_i32_29 : i32
    %c1_i32_30 = arith.constant 1 : i32
    %42 = arith.addi %41, %c1_i32_30 : i32
    %c0_31 = arith.constant 0 : index
    %43 = arith.index_cast %42 : i32 to index
    %c1_32 = arith.constant 1 : index
    %c0_33 = arith.constant 0 : index
    %44 = vector.load %arg2[%c0_31, %43, %c1_32, %c0_33] : memref<1x18x18x4xbf16, #tpu.memory_space<vmem>>, vector<1x16x16x4xbf16>
    %45 = vector.shape_cast %44 : vector<1x16x16x4xbf16> to vector<16x16x4xbf16>
    %46 = vector.shape_cast %45 : vector<16x16x4xbf16> to vector<256x4xbf16>
    %c4 = arith.constant 4 : index
    %c0_34 = arith.constant 0 : index
    %c0_35 = arith.constant 0 : index
    %47 = vector.load %arg3[%c4, %c0_34, %c0_35] : memref<9x4x4xbf16, #tpu.memory_space<vmem>>, vector<1x4x4xbf16>
    %48 = vector.shape_cast %47 : vector<1x4x4xbf16> to vector<4x4xbf16>
    %cst_36 = arith.constant dense<0.000000e+00> : vector<256x4xf32>
    %49 = tpu.matmul %46, %48, %cst_36 {dimension_numbers = #tpu.dot_dimension_numbers<[1], [0], [0], [1], [0, 0, 1, 1], [], []>} : vector<256x4xbf16>, vector<4x4xbf16>, vector<256x4xf32> -> vector<256x4xf32>
    %50 = arith.addf %40, %49 : vector<256x4xf32>
    %c16_i32_37 = arith.constant 16 : i32
    %51 = arith.muli %arg1, %c16_i32_37 : i32
    %c1_i32_38 = arith.constant 1 : i32
    %52 = arith.addi %51, %c1_i32_38 : i32
    %c0_39 = arith.constant 0 : index
    %53 = arith.index_cast %52 : i32 to index
    %c2_40 = arith.constant 2 : index
    %c0_41 = arith.constant 0 : index
    %54 = vector.load %arg2[%c0_39, %53, %c2_40, %c0_41] : memref<1x18x18x4xbf16, #tpu.memory_space<vmem>>, vector<1x16x16x4xbf16>
    %55 = vector.shape_cast %54 : vector<1x16x16x4xbf16> to vector<16x16x4xbf16>
    %56 = vector.shape_cast %55 : vector<16x16x4xbf16> to vector<256x4xbf16>
    %c5 = arith.constant 5 : index
    %c0_42 = arith.constant 0 : index
    %c0_43 = arith.constant 0 : index
    %57 = vector.load %arg3[%c5, %c0_42, %c0_43] : memref<9x4x4xbf16, #tpu.memory_space<vmem>>, vector<1x4x4xbf16>
    %58 = vector.shape_cast %57 : vector<1x4x4xbf16> to vector<4x4xbf16>
    %cst_44 = arith.constant dense<0.000000e+00> : vector<256x4xf32>
    %59 = tpu.matmul %56, %58, %cst_44 {dimension_numbers = #tpu.dot_dimension_numbers<[1], [0], [0], [1], [0, 0, 1, 1], [], []>} : vector<256x4xbf16>, vector<4x4xbf16>, vector<256x4xf32> -> vector<256x4xf32>
    %60 = arith.addf %50, %59 : vector<256x4xf32>
    %c16_i32_45 = arith.constant 16 : i32
    %61 = arith.muli %arg1, %c16_i32_45 : i32
    %c2_i32 = arith.constant 2 : i32
    %62 = arith.addi %61, %c2_i32 : i32
    %c0_46 = arith.constant 0 : index
    %63 = arith.index_cast %62 : i32 to index
    %c0_47 = arith.constant 0 : index
    %c0_48 = arith.constant 0 : index
    %64 = vector.load %arg2[%c0_46, %63, %c0_47, %c0_48] : memref<1x18x18x4xbf16, #tpu.memory_space<vmem>>, vector<1x16x16x4xbf16>
    %65 = vector.shape_cast %64 : vector<1x16x16x4xbf16> to vector<16x16x4xbf16>
    %66 = vector.shape_cast %65 : vector<16x16x4xbf16> to vector<256x4xbf16>
    %c6 = arith.constant 6 : index
    %c0_49 = arith.constant 0 : index
    %c0_50 = arith.constant 0 : index
    %67 = vector.load %arg3[%c6, %c0_49, %c0_50] : memref<9x4x4xbf16, #tpu.memory_space<vmem>>, vector<1x4x4xbf16>
    %68 = vector.shape_cast %67 : vector<1x4x4xbf16> to vector<4x4xbf16>
    %cst_51 = arith.constant dense<0.000000e+00> : vector<256x4xf32>
    %69 = tpu.matmul %66, %68, %cst_51 {dimension_numbers = #tpu.dot_dimension_numbers<[1], [0], [0], [1], [0, 0, 1, 1], [], []>} : vector<256x4xbf16>, vector<4x4xbf16>, vector<256x4xf32> -> vector<256x4xf32>
    %70 = arith.addf %60, %69 : vector<256x4xf32>
    %c16_i32_52 = arith.constant 16 : i32
    %71 = arith.muli %arg1, %c16_i32_52 : i32
    %c2_i32_53 = arith.constant 2 : i32
    %72 = arith.addi %71, %c2_i32_53 : i32
    %c0_54 = arith.constant 0 : index
    %73 = arith.index_cast %72 : i32 to index
    %c1_55 = arith.constant 1 : index
    %c0_56 = arith.constant 0 : index
    %74 = vector.load %arg2[%c0_54, %73, %c1_55, %c0_56] : memref<1x18x18x4xbf16, #tpu.memory_space<vmem>>, vector<1x16x16x4xbf16>
    %75 = vector.shape_cast %74 : vector<1x16x16x4xbf16> to vector<16x16x4xbf16>
    %76 = vector.shape_cast %75 : vector<16x16x4xbf16> to vector<256x4xbf16>
    %c7 = arith.constant 7 : index
    %c0_57 = arith.constant 0 : index
    %c0_58 = arith.constant 0 : index
    %77 = vector.load %arg3[%c7, %c0_57, %c0_58] : memref<9x4x4xbf16, #tpu.memory_space<vmem>>, vector<1x4x4xbf16>
    %78 = vector.shape_cast %77 : vector<1x4x4xbf16> to vector<4x4xbf16>
    %cst_59 = arith.constant dense<0.000000e+00> : vector<256x4xf32>
    %79 = tpu.matmul %76, %78, %cst_59 {dimension_numbers = #tpu.dot_dimension_numbers<[1], [0], [0], [1], [0, 0, 1, 1], [], []>} : vector<256x4xbf16>, vector<4x4xbf16>, vector<256x4xf32> -> vector<256x4xf32>
    %80 = arith.addf %70, %79 : vector<256x4xf32>
    %c16_i32_60 = arith.constant 16 : i32
    %81 = arith.muli %arg1, %c16_i32_60 : i32
    %c2_i32_61 = arith.constant 2 : i32
    %82 = arith.addi %81, %c2_i32_61 : i32
    %c0_62 = arith.constant 0 : index
    %83 = arith.index_cast %82 : i32 to index
    %c2_63 = arith.constant 2 : index
    %c0_64 = arith.constant 0 : index
    %84 = vector.load %arg2[%c0_62, %83, %c2_63, %c0_64] : memref<1x18x18x4xbf16, #tpu.memory_space<vmem>>, vector<1x16x16x4xbf16>
    %85 = vector.shape_cast %84 : vector<1x16x16x4xbf16> to vector<16x16x4xbf16>
    %86 = vector.shape_cast %85 : vector<16x16x4xbf16> to vector<256x4xbf16>
    %c8 = arith.constant 8 : index
    %c0_65 = arith.constant 0 : index
    %c0_66 = arith.constant 0 : index
    %87 = vector.load %arg3[%c8, %c0_65, %c0_66] : memref<9x4x4xbf16, #tpu.memory_space<vmem>>, vector<1x4x4xbf16>
    %88 = vector.shape_cast %87 : vector<1x4x4xbf16> to vector<4x4xbf16>
    %cst_67 = arith.constant dense<0.000000e+00> : vector<256x4xf32>
    %89 = tpu.matmul %86, %88, %cst_67 {dimension_numbers = #tpu.dot_dimension_numbers<[1], [0], [0], [1], [0, 0, 1, 1], [], []>} : vector<256x4xbf16>, vector<4x4xbf16>, vector<256x4xf32> -> vector<256x4xf32>
    %90 = arith.addf %80, %89 : vector<256x4xf32>
    %c0_i32_68 = arith.constant 0 : i32
    %91 = arith.cmpi eq, %arg0, %c0_i32_68 : i32
    %c0_i32_69 = arith.constant 0 : i32
    %92 = arith.cmpi eq, %arg1, %c0_i32_69 : i32
    %93 = arith.andi %91, %92 : i1
    %94 = arith.extui %93 : i1 to i32
    %c0_i32_70 = arith.constant 0 : i32
    %95 = arith.cmpi ne, %94, %c0_i32_70 : i32
    scf.if %95 {
      %cst_84 = arith.constant 0.000000e+00 : f32
      %112 = vector.broadcast %cst_84 : f32 to vector<2x4xf32>
      %c0_85 = arith.constant 0 : index
      %c0_86 = arith.constant 0 : index
      %113 = vector.load %arg4[%c0_85, %c0_86] : memref<2x4xf32, #tpu.memory_space<vmem>>, vector<2x4xf32>
      tpu.vector_store %arg4[%c0_85, %c0_86], %112 {strides = array<i32>} : memref<2x4xf32, #tpu.memory_space<vmem>>, vector<2x4xf32>,
    } else {
    }
    %c0_71 = arith.constant 0 : index
    %c0_72 = arith.constant 0 : index
    %96 = vector.load %arg4[%c0_71, %c0_72] : memref<2x4xf32, #tpu.memory_space<vmem>>, vector<1x4xf32>
    %cst_73 = arith.constant dense<0.000000e+00> : vector<4xf32>
    %97 = vector.multi_reduction <add>, %90, %cst_73 [0] : vector<256x4xf32> to vector<4xf32>
    %98 = vector.shape_cast %97 : vector<4xf32> to vector<1x4xf32>
    %99 = arith.addf %96, %98 : vector<1x4xf32>
    %c0_74 = arith.constant 0 : index
    %c0_75 = arith.constant 0 : index
    %100 = vector.load %arg4[%c0_74, %c0_75] : memref<2x4xf32, #tpu.memory_space<vmem>>, vector<1x4xf32>
    tpu.vector_store %arg4[%c0_74, %c0_75], %99 {strides = array<i32>} : memref<2x4xf32, #tpu.memory_space<vmem>>, vector<1x4xf32>,
    %c1_76 = arith.constant 1 : index
    %c0_77 = arith.constant 0 : index
    %101 = vector.load %arg4[%c1_76, %c0_77] : memref<2x4xf32, #tpu.memory_space<vmem>>, vector<1x4xf32>
    %102 = arith.mulf %90, %90 : vector<256x4xf32>
    %cst_78 = arith.constant dense<0.000000e+00> : vector<4xf32>
    %103 = vector.multi_reduction <add>, %102, %cst_78 [0] : vector<256x4xf32> to vector<4xf32>
    %104 = vector.shape_cast %103 : vector<4xf32> to vector<1x4xf32>
    %105 = arith.addf %101, %104 : vector<1x4xf32>
    %c1_79 = arith.constant 1 : index
    %c0_80 = arith.constant 0 : index
    %106 = vector.load %arg4[%c1_79, %c0_80] : memref<2x4xf32, #tpu.memory_space<vmem>>, vector<1x4xf32>
    tpu.vector_store %arg4[%c1_79, %c0_80], %105 {strides = array<i32>} : memref<2x4xf32, #tpu.memory_space<vmem>>, vector<1x4xf32>,
    %c1_i32_81 = arith.constant 1 : i32
    %107 = arith.cmpi eq, %arg0, %c1_i32_81 : i32
    %c0_i32_82 = arith.constant 0 : i32
    %108 = arith.cmpi eq, %arg1, %c0_i32_82 : i32
    %109 = arith.andi %107, %108 : i1
    %110 = arith.extui %109 : i1 to i32
    %c0_i32_83 = arith.constant 0 : i32
    %111 = arith.cmpi ne, %110, %c0_i32_83 : i32
    scf.if %111 {
      %c0_84 = arith.constant 0 : index
      %c0_85 = arith.constant 0 : index
      %112 = vector.load %arg4[%c0_84, %c0_85] : memref<2x4xf32, #tpu.memory_space<vmem>>, vector<1x4xf32>
      %cst_86 = arith.constant 0.001953125 : f32
      %113 = vector.broadcast %cst_86 : f32 to vector<1x4xf32>
      %114 = arith.mulf %112, %113 : vector<1x4xf32>
      %c1_87 = arith.constant 1 : index
      %c0_88 = arith.constant 0 : index
      %115 = vector.load %arg4[%c1_87, %c0_88] : memref<2x4xf32, #tpu.memory_space<vmem>>, vector<1x4xf32>
      %cst_89 = arith.constant 0.001953125 : f32
      %116 = vector.broadcast %cst_89 : f32 to vector<1x4xf32>
      %117 = arith.mulf %115, %116 : vector<1x4xf32>
      %118 = arith.mulf %114, %114 : vector<1x4xf32>
      %119 = arith.subf %117, %118 : vector<1x4xf32>
      %c0_90 = arith.constant 0 : index
      %c0_91 = arith.constant 0 : index
      %120 = vector.load %arg4[%c0_90, %c0_91] : memref<2x4xf32, #tpu.memory_space<vmem>>, vector<1x4xf32>
      tpu.vector_store %arg4[%c0_90, %c0_91], %114 {strides = array<i32>} : memref<2x4xf32, #tpu.memory_space<vmem>>, vector<1x4xf32>,
      %cst_92 = arith.constant 9.99999974E-6 : f32
      %121 = vector.broadcast %cst_92 : f32 to vector<1x4xf32>
      %122 = arith.addf %119, %121 : vector<1x4xf32>
      %123 = math.rsqrt %122 : vector<1x4xf32>
      %c1_93 = arith.constant 1 : index
      %c0_94 = arith.constant 0 : index
      %124 = vector.load %arg4[%c1_93, %c0_94] : memref<2x4xf32, #tpu.memory_space<vmem>>, vector<1x4xf32>
      tpu.vector_store %arg4[%c1_93, %c0_94], %123 {strides = array<i32>} : memref<2x4xf32, #tpu.memory_space<vmem>>, vector<1x4xf32>,
    } else {
    }
    return
  }
  func.func @transform_0(%arg0: i32, %arg1: i32) -> (i32, i32, i32, i32) {
    %c0_i32 = arith.constant 0 : i32
    %c0_i32_0 = arith.constant 0 : i32
    %c0_i32_1 = arith.constant 0 : i32
    %c0_i32_2 = arith.constant 0 : i32
    return %arg0, %c0_i32, %c0_i32_0, %c0_i32_1 : i32, i32, i32, i32
  }
  func.func @transform_1(%arg0: i32, %arg1: i32) -> (i32, i32, i32) {
    %c0_i32 = arith.constant 0 : i32
    %c0_i32_0 = arith.constant 0 : i32
    %c0_i32_1 = arith.constant 0 : i32
    %c0_i32_2 = arith.constant 0 : i32
    return %c0_i32, %c0_i32_0, %c0_i32_1 : i32, i32, i32
  }
  func.func @transform_2(%arg0: i32, %arg1: i32) -> (i32, i32) {
    %c0_i32 = arith.constant 0 : i32
    %c0_i32_0 = arith.constant 0 : i32
    %c0_i32_1 = arith.constant 0 : i32
    return %c0_i32, %c0_i32_0 : i32, i32
  }
}

</mosaic_0001>

<bundles_post_ra>
// kernel: tpu_custom_call.1
= control target key start
LH: loop header
LB: loop body
LE: loop exit
PB: predicated region body
PF: predicated region fallthrough
CT: control target
= control target key end

     0   :  { %7 = vsyncpa [#allocation3], 0  ;;  %s6464_s9 = smov 0   ;;  %s6466_s10 = smov 0   ;;  %s8458_s0 = inlined_call_operand.vmem [shape: bf16[2,18,18,4], index: 0, kind: input, shape index: {}]   ;;  %s8459_s1 = inlined_call_operand.vmem [shape: bf16[9,4,4], index: 1, kind: input, shape index: {}]   ;;  %s8460_s2 = inlined_call_operand.hbm [shape: f32[2,4], index: 2, kind: output, shape index: {}]  }
   0x1   :  { %s6468_s11 = smov 0  }
   0x2 LB: > { %s4977_s12 = sadd.s32 4294967295, %s6445_s11   ;;  %s25_s13 = sadd.s32 1, %s6441_s10  ;;  %s6445_s11 = sphi %s6468_s11, %s13_s11   ;;  %s6441_s10 = sphi %s6466_s10, %s8530_s10   ;;  %s6437_s9 = sphi %s6464_s9, %s8529_s9  }
   0x3   : > { %p27_p0 = scmp.ge.s32.totalorder %s25_s13, 2  ;;  %p4980_p1 = scmp.ge.s32.totalorder %s6445_s11, 1 }
   0x4   : > { %p120_p2 = scmp.lt.s32.totalorder %s6445_s11, 3 }
   0x5   : > { %s8532_s13 = smov (%p27_p0, %s25_s13), 0 }
   0x6   : > { %p121_p3 = pnand %p4980_p1, %p120_p2 }
   0x8   : > { %124 = sbr.rel (%p121_p3) target bundleno = 717 (0x2cd), region = 28 }
   0xf   : > { %v4982_v0 = vld [vmem:[%s8459_s1 + $0x2] sm:$0x3]  ;;  %vm682_vm0 = vcmask 1041408   ;;  %v5209_v1 = vld [vmem:[%s8459_s1 + $0x8] sm:$0x3]  ;;  %p137_p4 = scmp.lt.s32.totalorder %s6437_s9, 1 }
  0x10   : > { %6243 = vmatprep.subr.msk.bf16.mxu1 %vm682_vm0, %v4982_v0  ;;  %6247 = vmatprep.subr.msk.bf16.mxu0 %vm682_vm0, %v5209_v1  ;;  %v684_v2 = vsel %vm682_vm0, %v4982_v0, 0  ;;  %v6496_v3 = vsel %vm682_vm0, %v5209_v1, 0  ;;  %v179_v4 = vld [vmem:[%s8459_s1] sm:$0x3]  ;;  %v5274_v5 = vld [vmem:[%s8459_s1 + $0xa] sm:$0x3] }
  0x11   : > { %8474 = vst [vmem:[#allocation5_spill] sm:$0xff] %v6496_v3  ;;  %5680 = vmatpush3.bf16.msra.mxu1 %v684_v2  ;;  %5816 = vmatpush3.bf16.msra.mxu0 %v6496_v3  ;;  %s138_s18 = scalar_select %p137_p4, %s6437_s9, 1  ;;  %vm196_vm1 = vsmask.f32 3328  ;;  %vm197_vm2 = vsmask.f32 7440 }
  0x12   : > { %6244 = vmatprep.subr.msk.bf16.mxu1 %vm682_vm0, %v179_v4  ;;  %6249 = vmatprep.subr.msk.bf16.mxu0 %vm682_vm0, %v5274_v5  ;;  %vm633_vm3 = vcmask 31744   ;;  %v6524_v17 = vsel %vm682_vm0, %v179_v4, 0  ;;  %v6530_v26 = vld [vmem:[%s8459_s1 + $0xc] sm:$0x3]  ;;  %vm6537_vm4 = vmor %vm196_vm1, %vm197_vm2  ;;  %v6543_v37 = vsel %vm682_vm0, %v5274_v5, 0  ;;  %vm1187_vm5 = vcmask 1042432  }
  0x13   : > { %s6253_s23 = smul.u32 216, %s138_s18  ;;  %v6547_v41 = vsel %vm682_vm0, %v6530_v26, 0  ;;  %vm1188_vm6 = vcmask 1046532   ;;  %p4712_p5 = scmp.eq.s32.totalorder %s6437_s9, 0 }
  0x14   : > { %vm6763_vm7 = vmor %vm1187_vm5, %vm1188_vm6  ;;  %vm4718_vm8 = vcmask (%p4712_p5), 25600  }
  0x15   : > { %s6511_s26 = scalar_lea.vmem %s8458_s0, %s6253_s23 }
  0x16   : > { %v147_v6 = vld [vmem:[%s6511_s26] sm:$0xf]  ;;  %v148_v7 = vld [vmem:[%s6511_s26 + $0x4] sm:$0xf]  ;;  %v180_v8 = vld [vmem:[%s6511_s26 + $0x8] sm:$0x1] }
  0x17   : > { %v200_v9 = vshrl.u32 %v147_v6, 16  ;;  %v203_v10 = vshll.u32 %v147_v6, 16  ;;  %v209_v11 = vshll.u32 %v148_v7, 16  ;;  %v213_v12 = vshrl.u32 %v148_v7, 16  ;;  %v5161_v13 = vld [vmem:[%s6511_s26 + $0xc] sm:$0xf] }
  0x18   : > { %v219_v14 = vshll.u32 %v180_v8, 16  ;;  %v6518_v15 = vld [vmem:[%s6511_s26 + $0x10] sm:$0xf]  ;;  %v6521_v16 = vld [vmem:[%s6511_s26 + $0x14] sm:$0x1]  ;;  %v2007_v23 = vshrl.u32 %v5161_v13, 16 }
  0x19   : > { %v202_v18 = vrot.slane %v200_v9, 4  ;;  %v205_v19 = vrot.slane %v203_v10, 5  ;;  %v211_v20 = vrot.slane %v209_v11, 5  ;;  %v215_v21 = vrot.slane %v213_v12, 4  ;;  %v149_v31 = vld [vmem:[%s6511_s26 + $0xc] sm:$0xf] }
  0x1a   : > { %v221_v22 = vrot.slane %v219_v14, 5  ;;  %v2010_v24 = vshll.u32 %v5161_v13, 16  ;;  %v2016_v25 = vshll.u32 %v6518_v15, 16  ;;  %v2020_v29 = vshrl.u32 %v6518_v15, 16  ;;  %v150_v36 = vld [vmem:[%s6511_s26 + $0x10] sm:$0xf] }
  0x1b   : > { %v206_v27 = vor.u32 %v205_v19, %v202_v18  ;;  %v216_v28 = vor.u32 %v215_v21, %v211_v20  ;;  %v2026_v30 = vshll.u32 %v6521_v16, 16  ;;  %v2009_v33 = vrot.slane %v2007_v23, 4  ;;  %v181_v44 = vld [vmem:[%s6511_s26 + $0x14] sm:$0x1]  ;;  %v5164_v55 = vld [vmem:[%s6511_s26 + $0x18] sm:$0xf] }
  0x1c   : > { %v2012_v34 = vrot.slane %v2010_v24, 5  ;;  %v2018_v35 = vrot.slane %v2016_v25, 5  ;;  %v2022_v40 = vrot.slane %v2020_v29, 4  ;;  %v224_v45 = vshrl.u32 %v149_v31, 16  ;;  %v6556_v60 = vld [vmem:[%s6511_s26 + $0x1c] sm:$0xf] }
  0x1d   : > { %v207_v38 = vrot.slane %v206_v27, 4  ;;  %v217_v39 = vrot.slane %v216_v28, 4  ;;  %v2028_v43 = vrot.slane %v2026_v30, 5  ;;  %v227_v46 = vshll.u32 %v149_v31, 16  ;;  %v6564_v1 = vld [vmem:[%s6511_s26 + $0x20] sm:$0x1] }
  0x1e   : > { %v2013_v42 = vor.u32 %v2012_v34, %v2009_v33  ;;  %v2023_v49 = vor.u32 %v2022_v40, %v2018_v35  ;;  %v233_v50 = vshll.u32 %v150_v36, 16  ;;  %v226_v53 = vrot.slane %v224_v45, 4  ;;  %v151_v18 = vld [vmem:[%s6511_s26 + $0x18] sm:$0xf]  ;;  %v152_v23 = vld [vmem:[%s6511_s26 + $0x1c] sm:$0xf] }
  0x1f   : > { %v212_v47 = vsel %vm6537_vm4, %v207_v38, %v211_v20  ;;  %v222_v48 = vsel %vm6537_vm4, %v217_v39, %v221_v22  ;;  %v229_v54 = vrot.slane %v227_v46, 5  ;;  %v237_v58 = vshrl.u32 %v150_v36, 16  ;;  %v182_v31 = vld [vmem:[%s6511_s26 + $0x20] sm:$0x1]  ;;  %v5167_v40 = vld [vmem:[%s6511_s26 + $0x24] sm:$0xf] }
  0x20   : > { %v4983_v51 = vcombine.low %v212_v47, %v222_v48  ;;  %v2014_v52 = vrot.slane %v2013_v42, 4  ;;  %v2024_v56 = vrot.slane %v2023_v49, 4  ;;  %v235_v57 = vrot.slane %v233_v50, 5  ;;  %v6587_v46 = vld [vmem:[%s6511_s26 + $0x28] sm:$0xf] }
  0x21   : > { %v243_v59 = vshll.u32 %v181_v44, 16  ;;  %v2750_v62 = vrot.slane %v6518_v15, 5  ;;  %v2753_v63 = vrot.slane %v6521_v16, 5  ;;  %v230_v0 = vor.u32 %v229_v54, %v226_v53  ;;  %v6596_v54 = vld [vmem:[%s6511_s26 + $0x2c] sm:$0x1] }
  0x22   : > { %5681 = vmatprep.mubr.msk.bf16.mxu1 %vm633_vm3, %v4983_v51  ;;  %v2019_v61 = vsel %vm6537_vm4, %v2014_v52, %v2018_v35  ;;  %v2029_v2 = vsel %vm6537_vm4, %v2024_v56, %v2028_v43  ;;  %v239_v4 = vrot.slane %v237_v58, 4  ;;  %v2031_v6 = vshrl.u32 %v5164_v55, 16  ;;  %v5063_v51 = vld [vmem:[%s8459_s1 + $0x4] sm:$0x3]  ;;  %v6796_v16 = vld [vmem:[%s6511_s26 + $0x7c] sm:$0xf] }
  0x23   : > { %v245_v5 = vrot.slane %v243_v59, 5  ;;  %v5210_v7 = vcombine.low %v2019_v61, %v2029_v2  ;;  %v231_v8 = vrot.slane %v230_v0, 4  ;;  %v2034_v9 = vshll.u32 %v5164_v55, 16  ;;  %v153_v0 = vld [vmem:[%s6511_s26 + $0x24] sm:$0xf] }
  0x24   : > { %v2040_v10 = vshll.u32 %v6556_v60, 16  ;;  %v240_v11 = vor.u32 %v239_v4, %v235_v57  ;;  %v2033_v12 = vrot.slane %v2031_v6, 4  ;;  %v2044_v13 = vshrl.u32 %v6556_v60, 16 }
  0x25   : > { %v2050_v14 = vshll.u32 %v6564_v1, 16  ;;  %5817 = vmatprep.mubr.msk.bf16.mxu0 %vm633_vm3, %v5210_v7  ;;  %v236_v19 = vsel %vm6537_vm4, %v231_v8, %v235_v57  ;;  %v2036_v20 = vrot.slane %v2034_v9, 5  ;;  %v2757_v22 = vrot.slane %v6556_v60, 5  ;;  %v154_v7 = vld [vmem:[%s6511_s26 + $0x28] sm:$0xf] }
  0x26   : > { %v2042_v21 = vrot.slane %v2040_v10, 5  ;;  %v241_v24 = vrot.slane %v240_v11, 4  ;;  %v2046_v25 = vrot.slane %v2044_v13, 4  ;;  %v2760_v28 = vrot.slane %v6564_v1, 5  ;;  %v183_v13 = vld [vmem:[%s6511_s26 + $0x2c] sm:$0x1] }
  0x27   : > { %v2052_v27 = vrot.slane %v2050_v14, 5  ;;  %v2037_v29 = vor.u32 %v2036_v20, %v2033_v12  ;;  %v6580_v30 = vrot.slane %v2757_v22, 4  ;;  %v248_v33 = vshrl.u32 %v151_v18, 16 }
  0x28   : > { %v251_v34 = vshll.u32 %v151_v18, 16  ;;  %v246_v35 = vsel %vm6537_vm4, %v241_v24, %v245_v5  ;;  %v2047_v36 = vor.u32 %v2046_v25, %v2042_v21  ;;  %v257_v38 = vshll.u32 %v152_v23, 16  ;;  %v5170_v24 = vld [vmem:[%s6511_s26 + $0x30] sm:$0xf] }
  0x29   : > { %v261_v39 = vshrl.u32 %v152_v23, 16  ;;  %v4984_v42 = vcombine.low %v236_v19, %v246_v35  ;;  %v2038_v43 = vrot.slane %v2037_v29, 4  ;;  %v250_v44 = vrot.slane %v248_v33, 4  ;;  %v6616_v33 = vld [vmem:[%s6511_s26 + $0x34] sm:$0xf] }
  0x2a   : > { %v253_v45 = vrot.slane %v251_v34, 5  ;;  %v2048_v47 = vrot.slane %v2047_v36, 4  ;;  %v259_v48 = vrot.slane %v257_v38, 5  ;;  %v267_v50 = vshll.u32 %v182_v31, 16 }
  0x2b   : > { %v263_v49 = vrot.slane %v261_v39, 4  ;;  %5682 = vmatmul.mubr.msk.bf16.vlgmr.msra.gmra.mrb[0].mxu1 %vm633_vm3, %v4984_v42  ;;  %v2043_v52 = vsel %vm6537_vm4, %v2038_v43, %v2042_v21  ;;  %v2055_v55 = vshrl.u32 %v5167_v40, 16  ;;  %v2058_v56 = vshll.u32 %v5167_v40, 16  ;;  %v6624_v40 = vld [vmem:[%s6511_s26 + $0x38] sm:$0x1] }
  0x2c   : > { %v254_v53 = vor.u32 %v253_v45, %v250_v44  ;;  %5714 = vmatpush3.bf16.msra.mxu1 %v6524_v17  ;;  %v2053_v57 = vsel %vm6537_vm4, %v2048_v47, %v2052_v27  ;;  %v269_v59 = vrot.slane %v267_v50, 5  ;;  %v2064_v61 = vshll.u32 %v6587_v46, 16 }
  0x2d   : > { %v264_v58 = vor.u32 %v263_v49, %v259_v48  ;;  %v5211_v2 = vcombine.low %v2043_v52, %v2053_v57  ;;  %v2057_v5 = vrot.slane %v2055_v55, 4  ;;  %v2060_v6 = vrot.slane %v2058_v56, 5  ;;  %6245 = vmatprep.subr.msk.bf16.mxu1 %vm682_vm0, %v5063_v51  ;;  %v155_v52 = vld [vmem:[%s6511_s26 + $0x30] sm:$0xf] }
  0x2e   : > { %v255_v4 = vrot.slane %v254_v53, 4  ;;  %v2066_v9 = vrot.slane %v2064_v61, 5  ;;  %v2068_v17 = vshrl.u32 %v6587_v46, 16  ;;  %v2074_v10 = vshll.u32 %v6596_v54, 16 }
  0x2f   : > { %v265_v8 = vrot.slane %v264_v58, 4  ;;  %5818 = vmatmul.mubr.msk.bf16.vlgmr.msra.gmra.mrb[0].mxu0 %vm633_vm3, %v5211_v2  ;;  %v2061_v12 = vor.u32 %v2060_v6, %v2057_v5  ;;  %v272_v14 = vshrl.u32 %v153_v0, 16  ;;  %v275_v18 = vshll.u32 %v153_v0, 16  ;;  %v156_v58 = vld [vmem:[%s6511_s26 + $0x34] sm:$0xf] }
  0x30   : > { %v260_v11 = vsel %vm6537_vm4, %v255_v4, %v259_v48  ;;  %5850 = vmatpush3.bf16.msra.mxu0 %v6543_v37  ;;  %v2070_v20 = vrot.slane %v2068_v17, 4  ;;  %v2076_v21 = vrot.slane %v2074_v10, 5  ;;  %v281_v23 = vshll.u32 %v154_v7, 16  ;;  %v184_v4 = vld [vmem:[%s6511_s26 + $0x38] sm:$0x1] }
  0x31   : > { %v270_v19 = vsel %vm6537_vm4, %v265_v8, %v269_v59  ;;  %v2062_v27 = vrot.slane %v2061_v12, 4  ;;  %v274_v29 = vrot.slane %v272_v14, 4  ;;  %v277_v31 = vrot.slane %v275_v18, 5  ;;  %6250 = vmatprep.subr.msk.bf16.mxu0 %vm682_vm0, %v6530_v26  ;;  %v5173_v12 = vld [vmem:[%s6511_s26 + $0x3c] sm:$0xf] }
  0x32   : > { %v4985_v25 = vcombine.low %v260_v11, %v270_v19  ;;  %v2071_v34 = vor.u32 %v2070_v20, %v2066_v9  ;;  %v283_v35 = vrot.slane %v281_v23, 5  ;;  %v285_v37 = vshrl.u32 %v154_v7, 16  ;;  %v6641_v20 = vld [vmem:[%s6511_s26 + $0x40] sm:$0xf] }
  0x33   : > { %v291_v36 = vshll.u32 %v183_v13, 16  ;;  %v2067_v38 = vsel %vm6537_vm4, %v2062_v27, %v2066_v9  ;;  %v278_v39 = vor.u32 %v277_v31, %v274_v29  ;;  %v2079_v42 = vshrl.u32 %v5170_v24, 16 }
  0x34   : > { %5685 = vmatprep.mubr.msk.bf16.mxu1 %vm633_vm3, %v4985_v25  ;;  %v2082_v43 = vshll.u32 %v5170_v24, 16  ;;  %v2072_v44 = vrot.slane %v2071_v34, 4  ;;  %v287_v45 = vrot.slane %v285_v37, 4  ;;  %v2088_v26 = vshll.u32 %v6616_v33, 16  ;;  %v6646_v34 = vld [vmem:[%s6511_s26 + $0x44] sm:$0x1] }
  0x35   : > { %v293_v47 = vrot.slane %v291_v36, 5  ;;  %v279_v48 = vrot.slane %v278_v39, 4  ;;  %v2081_v49 = vrot.slane %v2079_v42, 4  ;;  %v2092_v51 = vshrl.u32 %v6616_v33, 16  ;;  %v157_v42 = vld [vmem:[%s6511_s26 + $0x3c] sm:$0xf] }
  0x36   : > { %v2084_v50 = vrot.slane %v2082_v43, 5  ;;  %v2077_v53 = vsel %vm6537_vm4, %v2072_v44, %v2076_v21  ;;  %v288_v55 = vor.u32 %v287_v45, %v283_v35  ;;  %v2090_v56 = vrot.slane %v2088_v26, 5  ;;  %v158_v26 = vld [vmem:[%s6511_s26 + $0x40] sm:$0xf] }
  0x37   : > { %v2098_v57 = vshll.u32 %v6624_v40, 16  ;;  %v5212_v59 = vcombine.low %v2067_v38, %v2077_v53  ;;  %v284_v61 = vsel %vm6537_vm4, %v279_v48, %v283_v35  ;;  %v2094_v2 = vrot.slane %v2092_v51, 4 }
  0x38   : > { %v2085_v0 = vor.u32 %v2084_v50, %v2081_v49  ;;  %v289_v5 = vrot.slane %v288_v55, 4  ;;  %v296_v7 = vshrl.u32 %v155_v52, 16  ;;  %v299_v8 = vshll.u32 %v155_v52, 16 }
  0x39   : > { %v2100_v6 = vrot.slane %v2098_v57, 5  ;;  %5821 = vmatprep.mubr.msk.bf16.mxu0 %vm633_vm3, %v5212_v59  ;;  %v2095_v17 = vor.u32 %v2094_v2, %v2090_v56  ;;  %v305_v10 = vshll.u32 %v156_v58, 16  ;;  %v309_v11 = vshrl.u32 %v156_v58, 16  ;;  %v5176_v2 = vld [vmem:[%s6511_s26 + $0x48] sm:$0xf] }
  0x3a   : > { %v2086_v9 = vrot.slane %v2085_v0, 4  ;;  %v294_v13 = vsel %vm6537_vm4, %v289_v5, %v293_v47  ;;  %v298_v14 = vrot.slane %v296_v7, 4  ;;  %v301_v18 = vrot.slane %v299_v8, 5  ;;  %v6664_v8 = vld [vmem:[%s6511_s26 + $0x4c] sm:$0xf] }
  0x3b   : > { %v315_v19 = vshll.u32 %v184_v4, 16  ;;  %v4986_v21 = vcombine.low %v284_v61, %v294_v13  ;;  %v2096_v24 = vrot.slane %v2095_v17, 4  ;;  %v307_v25 = vrot.slane %v305_v10, 5  ;;  %v185_v61 = vld [vmem:[%s6511_s26 + $0x44] sm:$0x1] }
  0x3c   : > { %v2091_v23 = vsel %vm6537_vm4, %v2086_v9, %v2090_v56  ;;  %v302_v27 = vor.u32 %v301_v18, %v298_v14  ;;  %v311_v29 = vrot.slane %v309_v11, 4  ;;  %v2103_v35 = vshrl.u32 %v5173_v12, 16 }
  0x3d   : > { %v317_v31 = vrot.slane %v315_v19, 5  ;;  %5686 = vmatmul.mubr.msk.bf16.gmra.mrb[4].mxu1 %vm633_vm3, %v4986_v21  ;;  %v2101_v37 = vsel %vm6537_vm4, %v2096_v24, %v2100_v6  ;;  %v2106_v36 = vshll.u32 %v5173_v12, 16  ;;  %v2112_v38 = vshll.u32 %v6641_v20, 16 }
  0x3e   : > { %v2116_v39 = vshrl.u32 %v6641_v20, 16  ;;  %v5213_v43 = vcombine.low %v2091_v23, %v2101_v37  ;;  %v303_v44 = vrot.slane %v302_v27, 4  ;;  %v312_v45 = vor.u32 %v311_v29, %v307_v25  ;;  %v6672_v23 = vld [vmem:[%s6511_s26 + $0x50] sm:$0x1]  ;;  %v6676_v27 = vld [vmem:[%s6511_s26 + $0x48] sm:$0xf] }
  0x3f   : > { %v2105_v47 = vrot.slane %v2103_v35, 4  ;;  %v2108_v48 = vrot.slane %v2106_v36, 5  ;;  %v2114_v49 = vrot.slane %v2112_v38, 5  ;;  %v2122_v51 = vshll.u32 %v6646_v34, 16  ;;  %v6679_v36 = vld [vmem:[%s6511_s26 + $0x4c] sm:$0xf] }
  0x40   : > { %v2118_v50 = vrot.slane %v2116_v39, 4  ;;  %5822 = vmatmul.mubr.msk.bf16.gmra.mrb[4].mxu0 %vm633_vm3, %v5213_v43  ;;  %v308_v52 = vsel %vm6537_vm4, %v303_v44, %v307_v25  ;;  %v313_v53 = vrot.slane %v312_v45, 4  ;;  %v320_v55 = vshrl.u32 %v157_v42, 16 }
  0x41   : > { %v323_v56 = vshll.u32 %v157_v42, 16  ;;  %v2109_v57 = vor.u32 %v2108_v48, %v2105_v47  ;;  %v2124_v59 = vrot.slane %v2122_v51, 5  ;;  %v329_v0 = vshll.u32 %v158_v26, 16 }
  0x42   : > { %v2119_v58 = vor.u32 %v2118_v50, %v2114_v49  ;;  %v318_v4 = vsel %vm6537_vm4, %v313_v53, %v317_v31  ;;  %v322_v5 = vrot.slane %v320_v55, 4  ;;  %v333_v7 = vshrl.u32 %v158_v26, 16  ;;  %v186_v26 = vld [vmem:[%s6511_s26 + $0x50] sm:$0x1]  ;;  %v5179_v53 = vld [vmem:[%s6511_s26 + $0x54] sm:$0xf] }
  0x43   : > { %v325_v6 = vrot.slane %v323_v56, 5  ;;  %v4987_v9 = vcombine.low %v308_v52, %v318_v4  ;;  %v2110_v17 = vrot.slane %v2109_v57, 4  ;;  %v331_v11 = vrot.slane %v329_v0, 5  ;;  %v6695_v4 = vld [vmem:[%s6511_s26 + $0x58] sm:$0xf] }
  0x44   : > { %v2120_v10 = vrot.slane %v2119_v58, 4  ;;  %v335_v13 = vrot.slane %v333_v7, 4  ;;  %v339_v14 = vshll.u32 %v185_v61, 16  ;;  %v2127_v18 = vshrl.u32 %v5176_v2, 16 }
  0x45   : > { %v326_v12 = vor.u32 %v325_v6, %v322_v5  ;;  %5689 = vmatprep.mubr.msk.bf16.mxu1 %vm633_vm3, %v4987_v9  ;;  %v2115_v19 = vsel %vm6537_vm4, %v2110_v17, %v2114_v49  ;;  %v2130_v24 = vshll.u32 %v5176_v2, 16  ;;  %v2136_v25 = vshll.u32 %v6664_v8, 16 }
  0x46   : > { %v2125_v21 = vsel %vm6537_vm4, %v2120_v10, %v2124_v59  ;;  %v336_v35 = vor.u32 %v335_v13, %v331_v11  ;;  %v341_v37 = vrot.slane %v339_v14, 5  ;;  %v2129_v38 = vrot.slane %v2127_v18, 4 }
  0x47   : > { %v5214_v29 = vcombine.low %v2115_v19, %v2125_v21  ;;  %v327_v31 = vrot.slane %v326_v12, 4  ;;  %v2132_v39 = vrot.slane %v2130_v24, 5  ;;  %v2138_v42 = vrot.slane %v2136_v25, 5  ;;  %v6701_v12 = vld [vmem:[%s6511_s26 + $0x5c] sm:$0x1] }
  0x48   : > { %v2140_v43 = vshrl.u32 %v6664_v8, 16  ;;  %v337_v45 = vrot.slane %v336_v35, 4  ;;  %v2146_v47 = vshll.u32 %v6672_v23, 16  ;;  %v344_v48 = vshrl.u32 %v6676_v27, 16  ;;  %v6705_v24 = vld [vmem:[%s6511_s26 + $0x54] sm:$0xf] }
  0x49   : > { %5825 = vmatprep.mubr.msk.bf16.mxu0 %vm633_vm3, %v5214_v29  ;;  %v332_v44 = vsel %vm6537_vm4, %v327_v31, %v331_v11  ;;  %v2133_v49 = vor.u32 %v2132_v39, %v2129_v38  ;;  %v347_v51 = vshll.u32 %v6676_v27, 16  ;;  %v353_v52 = vshll.u32 %v6679_v36, 16 }
  0x4a   : > { %v2142_v50 = vrot.slane %v2140_v43, 4  ;;  %v342_v55 = vsel %vm6537_vm4, %v337_v45, %v341_v37  ;;  %v2148_v56 = vrot.slane %v2146_v47, 5  ;;  %v346_v57 = vrot.slane %v344_v48, 4  ;;  %v6711_v37 = vld [vmem:[%s6511_s26 + $0x58] sm:$0xf] }
  0x4b   : > { %v357_v58 = vshrl.u32 %v6679_v36, 16  ;;  %v4988_v59 = vcombine.low %v332_v44, %v342_v55  ;;  %v2134_v61 = vrot.slane %v2133_v49, 4  ;;  %v349_v2 = vrot.slane %v347_v51, 5 }
  0x4c   : > { %v2143_v0 = vor.u32 %v2142_v50, %v2138_v42  ;;  %v355_v5 = vrot.slane %v353_v52, 5  ;;  %v363_v7 = vshll.u32 %v186_v26, 16  ;;  %v2151_v9 = vshrl.u32 %v5179_v53, 16  ;;  %v187_v26 = vld [vmem:[%s6511_s26 + $0x5c] sm:$0x1] }
  0x4d   : > { %v359_v6 = vrot.slane %v357_v58, 4  ;;  %5690 = vmatmul.mubr.msk.bf16.gmra.mrb[8].mxu1 %vm633_vm3, %v4988_v59  ;;  %v2139_v17 = vsel %vm6537_vm4, %v2134_v61, %v2138_v42  ;;  %v350_v11 = vor.u32 %v349_v2, %v346_v57  ;;  %v2154_v13 = vshll.u32 %v5179_v53, 16  ;;  %v5182_v53 = vld [vmem:[%s6511_s26 + $0x60] sm:$0xf]  ;;  %v6725_v59 = vld [vmem:[%s6511_s26 + $0x64] sm:$0xf] }
  0x4e   : > { %v2144_v10 = vrot.slane %v2143_v0, 4  ;;  %v365_v18 = vrot.slane %v363_v7, 5  ;;  %v2153_v19 = vrot.slane %v2151_v9, 4  ;;  %v2160_v21 = vshll.u32 %v6695_v4, 16  ;;  %v6732_v9 = vld [vmem:[%s6511_s26 + $0x68] sm:$0x1] }
  0x4f   : > { %v360_v14 = vor.u32 %v359_v6, %v355_v5  ;;  %v351_v29 = vrot.slane %v350_v11, 4  ;;  %v2156_v31 = vrot.slane %v2154_v13, 5  ;;  %v2164_v35 = vshrl.u32 %v6695_v4, 16 }
  0x50   : > { %v2149_v25 = vsel %vm6537_vm4, %v2144_v10, %v2148_v56  ;;  %v2162_v42 = vrot.slane %v2160_v21, 5  ;;  %v2170_v43 = vshll.u32 %v6701_v12, 16  ;;  %v368_v48 = vshrl.u32 %v6705_v24, 16 }
  0x51   : > { %v5215_v38 = vcombine.low %v2139_v17, %v2149_v25  ;;  %v361_v39 = vrot.slane %v360_v14, 4  ;;  %v356_v44 = vsel %vm6537_vm4, %v351_v29, %v355_v5  ;;  %v2157_v45 = vor.u32 %v2156_v31, %v2153_v19  ;;  %v6736_v19 = vld [vmem:[%s6511_s26 + $0x60] sm:$0xf] }
  0x52   : > { %v2166_v47 = vrot.slane %v2164_v35, 4  ;;  %v2172_v50 = vrot.slane %v2170_v43, 5  ;;  %v371_v51 = vshll.u32 %v6705_v24, 16  ;;  %v377_v52 = vshll.u32 %v6711_v37, 16  ;;  %v6742_v35 = vld [vmem:[%s6511_s26 + $0x64] sm:$0xf] }
  0x53   : > { %5826 = vmatmul.mubr.msk.bf16.gmra.mrb[8].mxu0 %vm633_vm3, %v5215_v38  ;;  %v366_v49 = vsel %vm6537_vm4, %v361_v39, %v365_v18  ;;  %v2158_v56 = vrot.slane %v2157_v45, 4  ;;  %v370_v58 = vrot.slane %v368_v48, 4  ;;  %v381_v2 = vshrl.u32 %v6711_v37, 16 }
  0x54   : > { %v4989_v55 = vcombine.low %v356_v44, %v366_v49  ;;  %v2167_v57 = vor.u32 %v2166_v47, %v2162_v42  ;;  %v373_v61 = vrot.slane %v371_v51, 5  ;;  %v379_v0 = vrot.slane %v377_v52, 5 }
  0x55   : > { %v387_v5 = vshll.u32 %v187_v26, 16  ;;  %v2163_v6 = vsel %vm6537_vm4, %v2158_v56, %v2162_v42  ;;  %v2175_v17 = vshrl.u32 %v5182_v53, 16  ;;  %v2178_v10 = vshll.u32 %v5182_v53, 16 }
  0x56   : > { %5693 = vmatprep.mubr.msk.bf16.mxu1 %vm633_vm3, %v4989_v55  ;;  %v2168_v7 = vrot.slane %v2167_v57, 4  ;;  %v374_v11 = vor.u32 %v373_v61, %v370_v58  ;;  %v383_v13 = vrot.slane %v381_v2, 4  ;;  %v2184_v18 = vshll.u32 %v6725_v59, 16  ;;  %v5242_v58 = vld [vmem:[%s6511_s26 + $0xc] sm:$0xe] }
  0x57   : > { %v389_v14 = vrot.slane %v387_v5, 5  ;;  %v2177_v25 = vrot.slane %v2175_v17, 4  ;;  %v2180_v29 = vrot.slane %v2178_v10, 5  ;;  %v2188_v31 = vshrl.u32 %v6725_v59, 16 }
  0x58   : > { %v2173_v21 = vsel %vm6537_vm4, %v2168_v7, %v2172_v50  ;;  %v375_v39 = vrot.slane %v374_v11, 4  ;;  %v384_v42 = vor.u32 %v383_v13, %v379_v0  ;;  %v2186_v43 = vrot.slane %v2184_v18, 5  ;;  %v188_v50 = vld [vmem:[%s6511_s26 + $0x68] sm:$0x1] }
  0x59   : > { %v5216_v38 = vcombine.low %v2163_v6, %v2173_v21  ;;  %v2181_v44 = vor.u32 %v2180_v29, %v2177_v25  ;;  %v2190_v45 = vrot.slane %v2188_v31, 4  ;;  %v2194_v47 = vshll.u32 %v6732_v9, 16  ;;  %v6770_v29 = vld [vmem:[%s6511_s26 + $0x70] sm:$0xf] }
  0x5a   : > { %v392_v26 = vshrl.u32 %v6736_v19, 16  ;;  %v380_v48 = vsel %vm6537_vm4, %v375_v39, %v379_v0  ;;  %v385_v49 = vrot.slane %v384_v42, 4  ;;  %v395_v51 = vshll.u32 %v6736_v19, 16  ;;  %v6757_v0 = vld [vmem:[%s6511_s26 + $0x6c] sm:$0xf] }
  0x5b   : > { %5829 = vmatprep.mubr.msk.bf16.mxu0 %vm633_vm3, %v5216_v38  ;;  %v401_v52 = vshll.u32 %v6742_v35, 16  ;;  %v2182_v53 = vrot.slane %v2181_v44, 4  ;;  %v2191_v55 = vor.u32 %v2190_v45, %v2186_v43  ;;  %v2196_v56 = vrot.slane %v2194_v47, 5 }
  0x5c   : > { %v394_v57 = vrot.slane %v392_v26, 4  ;;  %v390_v61 = vsel %vm6537_vm4, %v385_v49, %v389_v14  ;;  %v397_v2 = vrot.slane %v395_v51, 5  ;;  %v405_v6 = vshrl.u32 %v6742_v35, 16  ;;  %v189_v26 = vld [vmem:[%s6511_s26 + $0x74] sm:$0x1] }
  0x5d   : > { %v403_v5 = vrot.slane %v401_v52, 5  ;;  %v4990_v7 = vcombine.low %v380_v48, %v390_v61  ;;  %v2187_v17 = vsel %vm6537_vm4, %v2182_v53, %v2186_v43  ;;  %v2192_v10 = vrot.slane %v2191_v55, 4  ;;  %v5243_v48 = vld [vmem:[%s6511_s26 + $0x18] sm:$0xe] }
  0x5e   : > { %v411_v11 = vshll.u32 %v188_v50, 16  ;;  %v398_v14 = vor.u32 %v397_v2, %v394_v57  ;;  %v407_v18 = vrot.slane %v405_v6, 4  ;;  %v5258_v21 = vrot.slane %v5242_v58, 9  ;;  %v6789_v53 = vld [vmem:[%s6511_s26 + $0x78] sm:$0xf] }
  0x5f   : > { %v2752_v25 = vrot.slane %v2750_v62, 4  ;;  %5694 = vmatmul.mubr.msk.bf16.gmra.mrb[12].mxu1 %vm633_vm3, %v4990_v7  ;;  %v2197_v31 = vsel %vm6537_vm4, %v2192_v10, %v2196_v56  ;;  %v416_v39 = vshrl.u32 %v6757_v0, 16  ;;  %v419_v42 = vshll.u32 %v6757_v0, 16  ;;  %v190_v57 = vld [vmem:[%s6511_s26 + $0x80] sm:$0x1] }
  0x60   : > { %v413_v38 = vrot.slane %v411_v11, 5  ;;  %v5217_v43 = vcombine.low %v2187_v17, %v2197_v31  ;;  %v399_v44 = vrot.slane %v398_v14, 4  ;;  %v408_v45 = vor.u32 %v407_v18, %v403_v5  ;;  %v5244_v10 = vld [vmem:[%s6511_s26 + $0x24] sm:$0xe] }
  0x61   : > { %v2751_v47 = vsel %vm6763_vm7, %v5258_v21, %v2750_v62  ;;  %v2754_v49 = vsel %vm6763_vm7, %v2752_v25, %v2753_v63  ;;  %v418_v50 = vrot.slane %v416_v39, 4  ;;  %v421_v51 = vrot.slane %v419_v42, 5  ;;  %v6815_v39 = vld [vmem:[%s6511_s26 + $0x84] sm:$0xf] }
  0x62   : > { %v425_v52 = vshll.u32 %v6770_v29, 16  ;;  %5830 = vmatmul.mubr.msk.bf16.gmra.mrb[12].mxu0 %vm633_vm3, %v5217_v43  ;;  %v404_v15 = vsel %vm6537_vm4, %v399_v44, %v403_v5  ;;  %v409_v62 = vrot.slane %v408_v45, 4  ;;  %v5275_v55 = vcombine.low %v2751_v47, %v2754_v49  ;;  %v6823_v43 = vld [vmem:[%s6511_s26 + $0x88] sm:$0xf] }
  0x63   : > { %v429_v56 = vshrl.u32 %v6770_v29, 16  ;;  %v422_v63 = vor.u32 %v421_v51, %v418_v50  ;;  %v435_v61 = vshll.u32 %v189_v26, 16  ;;  %v5259_v2 = vrot.slane %v5243_v48, 9 }
  0x64   : > { %v427_v58 = vrot.slane %v425_v52, 5  ;;  %v414_v6 = vsel %vm6537_vm4, %v409_v62, %v413_v38  ;;  %5851 = vmatprep.mubr.msk.bf16.mxu0 %vm633_vm3, %v5275_v55  ;;  %v2761_v5 = vsel %vm6763_vm7, %v6580_v30, %v2760_v28  ;;  %v440_v17 = vshrl.u32 %v6789_v53, 16  ;;  %v191_v52 = vld [vmem:[%s6511_s26 + $0x8c] sm:$0x1] }
  0x65   : > { %v431_v7 = vrot.slane %v429_v56, 4  ;;  %v4991_v11 = vcombine.low %v404_v15, %v414_v6  ;;  %v423_v14 = vrot.slane %v422_v63, 4  ;;  %v437_v18 = vrot.slane %v435_v61, 5 }
  0x66   : > { %v2758_v21 = vsel %vm6763_vm7, %v5259_v2, %v2757_v22  ;;  %v442_v38 = vrot.slane %v440_v17, 4  ;;  %v443_v1 = vshll.u32 %v6789_v53, 16  ;;  %v449_v30 = vshll.u32 %v6796_v16, 16  ;;  %v6828_v22 = vld [vmem:[%s8459_s1 + $0xe] sm:$0x3] }
  0x67   : > { %v432_v25 = vor.u32 %v431_v7, %v427_v58  ;;  %v5276_v31 = vcombine.low %v2758_v21, %v2761_v5  ;;  %5697 = vmatprep.mubr.msk.bf16.mxu1 %vm633_vm3, %v4991_v11  ;;  %v428_v28 = vsel %vm6537_vm4, %v423_v14, %v427_v58  ;;  %v453_v60 = vshrl.u32 %v6796_v16, 16  ;;  %v6847_v5 = vld [vmem:[%s6511_s26 + $0x90] sm:$0xf] }
  0x68   : > { %v459_v42 = vshll.u32 %v190_v57, 16  ;;  %v445_v45 = vrot.slane %v443_v1, 5  ;;  %v5260_v47 = vrot.slane %v5244_v10, 9  ;;  %v2764_v26 = vrot.slane %v6587_v46, 5  ;;  %v5245_v57 = vld [vmem:[%s6511_s26 + $0x30] sm:$0xe] }
  0x69   : > { %v433_v44 = vrot.slane %v432_v25, 4  ;;  %v451_v48 = vrot.slane %v449_v30, 5  ;;  %v455_v49 = vrot.slane %v453_v60, 4  ;;  %v2767_v51 = vrot.slane %v6596_v54, 5  ;;  %v6859_v30 = vld [vmem:[%s6511_s26 + $0x94] sm:$0xf] }
  0x6a   : > { %v461_v50 = vrot.slane %v459_v42, 5  ;;  %5852 = vmatmul.mubr.msk.bf16.vlgmr.msra.gmra.mrb[0].mxu0 %vm633_vm3, %v5276_v31  ;;  %v446_v62 = vor.u32 %v445_v45, %v442_v38  ;;  %v2765_v55 = vsel %vm6763_vm7, %v5260_v47, %v2764_v26  ;;  %v2766_v56 = vrot.slane %v2764_v26, 4  ;;  %v192_v60 = vld [vmem:[%s6511_s26 + $0x98] sm:$0x1]  ;;  %v5246_v26 = vld [vmem:[%s6511_s26 + $0x3c] sm:$0xe] }
  0x6b   : > { %v438_v15 = vsel %vm6537_vm4, %v433_v44, %v437_v18  ;;  %5884 = vmatpush3.bf16.msra.mxu0 %v6547_v41  ;;  %v456_v46 = vor.u32 %v455_v49, %v451_v48  ;;  %v464_v58 = vshrl.u32 %v6815_v39, 16  ;;  %v467_v54 = vshll.u32 %v6815_v39, 16 }
  0x6c   : > { %v4992_v63 = vcombine.low %v428_v28, %v438_v15  ;;  %v447_v61 = vrot.slane %v446_v62, 4  ;;  %v2768_v2 = vsel %vm6763_vm7, %v2766_v56, %v2767_v51  ;;  %v473_v6 = vshll.u32 %v6823_v43, 16  ;;  %6251 = vmatprep.subr.msk.bf16.mxu0 %vm682_vm0, %v6828_v22 }
  0x6d   : > { %v477_v7 = vshrl.u32 %v6823_v43, 16  ;;  %v457_v41 = vrot.slane %v456_v46, 4  ;;  %v5277_v17 = vcombine.low %v2765_v55, %v2768_v2  ;;  %v466_v10 = vrot.slane %v464_v58, 4  ;;  %v6879_v46 = vld [vmem:[%s6511_s26 + $0xa0] sm:$0xf] }
  0x6e   : > { %5698 = vmatmul.mubr.msk.bf16.gmra.mrb[16].mxu1 %vm633_vm3, %v4992_v63  ;;  %v469_v11 = vrot.slane %v467_v54, 5  ;;  %v452_v14 = vsel %vm6537_vm4, %v447_v61, %v451_v48  ;;  %v475_v18 = vrot.slane %v473_v6, 5  ;;  %v483_v25 = vshll.u32 %v191_v52, 16  ;;  %v6868_v52 = vld [vmem:[%s6511_s26 + $0x9c] sm:$0xf] }
  0x6f   : > { %v479_v21 = vrot.slane %v477_v7, 4  ;;  %v462_v31 = vsel %vm6537_vm4, %v457_v41, %v461_v50  ;;  %5855 = vmatprep.mubr.msk.bf16.mxu0 %vm633_vm3, %v5277_v17  ;;  %v5261_v1 = vrot.slane %v5245_v57, 9  ;;  %v2771_v28 = vrot.slane %v6616_v33, 5 }
  0x70   : > { %v470_v38 = vor.u32 %v469_v11, %v466_v10  ;;  %v4993_v42 = vcombine.low %v452_v14, %v462_v31  ;;  %v485_v45 = vrot.slane %v483_v25, 5  ;;  %v2774_v47 = vrot.slane %v6624_v40, 5  ;;  %v193_v10 = vld [vmem:[%s6511_s26 + $0xa4] sm:$0x1]  ;;  %v5247_v11 = vld [vmem:[%s6511_s26 + $0x48] sm:$0xe] }
  0x71   : > { %v480_v44 = vor.u32 %v479_v21, %v475_v18  ;;  %v2772_v49 = vsel %vm6763_vm7, %v5261_v1, %v2771_v28  ;;  %v2773_v50 = vrot.slane %v2771_v28, 4  ;;  %v488_v51 = vshrl.u32 %v6847_v5, 16 }
  0x72   : > { %v471_v48 = vrot.slane %v470_v38, 4  ;;  %5701 = vmatprep.mubr.msk.bf16.mxu1 %vm633_vm3, %v4993_v42  ;;  %v491_v15 = vshll.u32 %v6847_v5, 16  ;;  %v497_v62 = vshll.u32 %v6859_v30, 16  ;;  %v501_v40 = vshrl.u32 %v6859_v30, 16 }
  0x73   : > { %v481_v33 = vrot.slane %v480_v44, 4  ;;  %v2775_v56 = vsel %vm6763_vm7, %v2773_v50, %v2774_v47  ;;  %v490_v57 = vrot.slane %v488_v51, 4  ;;  %v507_v63 = vshll.u32 %v192_v60, 16 }
  0x74   : > { %v476_v55 = vsel %vm6537_vm4, %v471_v48, %v475_v18  ;;  %v5278_v54 = vcombine.low %v2772_v49, %v2775_v56  ;;  %v493_v61 = vrot.slane %v491_v15, 5  ;;  %v499_v2 = vrot.slane %v497_v62, 5  ;;  %v6905_v56 = vld [vmem:[%s6511_s26 + $0xac] sm:$0xf] }
  0x75   : > { %v486_v58 = vsel %vm6537_vm4, %v481_v33, %v485_v45  ;;  %v503_v7 = vrot.slane %v501_v40, 4  ;;  %v509_v41 = vrot.slane %v507_v63, 5  ;;  %v5262_v17 = vrot.slane %v5246_v26, 9  ;;  %v6900_v33 = vld [vmem:[%s6511_s26 + $0xa8] sm:$0xf] }
  0x76   : > { %v4994_v6 = vcombine.low %v476_v55, %v486_v58  ;;  %5856 = vmatmul.mubr.msk.bf16.gmra.mrb[4].mxu0 %vm633_vm3, %v5278_v54  ;;  %v494_v14 = vor.u32 %v493_v61, %v490_v57  ;;  %v2778_v18 = vrot.slane %v6641_v20, 5  ;;  %v2781_v21 = vrot.slane %v6646_v34, 5  ;;  %v194_v61 = vld [vmem:[%s6511_s26 + $0xb0] sm:$0x1] }
  0x77   : > { %v512_v25 = vshrl.u32 %v6868_v52, 16  ;;  %v504_v31 = vor.u32 %v503_v7, %v499_v2  ;;  %v515_v38 = vshll.u32 %v6868_v52, 16  ;;  %v521_v1 = vshll.u32 %v6879_v46, 16 }
  0x78   : > { %5702 = vmatmul.mubr.msk.bf16.gmra.mrb[20].mxu1 %vm633_vm3, %v4994_v6  ;;  %v525_v28 = vshrl.u32 %v6879_v46, 16  ;;  %v495_v60 = vrot.slane %v494_v14, 4  ;;  %v2779_v42 = vsel %vm6763_vm7, %v5262_v17, %v2778_v18  ;;  %v2780_v20 = vrot.slane %v2778_v18, 4  ;;  %v6920_v14 = vld [vmem:[%s6511_s26 + $0xb4] sm:$0xf] }
  0x79   : > { %v514_v44 = vrot.slane %v512_v25, 4  ;;  %v505_v34 = vrot.slane %v504_v31, 4  ;;  %v517_v45 = vrot.slane %v515_v38, 5  ;;  %v523_v47 = vrot.slane %v521_v1, 5 }
  0x7a   : > { %v527_v26 = vrot.slane %v525_v28, 4  ;;  %v500_v48 = vsel %vm6537_vm4, %v495_v60, %v499_v2  ;;  %v2782_v49 = vsel %vm6763_vm7, %v2780_v20, %v2781_v21  ;;  %v531_v50 = vshll.u32 %v193_v10, 16  ;;  %v5248_v2 = vld [vmem:[%s6511_s26 + $0x54] sm:$0xe] }
  0x7b   : > { %v5263_v51 = vrot.slane %v5247_v11, 9  ;;  %v510_v15 = vsel %vm6537_vm4, %v505_v34, %v509_v41  ;;  %v5279_v62 = vcombine.low %v2779_v42, %v2782_v49  ;;  %v518_v40 = vor.u32 %v517_v45, %v514_v44  ;;  %v6929_v42 = vld [vmem:[%s6511_s26 + $0xb8] sm:$0xf]  ;;  %v195_v49 = vld [vmem:[%s6511_s26 + $0xbc] sm:$0x1] }
  0x7c   : > { %v528_v55 = vor.u32 %v527_v26, %v523_v47  ;;  %v4995_v57 = vcombine.low %v500_v48, %v510_v15  ;;  %v533_v63 = vrot.slane %v531_v50, 5  ;;  %v2785_v58 = vrot.slane %v6664_v8, 5 }
  0x7d   : > { %v2788_v54 = vrot.slane %v6672_v23, 5  ;;  %5859 = vmatprep.mubr.msk.bf16.mxu0 %vm633_vm3, %v5279_v62  ;;  %v519_v6 = vrot.slane %v518_v40, 4  ;;  %v536_v41 = vshrl.u32 %v6900_v33, 16  ;;  %v539_v17 = vshll.u32 %v6900_v33, 16 }
  0x7e   : > { %v529_v7 = vrot.slane %v528_v55, 4  ;;  %5705 = vmatprep.mubr.msk.bf16.mxu1 %vm633_vm3, %v4995_v57  ;;  %v2786_v10 = vsel %vm6763_vm7, %v5263_v51, %v2785_v58  ;;  %v2787_v11 = vrot.slane %v2785_v58, 4  ;;  %v545_v8 = vshll.u32 %v6905_v56, 16  ;;  %v5249_v55 = vld [vmem:[%s6511_s26 + $0x60] sm:$0xe] }
  0x7f   : > { %v549_v23 = vshrl.u32 %v6905_v56, 16  ;;  %v524_v18 = vsel %vm6537_vm4, %v519_v6, %v523_v47  ;;  %v538_v25 = vrot.slane %v536_v41, 4  ;;  %v541_v31 = vrot.slane %v539_v17, 5  ;;  %v5250_v6 = vld [vmem:[%s6511_s26 + $0x6c] sm:$0xe] }
  0x80   : > { %v534_v21 = vsel %vm6537_vm4, %v529_v7, %v533_v63  ;;  %v2789_v1 = vsel %vm6763_vm7, %v2787_v11, %v2788_v54  ;;  %v547_v28 = vrot.slane %v545_v8, 5  ;;  %v555_v34 = vshll.u32 %v194_v61, 16  ;;  %v5186_v11 = vld [vmem:[%s6511_s26 + $0x70] sm:$0xf]  ;;  %v5187_v8 = vld [vmem:[%s6511_s26 + $0x74] sm:$0x1] }
  0x81   : > { %v4996_v38 = vcombine.low %v524_v18, %v534_v21  ;;  %v551_v60 = vrot.slane %v549_v23, 4  ;;  %v5280_v20 = vcombine.low %v2786_v10, %v2789_v1  ;;  %v542_v44 = vor.u32 %v541_v31, %v538_v25 }
  0x82   : > { %v5264_v45 = vrot.slane %v5248_v2, 9  ;;  %v2792_v26 = vrot.slane %v6695_v4, 5  ;;  %v2795_v48 = vrot.slane %v6701_v12, 5  ;;  %v560_v50 = vshrl.u32 %v6920_v14, 16 }
  0x83   : > { %5706 = vmatmul.mubr.msk.bf16.gmra.mrb[24].mxu1 %vm633_vm3, %v4996_v38  ;;  %v552_v47 = vor.u32 %v551_v60, %v547_v28  ;;  %5860 = vmatmul.mubr.msk.bf16.gmra.mrb[8].mxu0 %vm633_vm3, %v5280_v20  ;;  %v543_v51 = vrot.slane %v542_v44, 4  ;;  %v557_v15 = vrot.slane %v555_v34, 5  ;;  %v563_v62 = vshll.u32 %v6920_v14, 16 }
  0x84   : > { %v569_v40 = vshll.u32 %v6929_v42, 16  ;;  %v2793_v4 = vsel %vm6763_vm7, %v5264_v45, %v2792_v26  ;;  %v2794_v12 = vrot.slane %v2792_v26, 4  ;;  %v562_v63 = vrot.slane %v560_v50, 4 }
  0x85   : > { %v553_v57 = vrot.slane %v552_v47, 4  ;;  %v548_v58 = vsel %vm6537_vm4, %v543_v51, %v547_v28  ;;  %v565_v54 = vrot.slane %v563_v62, 5  ;;  %v573_v2 = vshrl.u32 %v6929_v42, 16  ;;  %v5251_v47 = vld [vmem:[%s6511_s26 + $0x78] sm:$0xe] }
  0x86   : > { %v571_v61 = vrot.slane %v569_v40, 5  ;;  %v2796_v41 = vsel %vm6763_vm7, %v2794_v12, %v2795_v48  ;;  %v579_v17 = vshll.u32 %v195_v49, 16  ;;  %v5265_v10 = vrot.slane %v5249_v55, 9  ;;  %v6334_v51 = vld [vmem:[%s6511_s26] sm:$0xf] }
  0x87   : > { %v558_v7 = vsel %vm6537_vm4, %v553_v57, %v557_v15  ;;  %v5281_v18 = vcombine.low %v2793_v4, %v2796_v41  ;;  %v566_v21 = vor.u32 %v565_v54, %v562_v63  ;;  %v575_v25 = vrot.slane %v573_v2, 4  ;;  %v6967_v15 = vld [vmem:[%s6511_s26 + $0x4] sm:$0xf]  ;;  %v6971_v40 = vld [vmem:[%s6511_s26 + $0x7c] sm:$0xf] }
  0x88   : > { %v4997_v23 = vcombine.low %v548_v58, %v558_v7  ;;  %v581_v31 = vrot.slane %v579_v17, 5  ;;  %v2799_v38 = vrot.slane %v6725_v59, 5  ;;  %v2802_v1 = vrot.slane %v6732_v9, 5  ;;  %v6974_v55 = vld [vmem:[%s6511_s26 + $0x80] sm:$0x1] }
  0x89   : > { %v5266_v28 = vrot.slane %v5250_v6, 9  ;;  %5863 = vmatprep.mubr.msk.bf16.mxu0 %vm633_vm3, %v5281_v18  ;;  %v567_v60 = vrot.slane %v566_v21, 4  ;;  %v576_v20 = vor.u32 %v575_v25, %v571_v61  ;;  %v2806_v44 = vrot.slane %v5186_v11, 5  ;;  %v5192_v57 = vld [vmem:[%s6511_s26 + $0x88] sm:$0xf] }
  0x8a   : > { %5709 = vmatprep.mubr.msk.bf16.mxu1 %vm633_vm3, %v4997_v23  ;;  %v2809_v34 = vrot.slane %v5187_v8, 5  ;;  %v2800_v45 = vsel %vm6763_vm7, %v5265_v10, %v2799_v38  ;;  %v2801_v59 = vrot.slane %v2799_v38, 4  ;;  %v5015_v62 = vcombine.low %v6334_v51, %v6967_v15  ;;  %v5193_v54 = vld [vmem:[%s6511_s26 + $0x8c] sm:$0x1]  ;;  %v5195_v17 = vld [vmem:[%s6511_s26 + $0x94] sm:$0xf] }
  0x8b   : > { %v572_v9 = vsel %vm6537_vm4, %v567_v60, %v571_v61  ;;  %v577_v26 = vrot.slane %v576_v20, 4  ;;  %v2807_v48 = vsel %vm6763_vm7, %v5266_v28, %v2806_v44  ;;  %v2808_v49 = vrot.slane %v2806_v44, 4  ;;  %v5252_v61 = vld [vmem:[%s6511_s26 + $0x84] sm:$0xe]  ;;  %v5253_v23 = vld [vmem:[%s6511_s26 + $0x90] sm:$0xe] }
  0x8c   : > { %v2803_v50 = vsel %vm6763_vm7, %v2801_v59, %v2802_v1  ;;  %v5267_v58 = vrot.slane %v5251_v47, 9  ;;  %v2813_v7 = vrot.slane %v6971_v40, 5  ;;  %v2816_v41 = vrot.slane %v6974_v55, 5  ;;  %v5196_v25 = vld [vmem:[%s6511_s26 + $0x98] sm:$0x1] }
  0x8d   : > { %v582_v4 = vsel %vm6537_vm4, %v577_v26, %v581_v31  ;;  %v5282_v12 = vcombine.low %v2800_v45, %v2803_v50  ;;  %v2810_v63 = vsel %vm6763_vm7, %v2808_v49, %v2809_v34  ;;  %v5268_v10 = vrot.slane %v5252_v61, 9  ;;  %v5198_v31 = vld [vmem:[%s6511_s26 + $0xa0] sm:$0xf]  ;;  %v5199_v60 = vld [vmem:[%s6511_s26 + $0xa4] sm:$0x1] }
  0x8e   : > { %v4998_v2 = vcombine.low %v572_v9, %v582_v4  ;;  %v5283_v6 = vcombine.low %v2807_v48, %v2810_v63  ;;  %v2820_v11 = vrot.slane %v5192_v57, 5  ;;  %v2823_v8 = vrot.slane %v5193_v54, 5  ;;  %v5254_v20 = vld [vmem:[%s6511_s26 + $0x9c] sm:$0xe]  ;;  %v6336_v44 = vld [vmem:[%s6511_s26 + $0xc] sm:$0xf] }
  0x8f   : > { %5864 = vmatmul.mubr.msk.bf16.gmra.mrb[12].mxu0 %vm633_vm3, %v5282_v12  ;;  %v2814_v18 = vsel %vm6763_vm7, %v5267_v58, %v2813_v7  ;;  %v2815_v21 = vrot.slane %v2813_v7, 4  ;;  %v2827_v28 = vrot.slane %v5195_v17, 5  ;;  %v7001_v34 = vld [vmem:[%s6511_s26 + $0x10] sm:$0xf]  ;;  %v6338_v47 = vld [vmem:[%s6511_s26 + $0x18] sm:$0xf] }
  0x90   : > { %5710 = vmatmul.mubr.msk.bf16.gmra.mrb[28].mxu1 %vm633_vm3, %v4998_v2  ;;  %5867 = vmatprep.mubr.msk.bf16.mxu0 %vm633_vm3, %v5283_v6  ;;  %v2821_v38 = vsel %vm6763_vm7, %v5268_v10, %v2820_v11  ;;  %v2822_v1 = vrot.slane %v2820_v11, 4  ;;  %v5016_v45 = vcombine.low %v6336_v44, %v7001_v34  ;;  %v7008_v9 = vld [vmem:[%s6511_s26 + $0x1c] sm:$0xf]  ;;  %v5269_v48 = vrot.slane %v5253_v23, 9  ;;  %v5201_v57 = vld [vmem:[%s6511_s26 + $0xac] sm:$0xf] }
  0x91   : > { %5715 = vmatprep.mubr.msk.bf16.mxu1 %vm633_vm3, %v5015_v62  ;;  %v2817_v59 = vsel %vm6763_vm7, %v2815_v21, %v2816_v41  ;;  %v5017_v26 = vcombine.low %v6338_v47, %v7008_v9  ;;  %v2829_v51 = vrot.slane %v2827_v28, 4  ;;  %v2830_v62 = vrot.slane %v5196_v25, 5  ;;  %v6340_v54 = vld [vmem:[%s8459_s1 + $0x4] sm:$0x3]  ;;  %v5204_v2 = vld [vmem:[%s6511_s26 + $0xb8] sm:$0xf] }
  0x92   : > { %v5284_v49 = vcombine.low %v2814_v18, %v2817_v59  ;;  %v2824_v50 = vsel %vm6763_vm7, %v2822_v1, %v2823_v8  ;;  %v5270_v12 = vrot.slane %v5254_v20, 9  ;;  %v2834_v63 = vrot.slane %v5198_v31, 5  ;;  %v7023_v7 = vld [vmem:[%s8459_s1 + $0x6] sm:$0x3]  ;;  %v5202_v10 = vld [vmem:[%s6511_s26 + $0xb0] sm:$0x1] }
  0x93   : > { %v5285_v4 = vcombine.low %v2821_v38, %v2824_v50  ;;  %v2837_v58 = vrot.slane %v5199_v60, 5  ;;  %v1401_v61 = vsel %vm682_vm0, %v6340_v54, 0  ;;  %v2828_v41 = vsel %vm6763_vm7, %v5269_v48, %v2827_v28  ;;  %v5255_v11 = vld [vmem:[%s6511_s26 + $0xa8] sm:$0xe]  ;;  %v5205_v25 = vld [vmem:[%s6511_s26 + $0xbc] sm:$0x1] }
  0x94   : > { %v2836_v6 = vrot.slane %v2834_v63, 4  ;;  %v2831_v17 = vsel %vm6763_vm7, %v2829_v51, %v2830_v62  ;;  %v2841_v8 = vrot.slane %v5201_v57, 5  ;;  %v2835_v23 = vsel %vm6763_vm7, %v5270_v12, %v2834_v63  ;;  %v5256_v31 = vld [vmem:[%s6511_s26 + $0xb4] sm:$0xe]  ;;  %v6341_v38 = vld [vmem:[%s6511_s26 + $0x24] sm:$0xf] }
  0x95   : > { %v2848_v21 = vrot.slane %v5204_v2, 5  ;;  %v7044_v1 = vld [vmem:[%s6511_s26 + $0x28] sm:$0xf]  ;;  %v5286_v60 = vcombine.low %v2828_v41, %v2831_v17  ;;  %v5271_v44 = vrot.slane %v5255_v11, 9  ;;  %v2844_v59 = vrot.slane %v5202_v10, 5 }
  0x96   : > { %v2838_v18 = vsel %vm6763_vm7, %v2836_v6, %v2837_v58  ;;  %v5018_v28 = vcombine.low %v6341_v38, %v7044_v1  ;;  %v6343_v47 = vld [vmem:[%s6511_s26 + $0x30] sm:$0xf]  ;;  %v2851_v51 = vrot.slane %v5205_v25, 5  ;;  %v5207_v62 = vld [vmem:[%s6511_s26 + $0xc4] sm:$0xf]  ;;  %v2236_v25 = vshrl.u32 %v6971_v40, 16 }
  0x97   : > { %5868 = vmatmul.mubr.msk.bf16.gmra.mrb[16].mxu0 %vm633_vm3, %v5284_v49  ;;  %v5287_v20 = vcombine.low %v2835_v23, %v2838_v18  ;;  %v5272_v49 = vrot.slane %v5256_v31, 9  ;;  %v2850_v50 = vrot.slane %v2848_v21, 4  ;;  %v2842_v57 = vsel %vm6763_vm7, %v5271_v44, %v2841_v8  ;;  %v5257_v12 = vld [vmem:[%s6511_s26 + $0xc0] sm:$0xe]  ;;  %v6345_v41 = vld [vmem:[%s6511_s26 + $0x3c] sm:$0xf] }
  0x98   : > { %5716 = vmatmul.mubr.msk.bf16.vlgmr.msra.gmra.mrb[0].mxu1 %vm633_vm3, %v5016_v45  ;;  %5871 = vmatprep.mubr.msk.bf16.mxu0 %vm633_vm3, %v5285_v4  ;;  %v2843_v45 = vrot.slane %v2841_v8, 4  ;;  %v2855_v63 = vrot.slane %v5207_v62, 5  ;;  %v5273_v6 = vrot.slane %v5257_v12, 9  ;;  %v7069_v17 = vld [vmem:[%s6511_s26 + $0x40] sm:$0xf]  ;;  %v5021_v18 = vcombine.low %v6676_v27, %v6679_v36  ;;  %v6297_v62 = vld [vmem:[%s6511_s26 + $0x24] sm:$0xff]  }
  0x99   : > { %5748 = vmatpush3.bf16.msra.mxu1 %v1401_v61  ;;  %5719 = vmatprep.mubr.msk.bf16.mxu1 %vm633_vm3, %v5017_v26  ;;  %v7049_v26 = vld [vmem:[%s6511_s26 + $0x34] sm:$0xf]  ;;  %v2849_v58 = vsel %vm6763_vm7, %v5272_v49, %v2848_v21  ;;  %v2852_v54 = vsel %vm6763_vm7, %v2850_v50, %v2851_v51  ;;  %v5208_v61 = vld [vmem:[%s6511_s26 + $0xc8] sm:$0x1]  ;;  %v5020_v10 = vcombine.low %v6345_v41, %v7069_v17  ;;  %v2232_v21 = vshll.u32 %v6971_v40, 16 }
  0x9a   : > { %6246 = vmatprep.subr.msk.bf16.mxu1 %vm682_vm0, %v7023_v7  ;;  %v5019_v48 = vcombine.low %v6343_v47, %v7049_v26  ;;  %v2845_v4 = vsel %vm6763_vm7, %v2843_v45, %v2844_v59  ;;  %v5289_v11 = vcombine.low %v2849_v58, %v2852_v54  ;;  %v2857_v8 = vrot.slane %v2855_v63, 4  ;;  %v1139_v45 = vld [vmem:[%s6511_s26] sm:$0xe]  ;;  %v1140_v59 = vld [vmem:[%s6511_s26 + $0xc] sm:$0xe] }
  0x9b   : > { %v5288_v2 = vcombine.low %v2842_v57, %v2845_v4  ;;  %v2858_v23 = vrot.slane %v5208_v61, 5  ;;  %v2856_v31 = vsel %vm6763_vm7, %v5273_v6, %v2855_v63  ;;  %v7084_v27 = vrot.slane %v2232_v21, 5  ;;  %v1143_v41 = vld [vmem:[%s6511_s26 + $0x30] sm:$0xe] }
  0x9c   : > { %v2238_v36 = vrot.slane %v2236_v25, 4  ;;  %v5023_v44 = vcombine.low %v6736_v19, %v6742_v35  ;;  %v2242_v47 = vshll.u32 %v6974_v55, 16  ;;  %v5047_v19 = vrot.slane %v1139_v45, 9 }
  0x9d   : > { %v2859_v38 = vsel %vm6763_vm7, %v2857_v8, %v2858_v23  ;;  %8479 = vst [vmem:[#allocation6_spill] sm:$0xff] %v7084_v27  ;;  %v5048_v35 = vrot.slane %v1140_v59, 9  ;;  %v1206_v4 = vrot.slane %v7008_v9, 5  ;;  %v1213_v12 = vrot.slane %v7044_v1, 5  ;;  %v1144_v8 = vld [vmem:[%s6511_s26 + $0x3c] sm:$0xe] }
  0x9e   : > { %v5290_v40 = vcombine.low %v2856_v31, %v2859_v38  ;;  %v2239_v49 = vor.u32 %v2238_v36, %v7084_v27  ;;  %v7104_v51 = vrot.slane %v2242_v47, 5  ;;  %v5024_v58 = vcombine.low %v6757_v0, %v6770_v29  ;;  %v1145_v31 = vld [vmem:[%s6511_s26 + $0x48] sm:$0xe]  ;;  %v6351_v59 = vld [vmem:[%s6511_s26 + $0x38] sm:$0x1] }
  0x9f   : > { %5872 = vmatmul.mubr.msk.bf16.gmra.mrb[20].mxu0 %vm633_vm3, %v5286_v60  ;;  %v5022_v60 = vcombine.low %v6705_v24, %v6711_v37  ;;  %v6348_v24 = vld [vmem:[%s6511_s26 + $0x14] sm:$0x1]  ;;  %v4047_v54 = vsel %vm682_vm0, %v6828_v22, 0  ;;  %v5025_v61 = vcombine.low %v6789_v53, %v6796_v16  ;;  %v5026_v6 = vcombine.low %v6815_v39, %v6823_v43  ;;  %v6349_v16 = vld [vmem:[%s6511_s26 + $0x20] sm:$0x1] }
  0xa0   : > { %5720 = vmatmul.mubr.msk.bf16.gmra.mrb[4].mxu1 %vm633_vm3, %v5018_v28  ;;  %5875 = vmatprep.mubr.msk.bf16.mxu0 %vm633_vm3, %v5287_v20  ;;  %v1199_v28 = vrot.slane %v7001_v34, 5  ;;  %v6295_v20 = vld [vmem:[%s6511_s26 + $0x18] sm:$0xff]   ;;  %v6347_v34 = vld [vmem:[%s6511_s26 + $0x8] sm:$0x1]  ;;  %v1202_v37 = vrot.slane %v6348_v24, 5  ;;  %8480 = vst [vmem:[#allocation7_spill] sm:$0xff] %v7104_v51  ;;  %v5027_v9 = vcombine.low %v6847_v5, %v6859_v30 }
  0xa1   : > { %5723 = vmatprep.mubr.msk.bf16.mxu1 %vm633_vm3, %v5019_v48  ;;  %v1192_v48 = vrot.slane %v6967_v15, 5  ;;  %v1195_v50 = vrot.slane %v6347_v34, 5  ;;  %v1141_v15 = vld [vmem:[%s6511_s26 + $0x18] sm:$0xe]  ;;  %v7109_v63 = vrot.slane %v2239_v49, 4  ;;  %v1209_v22 = vrot.slane %v6349_v16, 5 }
  0xa2   : > { %v1201_v55 = vrot.slane %v1199_v28, 4  ;;  %v5049_v1 = vrot.slane %v1141_v15, 9  ;;  %v7131_v29 = vsel %vm6763_vm7, %v5048_v35, %v1199_v28  ;;  %v1215_v25 = vrot.slane %v1213_v12, 4  ;;  %v5372_v24 = vld [vmem:[%s6511_s26 + $0x18] sm:$0xf] }
  0xa3   : > { %v1194_v57 = vrot.slane %v1192_v48, 4  ;;  %8481 = vst [vmem:[#allocation8_spill] sm:$0xff] %v7109_v63  ;;  %v7127_v0 = vsel %vm6763_vm7, %v5047_v19, %v1192_v48  ;;  %v1223_v47 = vrot.slane %v6351_v59, 5  ;;  %v7168_v49 = vsel %vm682_vm0, %v7023_v7, 0  ;;  %v5373_v7 = vld [vmem:[%s6511_s26 + $0x1c] sm:$0xf] }
  0xa4   : > { %v7135_v53 = vsel %vm6763_vm7, %v1201_v55, %v1202_v37  ;;  %v7172_v34 = vsel %vm6763_vm7, %v5049_v1, %v1206_v4  ;;  %v6301_v37 = vld [vmem:[%s6511_s26 + $0x3c] sm:$0xff]   ;;  %v5052_v35 = vrot.slane %v1144_v8, 9  ;;  %v6352_v55 = vld [vmem:[%s6511_s26 + $0x44] sm:$0x1]  ;;  %v3568_v8 = vshll.u32 %v5372_v24, 16 }
  0xa5   : > { %v7146_v23 = vsel %vm6763_vm7, %v1194_v57, %v1195_v50  ;;  %v1146_v50 = vld [vmem:[%s6511_s26 + $0x54] sm:$0xe]  ;;  %v1230_v15 = vrot.slane %v6352_v55, 5  ;;  %v5376_v39 = vld [vmem:[%s6511_s26 + $0x28] sm:$0xf] }
  0xa6   : > { %v6359_v5 = vld [vmem:[%s6511_s26 + $0x70] sm:$0xf] }
  0xa7   : > { %5876 = vmatmul.mubr.msk.bf16.gmra.mrb[24].mxu0 %vm633_vm3, %v5288_v2  ;;  %v1142_v2 = vld [vmem:[%s6511_s26 + $0x24] sm:$0xe]  ;;  %v1255_v30 = vrot.slane %v6359_v5, 5 }
  0xa8   : > { %5724 = vmatmul.mubr.msk.bf16.gmra.mrb[8].mxu1 %vm633_vm3, %v5020_v10  ;;  %5879 = vmatprep.mubr.msk.bf16.mxu0 %vm633_vm3, %v5289_v11  ;;  %v1220_v10 = vrot.slane %v7049_v26, 5  ;;  %v6299_v11 = vld [vmem:[%s6511_s26 + $0x30] sm:$0xff]   ;;  %v5050_v21 = vrot.slane %v1142_v2, 9 }
  0xa9   : > { %5727 = vmatprep.mubr.msk.bf16.mxu1 %vm633_vm3, %v5021_v18  ;;  %v7142_v26 = vld [vmem:[%s8459_s1 + $0x10] sm:$0x3]  ;;  %v1208_v18 = vrot.slane %v1206_v4, 4  ;;  %v1257_v48 = vrot.slane %v1255_v30, 4 }
  0xaa   : > { %v1222_v45 = vrot.slane %v1220_v10, 4  ;;  %v7179_v19 = vsel %vm6763_vm7, %v5050_v21, %v1213_v12  ;;  %v3578_v21 = vshrl.u32 %v5373_v7, 16 }
  0xab   : > { %v7188_v4 = vsel %vm6763_vm7, %v1208_v18, %v1209_v22  ;;  %v3565_v22 = vshrl.u32 %v5372_v24, 16  ;;  %v3574_v18 = vshll.u32 %v5373_v7, 16  ;;  %v5375_v24 = vld [vmem:[%s6511_s26 + $0x24] sm:$0xf] }
  0xac   : > { %v7201_v1 = vsel %vm6763_vm7, %v1222_v45, %v1223_v47 }
  0xad   : > { %v3567_v43 = vrot.slane %v3565_v22, 4  ;;  %v7243_v7 = vrot.slane %v3574_v18, 5  ;;  %v3592_v22 = vshll.u32 %v5375_v24, 16  ;;  %v3602_v18 = vshrl.u32 %v5376_v39, 16 }
  0xaf   : > { %5880 = vmatmul.mubr.msk.bf16.gmra.mrb[28].mxu0 %vm633_vm3, %v5290_v40  ;;  %v6350_v40 = vld [vmem:[%s6511_s26 + $0x2c] sm:$0x1]  ;;  %v3594_v27 = vrot.slane %v3592_v22, 5 }
  0xb0   : > { %5728 = vmatmul.mubr.msk.bf16.gmra.mrb[12].mxu1 %vm633_vm3, %v5022_v60  ;;  %5885 = vmatprep.mubr.msk.bf16.mxu0 %vm633_vm3, %v6295_v20  ;;  %v1216_v28 = vrot.slane %v6350_v40, 5  ;;  %v1227_v60 = vrot.slane %v7069_v17, 5  ;;  %v6355_v40 = vld [vmem:[%s6511_s26 + $0x50] sm:$0x1]  ;;  %v6360_v17 = vld [vmem:[%s6511_s26 + $0x74] sm:$0x1] }
  0xb1   : > { %5731 = vmatprep.mubr.msk.bf16.mxu1 %vm633_vm3, %v5023_v44  ;;  %v5051_v44 = vrot.slane %v1143_v41, 9  ;;  %v5054_v41 = vrot.slane %v1146_v50, 9  ;;  %v1147_v50 = vld [vmem:[%s6511_s26 + $0x60] sm:$0xe]  ;;  %v5377_v20 = vld [vmem:[%s6511_s26 + $0x2c] sm:$0x1] }
  0xb2   : > { %v1229_v12 = vrot.slane %v1227_v60, 4  ;;  %v7214_v45 = vsel %vm6763_vm7, %v5052_v35, %v1227_v60  ;;  %v6356_v35 = vld [vmem:[%s6511_s26 + $0x5c] sm:$0x1] }
  0xb3   : > { %v7197_v2 = vsel %vm6763_vm7, %v5051_v44, %v1220_v10  ;;  %v1244_v55 = vrot.slane %v6356_v35, 5  ;;  %v1148_v35 = vld [vmem:[%s6511_s26 + $0x6c] sm:$0xe] }
  0xb4   : > { %v7218_v59 = vsel %vm6763_vm7, %v1229_v12, %v1230_v15  ;;  %v6357_v15 = vld [vmem:[%s6511_s26 + $0x64] sm:$0xf]  ;;  %v3580_v12 = vrot.slane %v3578_v21, 4  ;;  %v5056_v5 = vrot.slane %v1148_v35, 9 }
  0xb5   : > { %v6307_v21 = vld [vmem:[%s6511_s26 + $0x60] sm:$0xff]  }
  0xb7   : > { %5886 = vmatmul.mubr.msk.bf16.vlgmr.msra.gmra.mrb[0].mxu0 %vm633_vm3, %v6297_v62  ;;  %v6353_v62 = vld [vmem:[%s6511_s26 + $0x4c] sm:$0xf] }
  0xb8   : > { %5732 = vmatmul.mubr.msk.bf16.gmra.mrb[16].mxu1 %vm633_vm3, %v5024_v58  ;;  %5918 = vmatpush3.bf16.msra.mxu0 %v4047_v54  ;;  %v1234_v57 = vrot.slane %v6353_v62, 5  ;;  %v7192_v58 = vsel %vm6763_vm7, %v1215_v25, %v1216_v28  ;;  %v5053_v54 = vrot.slane %v1145_v31, 9  ;;  %v1237_v28 = vrot.slane %v6355_v40, 5 }
  0xb9   : > { %5735 = vmatprep.mubr.msk.bf16.mxu1 %vm633_vm3, %v5025_v61  ;;  %5889 = vmatprep.mubr.msk.bf16.mxu0 %vm633_vm3, %v6299_v11  ;;  %v6303_v61 = vld [vmem:[%s6511_s26 + $0x48] sm:$0xff]   ;;  %v6354_v11 = vld [vmem:[%s6511_s26 + $0x58] sm:$0xf]  ;;  %v1248_v62 = vrot.slane %v6357_v15, 5  ;;  %v5379_v15 = vld [vmem:[%s6511_s26 + $0x34] sm:$0xf] }
  0xba   : > { %6252 = vmatprep.subr.msk.bf16.mxu0 %vm682_vm0, %v7142_v26  ;;  %v1241_v16 = vrot.slane %v6354_v11, 5  ;;  %v1236_v31 = vrot.slane %v1234_v57, 4  ;;  %v7222_v47 = vsel %vm6763_vm7, %v5053_v54, %v1234_v57  ;;  %v5374_v57 = vld [vmem:[%s6511_s26 + $0x20] sm:$0x1]  ;;  %v5378_v54 = vld [vmem:[%s6511_s26 + $0x30] sm:$0xf] }
  0xbb   : > { %v5055_v11 = vrot.slane %v1147_v50, 9  ;;  %v3616_v50 = vshll.u32 %v5378_v54, 16  ;;  %v3584_v25 = vshll.u32 %v5374_v57, 16  ;;  %v3622_v36 = vshll.u32 %v5379_v15, 16 }
  0xbc   : > { %v7233_v60 = vsel %vm6763_vm7, %v5054_v41, %v1241_v16  ;;  %v7249_v41 = vsel %vm6763_vm7, %v1236_v31, %v1237_v28  ;;  %v1250_v31 = vrot.slane %v1248_v62, 4  ;;  %v3613_v28 = vshrl.u32 %v5378_v54, 16 }
  0xbd   : > { %v7291_v35 = vrot.slane %v3622_v36, 5 }
  0xbf   : > { %5890 = vmatmul.mubr.msk.bf16.gmra.mrb[4].mxu0 %vm633_vm3, %v6301_v37  ;;  %v1243_v37 = vrot.slane %v1241_v16, 4  ;;  %v6358_v16 = vld [vmem:[%s6511_s26 + $0x68] sm:$0x1] }
  0xc0   : > { %5736 = vmatmul.mubr.msk.bf16.gmra.mrb[20].mxu1 %vm633_vm3, %v5026_v6  ;;  %5893 = vmatprep.mubr.msk.bf16.mxu0 %vm633_vm3, %v6303_v61  ;;  %v3570_v6 = vrot.slane %v3568_v8, 5  ;;  %v6305_v61 = vld [vmem:[%s6511_s26 + $0x54] sm:$0xff]   ;;  %v1251_v40 = vrot.slane %v6358_v16, 5  ;;  %v3598_v8 = vshll.u32 %v5376_v39, 16  ;;  %v3581_v16 = vor.u32 %v3580_v12, %v7243_v7 }
  0xc1   : > { %5739 = vmatprep.mubr.msk.bf16.mxu1 %vm633_vm3, %v5027_v9  ;;  %v3589_v9 = vshrl.u32 %v5375_v24, 16  ;;  %v7258_v44 = vsel %vm6763_vm7, %v1243_v37, %v1244_v55  ;;  %v1258_v24 = vrot.slane %v6360_v17, 5  ;;  %v3626_v39 = vshrl.u32 %v5379_v15, 16 }
  0xc2   : > { %v3571_v10 = vor.u32 %v3570_v6, %v3567_v43  ;;  %v7264_v37 = vrot.slane %v3598_v8, 5  ;;  %v3604_v55 = vrot.slane %v3602_v18, 4  ;;  %v8482_v43 = vcombine.low %v6868_v52, %v6879_v46  ;;  %v6361_v8 = vld [vmem:[%s6511_s26 + $0x7c] sm:$0xf]  ;;  %v7300_v18 = vld [vmem:[%s6511_s26 + $0x38] sm:$0x1] }
  0xc3   : > { %v3591_v38 = vrot.slane %v3589_v9, 4  ;;  %v7273_v17 = vsel %vm6763_vm7, %v5055_v11, %v1248_v62  ;;  %v7277_v57 = vsel %vm6763_vm7, %v1250_v31, %v1251_v40  ;;  %v3615_v6 = vrot.slane %v3613_v28, 4  ;;  %8484 = vst [vmem:[#allocation9_spill] sm:$0xff] %v7300_v18 }
  0xc4   : > { %v3618_v12 = vrot.slane %v3616_v50, 5  ;;  %v8483_v52 = vcombine.low %v6900_v33, %v6905_v56  ;;  %v3572_v46 = vrot.slane %v3571_v10, 4  ;;  %v3582_v54 = vrot.slane %v3581_v16, 4  ;;  %v6309_v33 = vld [vmem:[%s6511_s26 + $0x6c] sm:$0xff]   ;;  %v1150_v16 = vld [vmem:[%s6511_s26 + $0x84] sm:$0xe] }
  0xc5   : > { %v3608_v62 = vshll.u32 %v5377_v20, 16  ;;  %v7285_v11 = vsel %vm6763_vm7, %v5056_v5, %v1255_v30  ;;  %v7289_v40 = vsel %vm6763_vm7, %v1257_v48, %v1258_v24  ;;  %v3628_v9 = vrot.slane %v3626_v39, 4  ;;  %v6310_v48 = vld [vmem:[%s6511_s26 + $0x78] sm:$0xff]  }
  0xc6   : > { %v3595_v10 = vor.u32 %v3594_v27, %v3591_v38  ;;  %v3605_v20 = vor.u32 %v3604_v55, %v7264_v37  ;;  %v1262_v30 = vrot.slane %v6361_v8, 5  ;;  %v3619_v38 = vor.u32 %v3618_v12, %v3615_v6  ;;  %v5381_v5 = vld [vmem:[%s6511_s26 + $0x3c] sm:$0xf] }
  0xc7   : > { %5894 = vmatmul.mubr.msk.bf16.gmra.mrb[8].mxu0 %vm633_vm3, %v6305_v61  ;;  %v3586_v61 = vrot.slane %v3584_v25, 5  ;;  %v1149_v25 = vld [vmem:[%s6511_s26 + $0x78] sm:$0xe]  ;;  %v7316_v50 = vrot.slane %v3608_v62, 5  ;;  %v3629_v39 = vor.u32 %v3628_v9, %v7291_v35  ;;  %v3632_v55 = vshll.u32 %v7300_v18, 16 }
  0xc8   : > { %5740 = vmatmul.mubr.msk.bf16.gmra.mrb[24].mxu1 %vm633_vm3, %v8482_v43  ;;  %5897 = vmatprep.mubr.msk.bf16.mxu0 %vm633_vm3, %v6307_v21  ;;  %v3577_v21 = vsel %vm6537_vm4, %v3572_v46, %v7243_v7  ;;  %v5057_v24 = vrot.slane %v1149_v25, 9  ;;  %v6362_v43 = vld [vmem:[%s6511_s26 + $0x88] sm:$0xf]  ;;  %v7324_v7 = vld [vmem:[%s6511_s26 + $0x40] sm:$0xf]  ;;  %v3596_v12 = vrot.slane %v3595_v10, 4  ;;  %v8486_v62 = vcombine.low %v6920_v14, %v6929_v42 }
  0xc9   : > { %5743 = vmatprep.mubr.msk.bf16.mxu1 %vm633_vm3, %v8483_v52  ;;  %v3587_v31 = vsel %vm6537_vm4, %v3582_v54, %v3586_v61  ;;  %v1269_v6 = vrot.slane %v6362_v43, 5  ;;  %8485 = vst [vmem:[#allocation10_spill] sm:$0xff] %v7324_v7  ;;  %v3606_v52 = vrot.slane %v3605_v20, 4  ;;  %v1264_v46 = vrot.slane %v1262_v30, 4  ;;  %v6363_v54 = vld [vmem:[%s6511_s26 + $0x80] sm:$0x1] }
  0xca   : > { %v1265_v61 = vrot.slane %v6363_v54, 5  ;;  %v3620_v9 = vrot.slane %v3619_v38, 4  ;;  %v5058_v25 = vrot.slane %v1150_v16, 9  ;;  %v3637_v8 = vshrl.u32 %v5381_v5, 16  ;;  %v6311_v10 = vld [vmem:[%s6511_s26 + $0x84] sm:$0xff]  }
  0xcb   : > { %v3640_v43 = vshll.u32 %v5381_v5, 16  ;;  %v7338_v20 = vcombine.low %v3577_v21, %v3587_v31  ;;  %v7342_v14 = vsel %vm682_vm0, %v7142_v26, 0  ;;  %v3650_v38 = vshrl.u32 %v7324_v7, 16  ;;  %v6312_v21 = vld [vmem:[%s6511_s26 + $0x90] sm:$0xff]   ;;  %v6368_v18 = vld [vmem:[%s6511_s26 + $0xa0] sm:$0xf] }
  0xcc   : > { %v3630_v16 = vrot.slane %v3629_v39, 4  ;;  %v3634_v5 = vrot.slane %v3632_v55, 5  ;;  %v1271_v54 = vrot.slane %v1269_v6, 4  ;;  %v3601_v31 = vsel %vm6537_vm4, %v3596_v12, %v7264_v37 }
  0xcd   : > { %v3611_v26 = vsel %vm6537_vm4, %v3606_v52, %v7316_v50  ;;  %v7357_v39 = vsel %vm6763_vm7, %v5057_v24, %v1262_v30  ;;  %v7361_v55 = vsel %vm6763_vm7, %v1264_v46, %v1265_v61  ;;  %v3625_v37 = vsel %vm6537_vm4, %v3620_v9, %v7291_v35  ;;  %v5387_v30 = vld [vmem:[%s6511_s26 + $0x54] sm:$0xf]  ;;  %v7378_v24 = vld [vmem:[%s6511_s26 + $0x58] sm:$0xf]  ;;  %v7383_v61 = vld [vmem:[%s6511_s26 + $0x90] sm:$0xe] }
  0xce   : > { %v7374_v12 = vsel %vm6763_vm7, %v5058_v25, %v1269_v6  ;;  %v3639_v50 = vrot.slane %v3637_v8, 4  ;;  %v3642_v52 = vrot.slane %v3640_v43, 5  ;;  %v3652_v46 = vrot.slane %v3650_v38, 4 }
  0xcf   : > { %5898 = vmatmul.mubr.msk.bf16.gmra.mrb[12].mxu0 %vm633_vm3, %v6309_v33  ;;  %v8487_v33 = vcombine.low %v7127_v0, %v7146_v23  ;;  %v6364_v0 = vld [vmem:[%s6511_s26 + $0x8c] sm:$0x1]  ;;  %v3635_v36 = vsel %vm6537_vm4, %v3630_v16, %v3634_v5  ;;  %v3685_v25 = vshrl.u32 %v5387_v30, 16  ;;  %v3688_v8 = vshll.u32 %v5387_v30, 16 }
  0xd0   : > { %5744 = vmatmul.mubr.msk.bf16.gmra.mrb[28].mxu1 %vm633_vm3, %v8486_v62  ;;  %5901 = vmatprep.mubr.msk.bf16.mxu0 %vm633_vm3, %v6310_v48  ;;  %v3646_v48 = vshll.u32 %v7324_v7, 16  ;;  %v1272_v23 = vrot.slane %v6364_v0, 5  ;;  %v5384_v62 = vld [vmem:[%s6511_s26 + $0x48] sm:$0xf]  ;;  %v7367_v0 = vld [vmem:[%s6511_s26 + $0x4c] sm:$0xf]  ;;  %v8489_v38 = vcombine.low %v7131_v29, %v7135_v53  ;;  %v7401_v16 = vcombine.low %v3601_v31, %v3611_v26 }
  0xd1   : > { %5749 = vmatprep.mubr.msk.bf16.mxu1 %vm633_vm3, %v8487_v33  ;;  %v7364_v33 = vld [vmem:[%s6511_s26 + $0x44] sm:$0x1]  ;;  %v3661_v27 = vshrl.u32 %v5384_v62, 16  ;;  %v3664_v15 = vshll.u32 %v5384_v62, 16  ;;  %v3670_v6 = vshll.u32 %v7367_v0, 16  ;;  %v3674_v9 = vshrl.u32 %v7367_v0, 16 }
  0xd2   : > { %8488 = vst [vmem:[#allocation11_spill] sm:$0xff] %v7364_v33  ;;  %v7380_v28 = vrot.slane %v3646_v48, 5  ;;  %v7389_v35 = vsel %vm6763_vm7, %v1271_v54, %v1272_v23  ;;  %v3694_v43 = vshll.u32 %v7378_v24, 16  ;;  %v3698_v48 = vshrl.u32 %v7378_v24, 16  ;;  %v5390_v31 = vld [vmem:[%s6511_s26 + $0x60] sm:$0xf] }
  0xd3   : > { %v3656_v5 = vshll.u32 %v7364_v33, 16  ;;  %v5059_v54 = vrot.slane %v7383_v61, 9  ;;  %v8490_v23 = vcombine.low %v7172_v34, %v7188_v4  ;;  %v7412_v29 = vcombine.low %v3625_v37, %v3635_v36  ;;  %v6313_v26 = vld [vmem:[%s6511_s26 + $0x9c] sm:$0xff]   ;;  %v6314_v30 = vld [vmem:[%s6511_s26 + $0xa8] sm:$0xff]  }
  0xd4   : > { %v3643_v53 = vor.u32 %v3642_v52, %v3639_v50  ;;  %v3663_v62 = vrot.slane %v3661_v27, 4  ;;  %v7423_v34 = vrot.slane %v3670_v6, 5  ;;  %v3676_v4 = vrot.slane %v3674_v9, 4  ;;  %v6365_v36 = vld [vmem:[%s8459_s1 + $0x8] sm:$0x3] }
  0xd5   : > { %v3687_v27 = vrot.slane %v3685_v25, 4  ;;  %v3690_v37 = vrot.slane %v3688_v8, 5  ;;  %v7432_v50 = vrot.slane %v3694_v43, 5  ;;  %v3700_v52 = vrot.slane %v3698_v48, 4  ;;  %v6366_v6 = vld [vmem:[%s6511_s26 + $0x94] sm:$0xf] }
  0xd6   : > { %v7438_v9 = vld [vmem:[%s6511_s26 + $0x64] sm:$0xf]  ;;  %v3709_v61 = vshrl.u32 %v5390_v31, 16  ;;  %v7440_v22 = vrot.slane %v3643_v53, 4  ;;  %v1283_v25 = vrot.slane %v6368_v18, 5  ;;  %v3677_v43 = vor.u32 %v3676_v4, %v7423_v34 }
  0xd7   : > { %5902 = vmatmul.mubr.msk.bf16.gmra.mrb[16].mxu0 %vm633_vm3, %v6311_v10  ;;  %8491 = vst [vmem:[#allocation12_spill] sm:$0xff] %v7438_v9  ;;  %v3712_v10 = vshll.u32 %v5390_v31, 16  ;;  %v3691_v31 = vor.u32 %v3690_v37, %v3687_v27  ;;  %v3701_v53 = vor.u32 %v3700_v52, %v7432_v50  ;;  %v8492_v18 = vcombine.low %v7179_v19, %v7192_v58  ;;  %v6315_v37 = vld [vmem:[%s6511_s26 + $0xb4] sm:$0xff]  }
  0xd8   : > { %5750 = vmatmul.mubr.msk.bf16.vlgmr.msra.gmra.mrb[0].mxu1 %vm633_vm3, %v8489_v38  ;;  %5905 = vmatprep.mubr.msk.bf16.mxu0 %vm633_vm3, %v6312_v21  ;;  %v3666_v21 = vrot.slane %v3664_v15, 5  ;;  %v7421_v38 = vld [vmem:[%s6511_s26 + $0x50] sm:$0x1]  ;;  %v7430_v15 = vld [vmem:[%s6511_s26 + $0x5c] sm:$0x1]  ;;  %v8493_v27 = vcombine.low %v7197_v2, %v7201_v1  ;;  %v1285_v52 = vrot.slane %v1283_v25, 4 }
  0xd9   : > { %5782 = vmatpush3.bf16.msra.mxu1 %v7168_v49  ;;  %5753 = vmatprep.mubr.msk.bf16.mxu1 %vm633_vm3, %v8490_v23  ;;  %v3653_v49 = vor.u32 %v3652_v46, %v7380_v28  ;;  %v7434_v46 = vrot.slane %v3656_v5, 5  ;;  %v1276_v23 = vrot.slane %v6366_v6, 5  ;;  %v3680_v48 = vshll.u32 %v7421_v38, 16  ;;  %v1152_v5 = vld [vmem:[%s6511_s26 + $0x9c] sm:$0xe] }
  0xda   : > { %6248 = vmatprep.subr.msk.bf16.mxu1 %vm682_vm0, %v6365_v36  ;;  %v6367_v36 = vld [vmem:[%s6511_s26 + $0x98] sm:$0x1]  ;;  %v3667_v7 = vor.u32 %v3666_v21, %v3663_v62  ;;  %v3704_v6 = vshll.u32 %v7430_v15, 16  ;;  %v3722_v62 = vshrl.u32 %v7438_v9, 16  ;;  %v3714_v4 = vrot.slane %v3712_v10, 5 }
  0xdb   : > { %v1279_v33 = vrot.slane %v6367_v36, 5  ;;  %v3654_v8 = vrot.slane %v3653_v49, 4  ;;  %v3718_v36 = vshll.u32 %v7438_v9, 16  ;;  %v7459_v21 = vsel %vm6763_vm7, %v5059_v54, %v1276_v23  ;;  %v7470_v2 = vld [vmem:[%s6511_s26 + $0x68] sm:$0x1] }
  0xdc   : > { %v3711_v49 = vrot.slane %v3709_v61, 4  ;;  %v3668_v19 = vrot.slane %v3667_v7, 4  ;;  %v5060_v58 = vrot.slane %v1152_v5, 9  ;;  %v3678_v3 = vrot.slane %v3677_v43, 4  ;;  %8494 = vst [vmem:[#allocation13_spill] sm:$0xff] %v7470_v2  ;;  %v6316_v5 = vld [vmem:[%s6511_s26 + $0xc0] sm:$0xff]  }
  0xdd   : > { %v3682_v54 = vrot.slane %v3680_v48, 5  ;;  %v3706_v63 = vrot.slane %v3704_v6, 5  ;;  %v1290_v61 = vrot.slane %v6905_v56, 5  ;;  %v3692_v10 = vrot.slane %v3691_v31, 4  ;;  %v1154_v31 = vld [vmem:[%s6511_s26 + $0xb4] sm:$0xe] }
  0xde   : > { %v3702_v51 = vrot.slane %v3701_v53, 4  ;;  %v7472_v1 = vrot.slane %v3718_v36, 5  ;;  %v3724_v7 = vrot.slane %v3722_v62, 4  ;;  %v3649_v43 = vsel %vm6537_vm4, %v7440_v22, %v7380_v28  ;;  %v6370_v62 = vld [vmem:[%s6511_s26 + $0xb0] sm:$0x1] }
  0xdf   : > { %5906 = vmatmul.mubr.msk.bf16.gmra.mrb[20].mxu0 %vm633_vm3, %v6313_v26  ;;  %v1278_v26 = vrot.slane %v1276_v23, 4  ;;  %v1153_v23 = vld [vmem:[%s6511_s26 + $0xa8] sm:$0xe]  ;;  %v3659_v48 = vsel %vm6537_vm4, %v3654_v8, %v7434_v46  ;;  %v3715_v6 = vor.u32 %v3714_v4, %v3711_v49  ;;  %v3673_v53 = vsel %vm6537_vm4, %v3668_v19, %v7423_v34  ;;  %v5393_v46 = vld [vmem:[%s6511_s26 + $0x6c] sm:$0xf] }
  0xe0   : > { %5754 = vmatmul.mubr.msk.bf16.gmra.mrb[4].mxu1 %vm633_vm3, %v8492_v18  ;;  %5909 = vmatprep.mubr.msk.bf16.mxu0 %vm633_vm3, %v6314_v30  ;;  %v6369_v18 = vld [vmem:[%s6511_s26 + $0xa4] sm:$0x1]  ;;  %v7492_v36 = vsel %vm6763_vm7, %v5060_v58, %v1283_v25  ;;  %v5061_v28 = vrot.slane %v1153_v23, 9  ;;  %v1292_v8 = vrot.slane %v1290_v61, 4  ;;  %v3728_v49 = vshll.u32 %v7470_v2, 16 }
  0xe1   : > { %5757 = vmatprep.mubr.msk.bf16.mxu1 %vm633_vm3, %v8493_v27  ;;  %v1286_v30 = vrot.slane %v6369_v18, 5  ;;  %v7484_v56 = vsel %vm6763_vm7, %v1278_v26, %v1279_v33  ;;  %v3683_v33 = vsel %vm6537_vm4, %v3678_v3, %v3682_v54  ;;  %v1293_v26 = vrot.slane %v6370_v62, 5  ;;  %v5396_v18 = vld [vmem:[%s6511_s26 + $0x78] sm:$0xf]  ;;  %v7547_v54 = vld [vmem:[%s6511_s26 + $0xbc] sm:$0x1] }
  0xe2   : > { %v3697_v34 = vsel %vm6537_vm4, %v3692_v10, %v7432_v50  ;;  %v3707_v25 = vsel %vm6537_vm4, %v3702_v51, %v3706_v63  ;;  %v3725_v4 = vor.u32 %v3724_v7, %v7472_v1  ;;  %v5062_v27 = vrot.slane %v1154_v31, 9  ;;  %v7521_v51 = vld [vmem:[%s6511_s26 + $0x70] sm:$0xf]  ;;  %v7551_v10 = vld [vmem:[%s6511_s26 + $0x7c] sm:$0xf] }
  0xe3   : > { %v7496_v22 = vsel %vm6763_vm7, %v1285_v52, %v1286_v30  ;;  %v8496_v3 = vcombine.low %v7214_v45, %v7218_v59  ;;  %v7517_v19 = vrot.slane %v3715_v6, 4  ;;  %v1297_v50 = vrot.slane %v6929_v42, 5  ;;  %8497 = vst [vmem:[#allocation15_spill] sm:$0xff] %v7521_v51  ;;  %8499 = vst [vmem:[#allocation16_spill] sm:$0xff] %v7551_v10  ;;  %v5399_v7 = vld [vmem:[%s6511_s26 + $0x84] sm:$0xf] }
  0xe4   : > { %8495 = vst [vmem:[#allocation14_spill] sm:$0xff] %v7496_v22  ;;  %v3733_v63 = vshrl.u32 %v5393_v46, 16  ;;  %v8498_v45 = vcombine.low %v7222_v47, %v7249_v41  ;;  %v7529_v58 = vcombine.low %v3673_v53, %v3683_v33  ;;  %v7535_v42 = vsel %vm6763_vm7, %v5061_v28, %v1290_v61  ;;  %v6317_v61 = vld [vmem:[%s6511_s26 + $0xcc] sm:$0xff]   ;;  %v7563_v31 = vld [vmem:[%s6511_s26 + $0x88] sm:$0xf] }
  0xe5   : > { %v7538_v30 = vcombine.low %v3697_v34, %v3707_v25  ;;  %v7542_v47 = vsel %vm6763_vm7, %v1292_v8, %v1293_v26  ;;  %v7544_v41 = vrot.slane %v3728_v49, 5  ;;  %v3742_v6 = vshll.u32 %v7521_v51, 16  ;;  %8500 = vst [vmem:[#allocation17_spill] sm:$0xff] %v7563_v31  ;;  %v5402_v62 = vld [vmem:[%s6511_s26 + $0x90] sm:$0xf] }
  0xe6   : > { %v7569_v28 = vrot.slane %v1297_v50, 4  ;;  %v7571_v33 = vrot.slane %v3733_v63, 4  ;;  %v3746_v8 = vshrl.u32 %v7521_v51, 16  ;;  %v3757_v26 = vshrl.u32 %v5396_v18, 16  ;;  %v7578_v25 = vld [vmem:[%s6511_s26 + $0x94] sm:$0xf] }
  0xe7   : > { %5910 = vmatmul.mubr.msk.bf16.gmra.mrb[24].mxu0 %vm633_vm3, %v6315_v37  ;;  %v7515_v37 = vcombine.low %v3649_v43, %v3659_v48  ;;  %v7559_v43 = vsel %vm6763_vm7, %v5062_v27, %v1297_v50  ;;  %v3736_v48 = vshll.u32 %v5393_v46, 16  ;;  %v3760_v49 = vshll.u32 %v5396_v18, 16  ;;  %8501 = vst [vmem:[#allocation18_spill] sm:$0xff] %v7578_v25  ;;  %v7616_v2 = vld [vmem:[%s6511_s26 + $0x8c] sm:$0x1] }
  0xe8   : > { %5758 = vmatmul.mubr.msk.bf16.gmra.mrb[8].mxu1 %vm633_vm3, %v8496_v3  ;;  %5913 = vmatprep.mubr.msk.bf16.mxu0 %vm633_vm3, %v6316_v5  ;;  %v7555_v5 = vrot.slane %v3725_v4, 4  ;;  %v3766_v46 = vshll.u32 %v7551_v10, 16  ;;  %v3770_v34 = vshrl.u32 %v7551_v10, 16  ;;  %v3781_v4 = vshrl.u32 %v5399_v7, 16 }
  0xe9   : > { %5761 = vmatprep.mubr.msk.bf16.mxu1 %vm633_vm3, %v8498_v45  ;;  %v3784_v27 = vshll.u32 %v5399_v7, 16  ;;  %v3790_v3 = vshll.u32 %v7563_v31, 16  ;;  %v3794_v50 = vshrl.u32 %v7563_v31, 16  ;;  %v7588_v45 = vld [vmem:[%s6511_s26 + $0x74] sm:$0x1]  ;;  %v3738_v18 = vrot.slane %v3736_v48, 5 }
  0xea   : > { %v3805_v52 = vshrl.u32 %v5402_v62, 16  ;;  %v3808_v53 = vshll.u32 %v5402_v62, 16  ;;  %v8502_v7 = vcombine.low %v7233_v60, %v7258_v44  ;;  %v3748_v59 = vrot.slane %v3746_v8, 4  ;;  %v5405_v48 = vld [vmem:[%s6511_s26 + $0x9c] sm:$0xf] }
  0xeb   : > { %v3814_v63 = vshll.u32 %v7578_v25, 16  ;;  %v3818_v23 = vshrl.u32 %v7578_v25, 16  ;;  %v8503_v62 = vcombine.low %v7273_v17, %v7277_v57  ;;  %v7606_v44 = vld [vmem:[%s6511_s26 + $0x80] sm:$0x1]  ;;  %v3759_v60 = vrot.slane %v3757_v26, 4 }
  0xec   : > { %8504 = vst [vmem:[#allocation19_spill] sm:$0xff] %v7606_v44  ;;  %v3783_v31 = vrot.slane %v3781_v4, 4  ;;  %v3786_v8 = vrot.slane %v3784_v27, 5  ;;  %v7610_v10 = vrot.slane %v3790_v3, 5  ;;  %v3796_v51 = vrot.slane %v3794_v50, 4 }
  0xed   : > { %v7613_v25 = vld [vmem:[%s6511_s26 + $0xa0] sm:$0xf]  ;;  %v3807_v17 = vrot.slane %v3805_v52, 4  ;;  %v3810_v57 = vrot.slane %v3808_v53, 5  ;;  %v3832_v9 = vshll.u32 %v5405_v48, 16  ;;  %v3739_v26 = vor.u32 %v3738_v18, %v7571_v33 }
  0xee   : > { %v3776_v27 = vshll.u32 %v7606_v44, 16  ;;  %v7625_v3 = vld [vmem:[%s6511_s26 + $0x98] sm:$0x1]  ;;  %v3838_v50 = vshll.u32 %v7613_v25, 16  ;;  %v3842_v52 = vshrl.u32 %v7613_v25, 16  ;;  %v3787_v22 = vor.u32 %v3786_v8, %v3783_v31 }
  0xef   : > { %5914 = vmatmul.mubr.msk.bf16.gmra.mrb[28].mxu0 %vm633_vm3, %v6317_v61  ;;  %v7596_v61 = vrot.slane %v3742_v6, 5  ;;  %v3772_v6 = vrot.slane %v3770_v34, 4  ;;  %v3820_v34 = vrot.slane %v3818_v23, 4  ;;  %v3800_v33 = vshll.u32 %v7616_v2, 16 }
  0xf0   : > { %5762 = vmatmul.mubr.msk.bf16.gmra.mrb[12].mxu1 %vm633_vm3, %v8502_v7  ;;  %5919 = vmatprep.mubr.msk.bf16.mxu0 %vm633_vm3, %v7338_v20  ;;  %v3762_v7 = vrot.slane %v3760_v49, 5  ;;  %v7608_v20 = vrot.slane %v3766_v46, 5  ;;  %v3752_v49 = vshll.u32 %v7588_v45, 16  ;;  %v7620_v46 = vrot.slane %v3814_v63, 5 }
  0xf1   : > { %5765 = vmatprep.mubr.msk.bf16.mxu1 %vm633_vm3, %v8503_v62  ;;  %v3829_v62 = vshrl.u32 %v5405_v48, 16  ;;  %v3749_v4 = vor.u32 %v3748_v59, %v7596_v61  ;;  %v3797_v23 = vor.u32 %v3796_v51, %v7610_v10  ;;  %v3811_v59 = vor.u32 %v3810_v57, %v3807_v17  ;;  %v7658_v57 = vld [vmem:[%s6511_s26 + $0xa4] sm:$0x1] }
  0xf2   : > { %v3763_v53 = vor.u32 %v3762_v7, %v3759_v60  ;;  %v3773_v48 = vor.u32 %v3772_v6, %v7608_v20  ;;  %v3834_v18 = vrot.slane %v3832_v9, 5  ;;  %v8505_v44 = vcombine.low %v7285_v11, %v7289_v40 }
  0xf3   : > { %v3831_v63 = vrot.slane %v3829_v62, 4  ;;  %v8506_v31 = vrot.slane %v7547_v54, 5  ;;  %v3754_v51 = vrot.slane %v3752_v49, 5  ;;  %v3821_v60 = vor.u32 %v3820_v34, %v7620_v46  ;;  %v7661_v34 = vld [vmem:[%s6511_s26 + $0xac] sm:$0xf] }
  0xf4   : > { %v3824_v9 = vshll.u32 %v7625_v3, 16  ;;  %v8507_v11 = vcombine.low %v7357_v39, %v7361_v55  ;;  %v3740_v40 = vrot.slane %v3739_v26, 4  ;;  %v7654_v54 = vrot.slane %v3838_v50, 5 }
  0xf5   : > { %v3764_v7 = vrot.slane %v3763_v53, 4  ;;  %v3774_v6 = vrot.slane %v3773_v48, 4  ;;  %v3778_v8 = vrot.slane %v3776_v27, 5  ;;  %v3802_v17 = vrot.slane %v3800_v33, 5  ;;  %v7671_v48 = vld [vmem:[%s6511_s26 + $0xb0] sm:$0x1] }
  0xf6   : > { %v3788_v39 = vrot.slane %v3787_v22, 4  ;;  %v3798_v55 = vrot.slane %v3797_v23, 4  ;;  %v3812_v62 = vrot.slane %v3811_v59, 4  ;;  %v3835_v49 = vor.u32 %v3834_v18, %v3831_v63 }
  0xf7   : > { %5920 = vmatmul.mubr.msk.bf16.vlgmr.msra.gmra.mrb[0].mxu0 %vm633_vm3, %v7401_v16  ;;  %v7644_v16 = vsel %vm6763_vm7, %v7569_v28, %v8506_v31  ;;  %v3844_v28 = vrot.slane %v3842_v52, 4  ;;  %v3826_v26 = vrot.slane %v3824_v9, 5  ;;  %v3745_v52 = vsel %vm6537_vm4, %v3740_v40, %v7596_v61 }
  0xf8   : > { %5766 = vmatmul.mubr.msk.bf16.gmra.mrb[16].mxu1 %vm633_vm3, %v8505_v44  ;;  %5952 = vmatpush3.bf16.msra.mxu0 %v7342_v14  ;;  %v3750_v14 = vrot.slane %v3749_v4, 4  ;;  %v5408_v44 = vld [vmem:[%s6511_s26 + $0xa8] sm:$0xf]  ;;  %v3848_v22 = vshll.u32 %v7658_v57, 16  ;;  %v3769_v33 = vsel %vm6537_vm4, %v3764_v7, %v7608_v20  ;;  %v3779_v23 = vsel %vm6537_vm4, %v3774_v6, %v3778_v8 }
  0xf9   : > { %5769 = vmatprep.mubr.msk.bf16.mxu1 %vm633_vm3, %v8507_v11  ;;  %5923 = vmatprep.mubr.msk.bf16.mxu0 %vm633_vm3, %v7412_v29  ;;  %v3822_v29 = vrot.slane %v3821_v60, 4  ;;  %v3853_v4 = vshrl.u32 %v5408_v44, 16  ;;  %v3856_v50 = vshll.u32 %v5408_v44, 16  ;;  %v3845_v53 = vor.u32 %v3844_v28, %v7654_v54  ;;  %v5457_v11 = vld [vmem:[%s6511_s26 + $0x48] sm:$0xe] }
  0xfa   : > { %v3755_v27 = vsel %vm6537_vm4, %v3750_v14, %v3754_v51  ;;  %v3862_v59 = vshll.u32 %v7661_v34, 16  ;;  %v3866_v61 = vshrl.u32 %v7661_v34, 16  ;;  %v3793_v63 = vsel %vm6537_vm4, %v3788_v39, %v7610_v10  ;;  %v7736_v39 = vld [vmem:[%s6511_s26 + $0xb8] sm:$0xf] }
  0xfb   : > { %v3803_v18 = vsel %vm6537_vm4, %v3798_v55, %v3802_v17  ;;  %v3817_v20 = vsel %vm6537_vm4, %v3812_v62, %v7620_v46  ;;  %v3836_v31 = vrot.slane %v3835_v49, 4  ;;  %v8508_v51 = vcombine.low %v7374_v12, %v7389_v35 }
  0xfc   : > { %v3855_v10 = vrot.slane %v3853_v4, 4  ;;  %v3858_v60 = vrot.slane %v3856_v50, 5  ;;  %v3872_v9 = vshll.u32 %v7671_v48, 16  ;;  %v8509_v46 = vcombine.low %v7459_v21, %v7484_v56  ;;  %v5411_v21 = vld [vmem:[%s6511_s26 + $0xb4] sm:$0xf] }
  0xfd   : > { %v5078_v12 = vcombine.low %v7535_v42, %v7542_v47  ;;  %v8510_v35 = vsel %vm6537_vm4, %v7555_v5, %v7544_v41  ;;  %v3846_v14 = vrot.slane %v3845_v53, 4  ;;  %v3850_v28 = vrot.slane %v3848_v22, 5  ;;  %v5459_v4 = vld [vmem:[%s6511_s26 + $0x60] sm:$0xe]  ;;  %v5460_v53 = vld [vmem:[%s6511_s26 + $0x6c] sm:$0xe] }
  0xfe   : > { %v5079_v56 = vcombine.low %v7559_v43, %v7644_v16  ;;  %v7719_v44 = vcombine.low %v3745_v52, %v3755_v27  ;;  %v7721_v42 = vrot.slane %v3862_v59, 5  ;;  %v3868_v47 = vrot.slane %v3866_v61, 4  ;;  %v8519_v16 = vld [vmem:[#allocation7_spill] sm:$0xff] }
  0xff   : > { %5924 = vmatmul.mubr.msk.bf16.gmra.mrb[4].mxu0 %vm633_vm3, %v7515_v37  ;;  %v3827_v37 = vsel %vm6537_vm4, %v3822_v29, %v3826_v26  ;;  %v7723_v41 = vcombine.low %v3769_v33, %v3779_v23  ;;  %v7725_v5 = vcombine.low %v3793_v63, %v3803_v18  ;;  %v3841_v6 = vsel %vm6537_vm4, %v3836_v31, %v7654_v54  ;;  %v8512_v23 = vld [vmem:[#allocation14_spill] sm:$0xff]  ;;  %v5414_v63 = vld [vmem:[%s6511_s26 + $0xc0] sm:$0xf] }
 0x100   : > { %5770 = vmatmul.mubr.msk.bf16.gmra.mrb[20].mxu1 %vm633_vm3, %v8508_v51  ;;  %5927 = vmatprep.mubr.msk.bf16.mxu0 %vm633_vm3, %v7529_v58  ;;  %v8511_v58 = vsel %vm6537_vm4, %v7517_v19, %v7472_v1  ;;  %v7727_v7 = vcombine.low %v3817_v20, %v3827_v37  ;;  %v5473_v1 = vrot.slane %v5457_v11, 9  ;;  %v5458_v19 = vld [vmem:[%s6511_s26 + $0x54] sm:$0xe]  ;;  %v3859_v8 = vor.u32 %v3858_v60, %v3855_v10  ;;  %v8514_v18 = vld [vmem:[#allocation12_spill] sm:$0xff]  ;;  %v8515_v31 = vld [vmem:[#allocation13_spill] sm:$0xff] }
 0x101   : > { %5773 = vmatprep.mubr.msk.bf16.mxu1 %vm633_vm3, %v8509_v46  ;;  %v5427_v40 = vcombine.low %v8511_v58, %v8510_v35  ;;  %v7733_v17 = vrot.slane %v3872_v9, 5  ;;  %v3877_v55 = vshrl.u32 %v5411_v21, 16  ;;  %v3851_v62 = vsel %vm6537_vm4, %v3846_v14, %v3850_v28  ;;  %v8516_v9 = vld [vmem:[#allocation15_spill] sm:$0xff]  ;;  %v7785_v35 = vld [vmem:[%s6511_s26 + $0xbc] sm:$0x1] }
 0x102   : > { %v3880_v49 = vshll.u32 %v5411_v21, 16  ;;  %v4336_v29 = vrot.slane %v7367_v0, 5  ;;  %v4339_v26 = vrot.slane %v7421_v38, 5  ;;  %v3869_v50 = vor.u32 %v3868_v47, %v7721_v42  ;;  %v7788_v58 = vld [vmem:[%s6511_s26 + $0xc4] sm:$0xf] }
 0x103   : > { %v5474_v52 = vrot.slane %v5458_v19, 9  ;;  %v4343_v54 = vrot.slane %v7378_v24, 5  ;;  %v4346_v27 = vrot.slane %v7430_v15, 5  ;;  %v3886_v22 = vshll.u32 %v7736_v39, 16  ;;  %v5461_v19 = vld [vmem:[%s6511_s26 + $0x78] sm:$0xe] }
 0x104   : > { %v3890_v33 = vshrl.u32 %v7736_v39, 16  ;;  %v7753_v0 = vsel %vm6763_vm7, %v5473_v1, %v4336_v29  ;;  %v4338_v38 = vrot.slane %v4336_v29, 4  ;;  %v8513_v59 = vcombine.low %v7492_v36, %v8512_v23  ;;  %v8517_v23 = vld [vmem:[#allocation16_spill] sm:$0xff] }
 0x105   : > { %v7760_v24 = vcombine.low %v3841_v6, %v3851_v62  ;;  %v7764_v15 = vsel %vm6763_vm7, %v5474_v52, %v4343_v54  ;;  %v5475_v61 = vrot.slane %v5459_v4, 9  ;;  %v4350_v20 = vrot.slane %v8514_v18, 5  ;;  %v6318_v6 = vld [vmem:[%s6511_s26 + $0xc] sm:$0xff]  }
 0x106   : > { %v7770_v36 = vsel %vm6763_vm7, %v4338_v38, %v4339_v26  ;;  %v4353_v51 = vrot.slane %v8515_v31, 5  ;;  %v5476_v37 = vrot.slane %v5460_v53, 9  ;;  %v4357_v11 = vrot.slane %v8516_v9, 5 }
 0x107   : > { %5928 = vmatmul.mubr.msk.bf16.gmra.mrb[8].mxu0 %vm633_vm3, %v7538_v30  ;;  %v4345_v30 = vrot.slane %v4343_v54, 4  ;;  %v5490_v10 = vcombine.low %v7753_v0, %v7770_v36  ;;  %v4360_v46 = vrot.slane %v7588_v45, 5  ;;  %v7794_v14 = vsel %vm6763_vm7, %v5475_v61, %v4350_v20 }
 0x108   : > { %5774 = vmatmul.mubr.msk.bf16.gmra.mrb[24].mxu1 %vm633_vm3, %v8513_v59  ;;  %5931 = vmatprep.mubr.msk.bf16.mxu0 %vm633_vm3, %v5427_v40  ;;  %v4352_v28 = vrot.slane %v4350_v20, 4  ;;  %v7796_v21 = vrot.slane %v3877_v55, 4  ;;  %v3901_v47 = vshrl.u32 %v5414_v63, 16  ;;  %v7800_v45 = vsel %vm6763_vm7, %v5476_v37, %v4357_v11  ;;  %v5188_v55 = vld [vmem:[%s6511_s26 + $0x78] sm:$0xf] }
 0x109   : > { %5777 = vmatprep.mubr.msk.bf16.mxu1 %vm633_vm3, %v5078_v12  ;;  %v7778_v60 = vsel %vm6763_vm7, %v4345_v30, %v4346_v27  ;;  %v7782_v12 = vrot.slane %v3859_v8, 4  ;;  %v4359_v1 = vrot.slane %v4357_v11, 4  ;;  %v7804_v8 = vrot.slane %v3869_v50, 4  ;;  %v8518_v59 = vld [vmem:[#allocation19_spill] sm:$0xff] }
 0x10a   : > { %v5491_v40 = vcombine.low %v7764_v15, %v7778_v60  ;;  %v7806_v62 = vrot.slane %v3880_v49, 5  ;;  %v3904_v29 = vshll.u32 %v5414_v63, 16  ;;  %v7810_v26 = vsel %vm6763_vm7, %v4352_v28, %v4353_v51  ;;  %v8521_v28 = vld [vmem:[#allocation17_spill] sm:$0xff] }
 0x10b   : > { %v7813_v4 = vrot.slane %v3886_v22, 5  ;;  %v7815_v52 = vrot.slane %v3890_v33, 4  ;;  %v5492_v54 = vcombine.low %v7794_v14, %v7810_v26  ;;  %v7821_v27 = vsel %vm6763_vm7, %v4359_v1, %v4360_v46  ;;  %v5462_v33 = vld [vmem:[%s6511_s26 + $0x84] sm:$0xe]  ;;  %v6319_v1 = vld [vmem:[%s6511_s26 + $0x18] sm:$0xff]  }
 0x10c   : > { %v3896_v49 = vshll.u32 %v7785_v35, 16  ;;  %v3910_v50 = vshll.u32 %v7788_v58, 16  ;;  %v5493_v53 = vcombine.low %v7800_v45, %v7821_v27  ;;  %v5477_v22 = vrot.slane %v5461_v19, 9  ;;  %v6381_v60 = vld [vmem:[%s6511_s26 + $0xa0] sm:$0xf] }
 0x10d   : > { %v3903_v38 = vrot.slane %v3901_v47, 4  ;;  %v4367_v30 = vrot.slane %v8518_v59, 5  ;;  %v2223_v61 = vshrl.u32 %v5188_v55, 16  ;;  %v3906_v63 = vrot.slane %v3904_v29, 5  ;;  %v5417_v29 = vld [vmem:[%s6511_s26 + $0xcc] sm:$0xf] }
 0x10e   : > { %v3914_v18 = vshrl.u32 %v7788_v58, 16  ;;  %v2226_v43 = vshll.u32 %v5188_v55, 16  ;;  %v5478_v37 = vrot.slane %v5462_v33, 9  ;;  %v3865_v9 = vsel %vm6537_vm4, %v7782_v12, %v7721_v42  ;;  %v7864_v55 = vld [vmem:[%s6511_s26 + $0xd0] sm:$0xf] }
 0x10f   : > { %5932 = vmatmul.mubr.msk.bf16.gmra.mrb[12].mxu0 %vm633_vm3, %v7719_v44  ;;  %v4364_v44 = vrot.slane %v8517_v23, 5  ;;  %v2225_v51 = vrot.slane %v2223_v61, 4  ;;  %v3883_v11 = vor.u32 %v7806_v62, %v7796_v21  ;;  %v4371_v47 = vrot.slane %v8521_v28, 5  ;;  %v6320_v21 = vld [vmem:[%s6511_s26 + $0x24] sm:$0xff]   ;;  %v6385_v27 = vld [vmem:[%s6511_s26 + $0xac] sm:$0xf] }
 0x110   : > { %5778 = vmatmul.mubr.msk.bf16.gmra.mrb[28].mxu1 %vm633_vm3, %v5079_v56  ;;  %5935 = vmatprep.mubr.msk.bf16.mxu0 %vm633_vm3, %v7723_v41  ;;  %v8520_v56 = vld [vmem:[#allocation8_spill] sm:$0xff]  ;;  %v2228_v46 = vrot.slane %v2226_v43, 5  ;;  %v3875_v19 = vsel %vm6537_vm4, %v7804_v8, %v7733_v17  ;;  %v4374_v12 = vrot.slane %v7616_v2, 5  ;;  %v7872_v62 = vrot.slane %v3910_v50, 5  ;;  %v5463_v8 = vld [vmem:[%s6511_s26 + $0x90] sm:$0xe] }
 0x111   : > { %5783 = vmatprep.mubr.msk.bf16.mxu1 %vm633_vm3, %v6318_v6  ;;  %v2245_v41 = vsel %vm6537_vm4, %v8520_v56, %v8519_v16  ;;  %v7846_v20 = vsel %vm6763_vm7, %v5477_v22, %v4364_v44  ;;  %v4366_v31 = vrot.slane %v4364_v44, 4  ;;  %v3893_v6 = vor.u32 %v7815_v52, %v7813_v4  ;;  %v7878_v52 = vld [vmem:[%s6511_s26 + $0xc8] sm:$0x1] }
 0x112   : > { %v3916_v22 = vrot.slane %v3914_v18, 4  ;;  %v2229_v17 = vor.u32 %v2228_v46, %v2225_v51  ;;  %v3898_v23 = vrot.slane %v3896_v49, 5  ;;  %v3907_v44 = vor.u32 %v3906_v63, %v3903_v38  ;;  %v8523_v16 = vld [vmem:[#allocation5_spill] sm:$0xff]  ;;  %v8524_v51 = vld [vmem:[#allocation6_spill] sm:$0xff] }
 0x113   : > { %v7868_v42 = vsel %vm6763_vm7, %v4366_v31, %v4367_v30  ;;  %v7882_v59 = vsel %vm6763_vm7, %v5478_v37, %v4371_v47  ;;  %v4373_v30 = vrot.slane %v4371_v47, 4  ;;  %v3925_v2 = vshrl.u32 %v5417_v29, 16 }
 0x114   : > { %v5494_v33 = vcombine.low %v7846_v20, %v7868_v42  ;;  %v3928_v50 = vshll.u32 %v5417_v29, 16  ;;  %v3934_v61 = vshll.u32 %v7864_v55, 16  ;;  %v2230_v18 = vrot.slane %v2229_v17, 4  ;;  %v6321_v29 = vld [vmem:[%s6511_s26 + $0x30] sm:$0xff]  }
 0x115   : > { %v3938_v49 = vshrl.u32 %v7864_v55, 16  ;;  %v7893_v38 = vsel %vm6763_vm7, %v4373_v30, %v4374_v12  ;;  %v5479_v63 = vrot.slane %v5463_v8, 9  ;;  %v3917_v56 = vor.u32 %v3916_v22, %v7872_v62 }
 0x116   : > { %v3920_v31 = vshll.u32 %v7878_v52, 16  ;;  %v5495_v37 = vcombine.low %v7882_v59, %v7893_v38  ;;  %v5433_v46 = vcombine.low %v3865_v9, %v3875_v19  ;;  %v3884_v28 = vrot.slane %v3883_v11, 4  ;;  %v5464_v11 = vld [vmem:[%s6511_s26 + $0x9c] sm:$0xe] }
 0x117   : > { %5936 = vmatmul.mubr.msk.bf16.gmra.mrb[16].mxu0 %vm633_vm3, %v7725_v5  ;;  %v8522_v5 = vld [vmem:[#allocation18_spill] sm:$0xff]  ;;  %v3894_v47 = vrot.slane %v3893_v6, 4  ;;  %v3908_v12 = vrot.slane %v3907_v44, 4  ;;  %v4381_v8 = vrot.slane %v7625_v3, 5  ;;  %v3927_v30 = vrot.slane %v3925_v2, 4  ;;  %v6322_v19 = vld [vmem:[%s6511_s26 + $0x3c] sm:$0xff]  }
 0x118   : > { %5784 = vmatmul.mubr.msk.bf16.vlgmr.msra.gmra.mrb[0].mxu1 %vm633_vm3, %v6319_v1  ;;  %5939 = vmatprep.mubr.msk.bf16.mxu0 %vm633_vm3, %v7727_v7  ;;  %v4378_v43 = vrot.slane %v8522_v5, 5  ;;  %v2235_v7 = vsel %vm6537_vm4, %v2230_v18, %v8524_v51  ;;  %v3930_v18 = vrot.slane %v3928_v50, 5  ;;  %v7916_v5 = vrot.slane %v3934_v61, 5 }
 0x119   : > { %5986 = vmatpush3.bf16.msra.mxu1 %v8523_v16  ;;  %5787 = vmatprep.mubr.msk.bf16.mxu1 %vm633_vm3, %v6320_v21  ;;  %v7905_v1 = vcombine.low %v2235_v7, %v2245_v41  ;;  %v7909_v21 = vld [vmem:[%s6511_s26 + $0xd4] sm:$0x1]  ;;  %v3940_v9 = vrot.slane %v3938_v49, 4  ;;  %v3918_v41 = vrot.slane %v3917_v56, 4  ;;  %v3922_v6 = vrot.slane %v3920_v31, 5 }
 0x11a   : > { %v7913_v22 = vsel %vm6763_vm7, %v5479_v63, %v4378_v43  ;;  %v4380_v17 = vrot.slane %v4378_v43, 4  ;;  %v3889_v63 = vsel %vm6537_vm4, %v3884_v28, %v7813_v4  ;;  %v3899_v2 = vsel %vm6537_vm4, %v3894_v47, %v3898_v23  ;;  %v6372_v16 = vld [vmem:[%s6511_s26 + $0x1c] sm:$0xf]  ;;  %v5465_v28 = vld [vmem:[%s6511_s26 + $0xa8] sm:$0xe] }
 0x11b   : > { %v3944_v50 = vshll.u32 %v7909_v21, 16  ;;  %v5480_v61 = vrot.slane %v5464_v11, 9  ;;  %v4385_v49 = vrot.slane %v7613_v25, 5  ;;  %v3913_v4 = vsel %vm6537_vm4, %v3908_v12, %v7872_v62  ;;  %v5453_v62 = vld [vmem:[%s6511_s26 + $0x18] sm:$0xe]  ;;  %v6323_v47 = vld [vmem:[%s6511_s26 + $0x48] sm:$0xff]  }
 0x11c   : > { %v7922_v44 = vsel %vm6763_vm7, %v4380_v17, %v4381_v8  ;;  %v3941_v43 = vor.u32 %v3940_v9, %v7916_v5  ;;  %v4388_v23 = vrot.slane %v7658_v57, 5  ;;  %v3923_v25 = vsel %vm6537_vm4, %v3918_v41, %v3922_v6  ;;  %v6373_v11 = vld [vmem:[%s6511_s26 + $0x20] sm:$0x1] }
 0x11d   : > { %v5496_v3 = vcombine.low %v7913_v22, %v7922_v44  ;;  %v4308_v56 = vrot.slane %v6372_v16, 5  ;;  %v7948_v31 = vsel %vm6763_vm7, %v5480_v61, %v4385_v49  ;;  %v4387_v51 = vrot.slane %v4385_v49, 4  ;;  %v5466_v49 = vld [vmem:[%s6511_s26 + $0xb4] sm:$0xe] }
 0x11e   : > { %v5434_v7 = vcombine.low %v3889_v63, %v3899_v2  ;;  %v3942_v17 = vrot.slane %v3941_v43, 4  ;;  %v5481_v41 = vrot.slane %v5465_v28, 9  ;;  %v4392_v6 = vrot.slane %v7661_v34, 5  ;;  %v5454_v2 = vld [vmem:[%s6511_s26 + $0x24] sm:$0xe] }
 0x11f   : > { %5940 = vmatmul.mubr.msk.bf16.gmra.mrb[20].mxu0 %vm633_vm3, %v7760_v24  ;;  %v3931_v24 = vor.u32 %v3930_v18, %v3927_v30  ;;  %v7953_v57 = vsel %vm6763_vm7, %v4387_v51, %v4388_v23  ;;  %v6324_v30 = vld [vmem:[%s6511_s26 + $0x54] sm:$0xff]   ;;  %v5469_v18 = vrot.slane %v5453_v62, 9  ;;  %v4310_v9 = vrot.slane %v4308_v56, 4  ;;  %v6376_v28 = vld [vmem:[%s6511_s26 + $0x2c] sm:$0x1] }
 0x120   : > { %5788 = vmatmul.mubr.msk.bf16.gmra.mrb[4].mxu1 %vm633_vm3, %v6321_v29  ;;  %5943 = vmatprep.mubr.msk.bf16.mxu0 %vm633_vm3, %v5433_v46  ;;  %v3946_v46 = vrot.slane %v3944_v50, 5  ;;  %v5435_v29 = vcombine.low %v3913_v4, %v3923_v25  ;;  %v5497_v8 = vcombine.low %v7948_v31, %v7953_v57  ;;  %v4395_v63 = vrot.slane %v7671_v48, 5  ;;  %v6374_v50 = vld [vmem:[%s6511_s26 + $0x28] sm:$0xf]  ;;  %v5455_v25 = vld [vmem:[%s6511_s26 + $0x30] sm:$0xe] }
 0x121   : > { %5791 = vmatprep.mubr.msk.bf16.mxu1 %vm633_vm3, %v6322_v19  ;;  %v3932_v12 = vrot.slane %v3931_v24, 4  ;;  %v4311_v19 = vrot.slane %v6373_v11, 5  ;;  %v4315_v61 = vrot.slane %v6374_v50, 5  ;;  %v7976_v48 = vsel %vm6763_vm7, %v5481_v41, %v4392_v6  ;;  %v6326_v11 = vld [vmem:[%s6511_s26 + $0x6c] sm:$0xff]   ;;  %v8525_v41 = vld [vmem:[#allocation9_spill] sm:$0xff] }
 0x122   : > { %v3947_v34 = vsel %vm6537_vm4, %v3942_v17, %v3946_v46  ;;  %v4394_v24 = vrot.slane %v4392_v6, 4  ;;  %v4309_v43 = vsel %vm6763_vm7, %v5469_v18, %v4308_v56  ;;  %v5470_v51 = vrot.slane %v5454_v2, 9  ;;  %v5467_v50 = vld [vmem:[%s6511_s26 + $0xc0] sm:$0xe]  ;;  %v6390_v31 = vld [vmem:[%s6511_s26 + $0xc8] sm:$0x1] }
 0x123   : > { %v3937_v4 = vsel %vm6537_vm4, %v3932_v12, %v7916_v5  ;;  %v4312_v23 = vsel %vm6763_vm7, %v4310_v9, %v4311_v19  ;;  %v6375_v5 = vld [vmem:[%s6511_s26 + $0x34] sm:$0xf]  ;;  %v6325_v12 = vld [vmem:[%s6511_s26 + $0x60] sm:$0xff]   ;;  %v5471_v18 = vrot.slane %v5455_v25, 9  ;;  %v4402_v9 = vrot.slane %v7785_v35, 5 }
 0x124   : > { %v4322_v16 = vrot.slane %v6375_v5, 5  ;;  %v7987_v62 = vsel %vm6763_vm7, %v4394_v24, %v4395_v63  ;;  %v5436_v46 = vcombine.low %v3937_v4, %v3947_v34  ;;  %v5486_v17 = vcombine.low %v4309_v43, %v4312_v23  ;;  %v5456_v24 = vld [vmem:[%s6511_s26 + $0x3c] sm:$0xe] }
 0x125   : > { %v5498_v56 = vcombine.low %v7976_v48, %v7987_v62  ;;  %v4325_v6 = vrot.slane %v8525_v41, 5  ;;  %v4316_v35 = vsel %vm6763_vm7, %v5470_v51, %v4315_v61  ;;  %v5483_v5 = vrot.slane %v5467_v50, 9 }
 0x126   : > { %v4324_v19 = vrot.slane %v4322_v16, 4  ;;  %v4323_v23 = vsel %vm6763_vm7, %v5471_v18, %v4322_v16  ;;  %v4409_v51 = vrot.slane %v7878_v52, 5  ;;  %v2386_v57 = vshll.u32 %v6390_v31, 16 }
 0x127   : > { %5944 = vmatmul.mubr.msk.bf16.gmra.mrb[24].mxu0 %vm633_vm3, %v5434_v7  ;;  %v5482_v7 = vrot.slane %v5466_v49, 9 }
 0x128   : > { %5792 = vmatmul.mubr.msk.bf16.gmra.mrb[8].mxu1 %vm633_vm3, %v6323_v47  ;;  %5947 = vmatprep.mubr.msk.bf16.mxu0 %vm633_vm3, %v5435_v29  ;;  %v4318_v47 = vrot.slane %v6376_v28, 5  ;;  %v4399_v29 = vrot.slane %v7736_v39, 5  ;;  %v8526_v39 = vld [vmem:[#allocation10_spill] sm:$0xff]  ;;  %v4326_v25 = vsel %vm6763_vm7, %v4324_v19, %v4325_v6  ;;  %v5472_v28 = vrot.slane %v5456_v24, 9 }
 0x129   : > { %5795 = vmatprep.mubr.msk.bf16.mxu1 %vm633_vm3, %v6324_v30  ;;  %v4317_v30 = vrot.slane %v4315_v61, 4  ;;  %v4329_v49 = vrot.slane %v8526_v39, 5  ;;  %v4406_v61 = vrot.slane %v7788_v58, 5  ;;  %v6377_v39 = vld [vmem:[%s6511_s26 + $0x70] sm:$0xf]  ;;  %v4413_v24 = vrot.slane %v7864_v55, 5 }
 0x12a   : > { %v7999_v63 = vsel %vm6763_vm7, %v5482_v7, %v4399_v29  ;;  %v4401_v2 = vrot.slane %v4399_v29, 4  ;;  %v5185_v7 = vld [vmem:[%s6511_s26 + $0x6c] sm:$0xf]  ;;  %v8527_v29 = vld [vmem:[#allocation11_spill] sm:$0xff] }
 0x12b   : > { %v4319_v34 = vsel %vm6763_vm7, %v4317_v30, %v4318_v47  ;;  %v4331_v47 = vrot.slane %v4329_v49, 4  ;;  %v6327_v30 = vld [vmem:[%s6511_s26 + $0x78] sm:$0xff]   ;;  %v8030_v16 = vsel %vm6763_vm7, %v5483_v5, %v4406_v61  ;;  %v4408_v18 = vrot.slane %v4406_v61, 4 }
 0x12c   : > { %v8006_v4 = vsel %vm6763_vm7, %v4401_v2, %v4402_v9  ;;  %v5488_v9 = vcombine.low %v4323_v23, %v4326_v25  ;;  %v2199_v19 = vshrl.u32 %v5185_v7, 16  ;;  %v2202_v41 = vshll.u32 %v5185_v7, 16 }
 0x12d   : > { %v5499_v43 = vcombine.low %v7999_v63, %v8006_v4  ;;  %v8035_v58 = vsel %vm6763_vm7, %v4408_v18, %v4409_v51  ;;  %v4330_v6 = vsel %vm6763_vm7, %v5472_v28, %v4329_v49  ;;  %v4416_v49 = vrot.slane %v7909_v21, 5  ;;  %v6329_v51 = vld [vmem:[%s6511_s26 + $0x90] sm:$0xff]   ;;  %v6330_v21 = vld [vmem:[%s6511_s26 + $0x9c] sm:$0xff]  }
 0x12e   : > { %v5500_v50 = vcombine.low %v8030_v16, %v8035_v58  ;;  %v2201_v23 = vrot.slane %v2199_v19, 4  ;;  %v2204_v25 = vrot.slane %v2202_v41, 5  ;;  %v4415_v7 = vrot.slane %v4413_v24, 4 }
 0x12f   : > { %5948 = vmatmul.mubr.msk.bf16.gmra.mrb[28].mxu0 %vm633_vm3, %v5436_v46  ;;  %v5487_v46 = vcombine.low %v4316_v35, %v4319_v34  ;;  %v2208_v35 = vshll.u32 %v6377_v39, 16  ;;  %v2212_v34 = vshrl.u32 %v6377_v39, 16 }
 0x130   : > { %5796 = vmatmul.mubr.msk.bf16.gmra.mrb[12].mxu1 %vm633_vm3, %v6325_v12  ;;  %5953 = vmatprep.mubr.msk.bf16.mxu0 %vm633_vm3, %v5486_v17  ;;  %v4332_v12 = vrot.slane %v8527_v29, 5  ;;  %v5468_v17 = vld [vmem:[%s6511_s26 + $0xcc] sm:$0xe]  ;;  %v8057_v55 = vsel %vm6763_vm7, %v4415_v7, %v4416_v49 }
 0x131   : > { %5799 = vmatprep.mubr.msk.bf16.mxu1 %vm633_vm3, %v6326_v11  ;;  %v6328_v11 = vld [vmem:[%s6511_s26 + $0x84] sm:$0xff]   ;;  %v5484_v52 = vrot.slane %v5468_v17, 9  ;;  %v2214_v28 = vrot.slane %v2212_v34, 4  ;;  %v6378_v17 = vld [vmem:[%s6511_s26 + $0x74] sm:$0x1] }
 0x132   : > { %v4333_v2 = vsel %vm6763_vm7, %v4331_v47, %v4332_v12  ;;  %v5191_v47 = vld [vmem:[%s6511_s26 + $0x84] sm:$0xf]  ;;  %v2205_v12 = vor.u32 %v2204_v25, %v2201_v23  ;;  %v6332_v34 = vld [vmem:[%s6511_s26 + $0xb4] sm:$0xff]  }
 0x133   : > { %v8052_v5 = vsel %vm6763_vm7, %v5484_v52, %v4413_v24  ;;  %v5489_v61 = vcombine.low %v4330_v6, %v4333_v2  ;;  %v2250_v18 = vshll.u32 %v5191_v47, 16  ;;  %v5194_v6 = vld [vmem:[%s6511_s26 + $0x90] sm:$0xf]  ;;  %v6331_v2 = vld [vmem:[%s6511_s26 + $0xa8] sm:$0xff]  }
 0x134   : > { %v5501_v29 = vcombine.low %v8052_v5, %v8057_v55  ;;  %v2206_v52 = vrot.slane %v2205_v12, 4  ;;  %v2271_v23 = vshrl.u32 %v5194_v6, 16  ;;  %v2274_v25 = vshll.u32 %v5194_v6, 16 }
 0x135   : > { %v2304_v12 = vshll.u32 %v6381_v60, 16 }
 0x136   : > { %v2276_v14 = vrot.slane %v2274_v25, 5  ;;  %v6384_v25 = vld [vmem:[%s6511_s26 + $0xa4] sm:$0x1] }
 0x137   : > { %5954 = vmatmul.mubr.msk.bf16.vlgmr.msra.gmra.mrb[0].mxu0 %vm633_vm3, %v5487_v46  ;;  %v2210_v46 = vrot.slane %v2208_v35, 5  ;;  %v5197_v35 = vld [vmem:[%s6511_s26 + $0x9c] sm:$0xf]  ;;  %v8099_v6 = vrot.slane %v2304_v12, 5 }
 0x138   : > { %5800 = vmatmul.mubr.msk.bf16.gmra.mrb[16].mxu1 %vm633_vm3, %v6327_v30  ;;  %5957 = vmatprep.mubr.msk.bf16.mxu0 %vm633_vm3, %v5488_v9  ;;  %v2218_v30 = vshll.u32 %v6378_v17, 16  ;;  %v2247_v9 = vshrl.u32 %v5191_v47, 16  ;;  %v2298_v47 = vshll.u32 %v5197_v35, 16  ;;  %v6382_v17 = vld [vmem:[%s6511_s26 + $0x8c] sm:$0x1] }
 0x139   : > { %5803 = vmatprep.mubr.msk.bf16.mxu1 %vm633_vm3, %v6328_v11  ;;  %v2215_v13 = vor.u32 %v2214_v28, %v2210_v46  ;;  %v6379_v11 = vld [vmem:[%s6511_s26 + $0x88] sm:$0xf]  ;;  %v2211_v7 = vsel %vm6537_vm4, %v2206_v52, %v2210_v46 }
 0x13a   : > { %v2256_v19 = vshll.u32 %v6379_v11, 16  ;;  %v2260_v41 = vshrl.u32 %v6379_v11, 16  ;;  %v2220_v0 = vrot.slane %v2218_v30, 5  ;;  %v2249_v36 = vrot.slane %v2247_v9, 4 }
 0x13b   : > { %v2216_v39 = vrot.slane %v2215_v13, 4  ;;  %v2266_v30 = vshll.u32 %v6382_v17, 16  ;;  %v2273_v9 = vrot.slane %v2271_v23, 4  ;;  %v2300_v11 = vrot.slane %v2298_v47, 5 }
 0x13c   : > { %v8076_v24 = vrot.slane %v2256_v19, 5  ;;  %v2262_v49 = vrot.slane %v2260_v41, 4  ;;  %v6333_v19 = vld [vmem:[%s6511_s26 + $0xc0] sm:$0xff]  }
 0x13d   : > { %v2221_v46 = vsel %vm6537_vm4, %v2216_v39, %v2220_v0  ;;  %v5200_v39 = vld [vmem:[%s6511_s26 + $0xa8] sm:$0xf] }
 0x13e   : > { %v2263_v13 = vor.u32 %v2262_v49, %v8076_v24  ;;  %v5218_v41 = vcombine.low %v2211_v7, %v2221_v46  ;;  %v2314_v7 = vshll.u32 %v6384_v25, 16  ;;  %v2322_v45 = vshll.u32 %v5200_v39, 16 }
 0x13f   : > { %5958 = vmatmul.mubr.msk.bf16.gmra.mrb[4].mxu0 %vm633_vm3, %v5489_v61  ;;  %v6380_v61 = vld [vmem:[%s6511_s26 + $0x94] sm:$0xf] }
 0x140   : > { %5804 = vmatmul.mubr.msk.bf16.gmra.mrb[20].mxu1 %vm633_vm3, %v6329_v51  ;;  %5961 = vmatprep.mubr.msk.bf16.mxu0 %vm633_vm3, %v5490_v10  ;;  %v2252_v10 = vrot.slane %v2250_v18, 5  ;;  %v2280_v51 = vshll.u32 %v6380_v61, 16  ;;  %v2284_v28 = vshrl.u32 %v6380_v61, 16  ;;  %v2264_v0 = vrot.slane %v2263_v13, 4 }
 0x141   : > { %5807 = vmatprep.mubr.msk.bf16.mxu1 %vm633_vm3, %v6330_v21  ;;  %v2295_v21 = vshrl.u32 %v5197_v35, 16  ;;  %v6383_v35 = vld [vmem:[%s6511_s26 + $0x98] sm:$0x1]  ;;  %v2319_v61 = vshrl.u32 %v5200_v39, 16  ;;  %v5206_v39 = vld [vmem:[%s6511_s26 + $0xc0] sm:$0xf] }
 0x142   : > { %v2253_v15 = vor.u32 %v2252_v10, %v2249_v36  ;;  %v8096_v26 = vrot.slane %v2280_v51, 5  ;;  %v2268_v36 = vrot.slane %v2266_v30, 5  ;;  %v2277_v10 = vor.u32 %v2276_v14, %v2273_v9  ;;  %v5203_v51 = vld [vmem:[%s6511_s26 + $0xb4] sm:$0xf] }
 0x143   : > { %v2297_v18 = vrot.slane %v2295_v21, 4  ;;  %v2332_v21 = vshrl.u32 %v6385_v27, 16  ;;  %v2343_v20 = vshrl.u32 %v5203_v51, 16  ;;  %v2346_v42 = vshll.u32 %v5203_v51, 16 }
 0x144   : > { %v2254_v52 = vrot.slane %v2253_v15, 4  ;;  %v2269_v46 = vsel %vm6537_vm4, %v2264_v0, %v2268_v36  ;;  %v2278_v15 = vrot.slane %v2277_v10, 4  ;;  %v2316_v30 = vrot.slane %v2314_v7, 5 }
 0x145   : > { %v2301_v23 = vor.u32 %v2300_v11, %v2297_v18  ;;  %v2321_v9 = vrot.slane %v2319_v61, 4  ;;  %v2334_v11 = vrot.slane %v2332_v21, 4  ;;  %v6389_v61 = vld [vmem:[%s6511_s26 + $0xbc] sm:$0x1] }
 0x146   : > { %v2259_v47 = vsel %vm6537_vm4, %v2254_v52, %v8076_v24  ;;  %v2283_v0 = vsel %vm6537_vm4, %v2278_v15, %v8096_v26  ;;  %v2362_v22 = vshll.u32 %v6389_v61, 16 }
 0x147   : > { %5962 = vmatmul.mubr.msk.bf16.gmra.mrb[8].mxu0 %vm633_vm3, %v5491_v40  ;;  %v2308_v40 = vshrl.u32 %v6381_v60, 16  ;;  %v2302_v17 = vrot.slane %v2301_v23, 4  ;;  %v5220_v24 = vcombine.low %v2259_v47, %v2269_v46 }
 0x148   : > { %5808 = vmatmul.mubr.msk.bf16.gmra.mrb[24].mxu1 %vm633_vm3, %v6331_v2  ;;  %5965 = vmatprep.mubr.msk.bf16.mxu0 %vm633_vm3, %v5492_v54  ;;  %v2286_v54 = vrot.slane %v2284_v28, 4 }
 0x149   : > { %5811 = vmatprep.mubr.msk.bf16.mxu1 %vm633_vm3, %v6332_v34  ;;  %v2310_v2 = vrot.slane %v2308_v40, 4  ;;  %v2290_v34 = vshll.u32 %v6383_v35, 16  ;;  %v2307_v10 = vsel %vm6537_vm4, %v2302_v17, %v8099_v6  ;;  %v2388_v17 = vrot.slane %v2386_v57, 5 }
 0x14a   : > { %v2287_v49 = vor.u32 %v2286_v54, %v8096_v26  ;;  %v2324_v54 = vrot.slane %v2322_v45, 5  ;;  %v6387_v26 = vld [vmem:[%s6511_s26 + $0xb0] sm:$0x1] }
 0x14b   : > { %v2311_v28 = vor.u32 %v2310_v2, %v8099_v6  ;;  %v2292_v60 = vrot.slane %v2290_v34, 5  ;;  %v2338_v35 = vshll.u32 %v6387_v26, 16  ;;  %v2367_v34 = vshrl.u32 %v5206_v39, 16 }
 0x14c   : > { %v2288_v13 = vrot.slane %v2287_v49, 4  ;;  %v2325_v38 = vor.u32 %v2324_v54, %v2321_v9  ;;  %v2370_v6 = vshll.u32 %v5206_v39, 16  ;;  %v6388_v49 = vld [vmem:[%s6511_s26 + $0xc4] sm:$0xf] }
 0x14d   : > { %v2312_v14 = vrot.slane %v2311_v28, 4  ;;  %v2376_v23 = vshll.u32 %v6388_v49, 16  ;;  %v2380_v25 = vshrl.u32 %v6388_v49, 16  ;;  %v2340_v45 = vrot.slane %v2338_v35, 5 }
 0x14e   : > { %v2293_v36 = vsel %vm6537_vm4, %v2288_v13, %v2292_v60  ;;  %v2326_v51 = vrot.slane %v2325_v38, 4  ;;  %v2364_v60 = vrot.slane %v2362_v22, 5 }
 0x14f   : > { %5966 = vmatmul.mubr.msk.bf16.gmra.mrb[12].mxu0 %vm633_vm3, %v5493_v53  ;;  %v2328_v53 = vshll.u32 %v6385_v27, 16  ;;  %v2317_v59 = vsel %vm6537_vm4, %v2312_v14, %v2316_v30  ;;  %v5221_v44 = vcombine.low %v2283_v0, %v2293_v36  ;;  %v2369_v27 = vrot.slane %v2367_v34, 4 }
 0x150   : > { %5812 = vmatmul.mubr.msk.bf16.gmra.mrb[28].mxu1 %vm633_vm3, %v6333_v19  ;;  %5969 = vmatprep.mubr.msk.bf16.mxu0 %vm633_vm3, %v5494_v33  ;;  %v6386_v33 = vld [vmem:[%s6511_s26 + $0xb8] sm:$0xf]  ;;  %v2345_v19 = vrot.slane %v2343_v20, 4  ;;  %v2378_v21 = vrot.slane %v2376_v23, 5  ;;  %v2382_v47 = vrot.slane %v2380_v25, 4 }
 0x151   : > { %5833 = vmatprep.mubr.msk.bf16.mxu1 %vm633_vm3, %v5218_v41  ;;  %v2352_v12 = vshll.u32 %v6386_v33, 16  ;;  %v2356_v40 = vshrl.u32 %v6386_v33, 16  ;;  %v2330_v18 = vrot.slane %v2328_v53, 5  ;;  %v2348_v41 = vrot.slane %v2346_v42, 5 }
 0x152   : > { %v2372_v53 = vrot.slane %v2370_v6, 5 }
 0x153   : > { %v2354_v52 = vrot.slane %v2352_v12, 5  ;;  %v2358_v2 = vrot.slane %v2356_v40, 4  ;;  %v2331_v20 = vsel %vm6537_vm4, %v2326_v51, %v2330_v18  ;;  %v2383_v12 = vor.u32 %v2382_v47, %v2378_v21 }
 0x154   : > { %v2373_v33 = vor.u32 %v2372_v53, %v2369_v27 }
 0x155   : > { %v2359_v7 = vor.u32 %v2358_v2, %v2354_v52  ;;  %v2384_v13 = vrot.slane %v2383_v12, 4 }
 0x156   : > { %v2374_v40 = vrot.slane %v2373_v33, 4 }
 0x157   : > { %5970 = vmatmul.mubr.msk.bf16.gmra.mrb[16].mxu0 %vm633_vm3, %v5495_v37  ;;  %v2335_v37 = vor.u32 %v2334_v11, %v2330_v18  ;;  %v2360_v15 = vrot.slane %v2359_v7, 4  ;;  %v2389_v9 = vsel %vm6537_vm4, %v2384_v13, %v2388_v17 }
 0x158   : > { %5834 = vmatmul.mubr.msk.bf16.vlgmr.msra.gmra.mrb[16].mxu1 %vm633_vm3, %v7905_v1  ;;  %5973 = vmatprep.mubr.msk.bf16.mxu0 %vm633_vm3, %v5496_v3  ;;  %v2349_v1 = vor.u32 %v2348_v41, %v2345_v19  ;;  %v5222_v3 = vcombine.low %v2307_v10, %v2317_v59  ;;  %v2379_v30 = vsel %vm6537_vm4, %v2374_v40, %v2378_v21 }
 0x159   : > { %5837 = vmatprep.mubr.msk.bf16.mxu1 %vm633_vm3, %v5220_v24  ;;  %v2336_v28 = vrot.slane %v2335_v37, 4  ;;  %v2365_v48 = vsel %vm6537_vm4, %v2360_v15, %v2364_v60  ;;  %v5225_v14 = vcombine.low %v2379_v30, %v2389_v9 }
 0x15a   : > { %v2350_v46 = vrot.slane %v2349_v1, 4 }
 0x15b   : > { %v2341_v42 = vsel %vm6537_vm4, %v2336_v28, %v2340_v45 }
 0x15c   : > { %v5223_v62 = vcombine.low %v2331_v20, %v2341_v42 }
 0x15f   : > { %5974 = vmatmul.mubr.msk.bf16.gmra.mrb[20].mxu0 %vm633_vm3, %v5497_v8  ;;  %v2355_v8 = vsel %vm6537_vm4, %v2350_v46, %v2354_v52 }
 0x160   : > { %5838 = vmatmul.mubr.msk.bf16.gmra.mrb[20].mxu1 %vm633_vm3, %v5221_v44  ;;  %5977 = vmatprep.mubr.msk.bf16.mxu0 %vm633_vm3, %v5498_v56  ;;  %v5224_v56 = vcombine.low %v2355_v8, %v2365_v48 }
 0x161   : > { %5841 = vmatprep.mubr.msk.bf16.mxu1 %vm633_vm3, %v5222_v3 }
 0x167   : > { %5978 = vmatmul.mubr.msk.bf16.gmra.mrb[24].mxu0 %vm633_vm3, %v5499_v43 }
 0x168   : > { %5842 = vmatmul.mubr.msk.bf16.gmra.mrb[24].mxu1 %vm633_vm3, %v5223_v62  ;;  %5981 = vmatprep.mubr.msk.bf16.mxu0 %vm633_vm3, %v5500_v50 }
 0x169   : > { %5845 = vmatprep.mubr.msk.bf16.mxu1 %vm633_vm3, %v5224_v56 }
 0x16f   : > { %5982 = vmatmul.mubr.msk.bf16.gmra.mrb[28].mxu0 %vm633_vm3, %v5501_v29 }
 0x170   : > { %5846 = vmatmul.mubr.msk.bf16.gmra.mrb[28].mxu1 %vm633_vm3, %v5225_v14 }
 0x1eb   : > { %v5785_v63 = vpop.f32.mrb[0].mxu1 }
 0x1ec   : > { %v1799_v4 = vpop.f32.mrb[1].mxu1 }
 0x1ed   : > { %v5786_v43 = vpop.f32.mrb[2].mxu1 }
 0x1ee   : > { %v1802_v16 = vpop.f32.mrb[3].mxu1 }
 0x1f3   : > { %v5789_v58 = vpop.f32.mrb[4].mxu1 }
 0x1f4   : > { %v1815_v50 = vpop.f32.mrb[5].mxu1 }
 0x1f5   : > { %v5790_v54 = vpop.f32.mrb[6].mxu1 }
 0x1f6   : > { %v1818_v18 = vpop.f32.mrb[7].mxu1 }
 0x1fb   : > { %v5793_v11 = vpop.f32.mrb[8].mxu1 }
 0x1fc   : > { %v1831_v32 = vpop.f32.mrb[9].mxu1 }
 0x1fd   : > { %v5794_v24 = vpop.f32.mrb[10].mxu1 }
 0x1fe   : > { %v1834_v19 = vpop.f32.mrb[11].mxu1 }
 0x203   : > { %v5797_v41 = vpop.f32.mrb[12].mxu1 }
 0x204   : > { %v1847_v52 = vpop.f32.mrb[13].mxu1 }
 0x205   : > { %v5798_v5 = vpop.f32.mrb[14].mxu1 }
 0x206   : > { %v1850_v55 = vpop.f32.mrb[15].mxu1 }
 0x20a   : > { %v5955_v29 = vpop.f32.mrb[0].mxu0 }
 0x20b   : > { %v8188_v2 = vadd.f32 %v5955_v29, %v5785_v63  ;;  %v4553_v39 = vpop.f32.mrb[1].mxu0 }
 0x20c   : > { %v8190_v0 = vadd.f32 %v4553_v39, %v1799_v4  ;;  %v5956_v36 = vpop.f32.mrb[2].mxu0 }
 0x20d   : > { %v8192_v10 = vadd.f32 %v5956_v36, %v5786_v43  ;;  %v4556_v59 = vpop.f32.mrb[3].mxu0 }
 0x20e   : > { %v8194_v38 = vadd.f32 %v4556_v59, %v1802_v16 }
 0x212   : > { %v5959_v37 = vpop.f32.mrb[4].mxu0 }
 0x213   : > { %v8196_v26 = vadd.f32 %v5959_v37, %v5789_v58  ;;  %v4569_v35 = vpop.f32.mrb[5].mxu0 }
 0x214   : > { %v8198_v34 = vadd.f32 %v4569_v35, %v1815_v50  ;;  %v5960_v6 = vpop.f32.mrb[6].mxu0 }
 0x215   : > { %v8200_v49 = vadd.f32 %v5960_v6, %v5790_v54  ;;  %v4572_v23 = vpop.f32.mrb[7].mxu0 }
 0x216   : > { %v8202_v25 = vadd.f32 %v4572_v23, %v1818_v18 }
 0x21a   : > { %v5963_v1 = vpop.f32.mrb[8].mxu0 }
 0x21b   : > { %v8204_v7 = vadd.f32 %v5963_v1, %v5793_v11  ;;  %v4585_v61 = vpop.f32.mrb[9].mxu0 }
 0x21c   : > { %v8206_v22 = vadd.f32 %v4585_v61, %v1831_v32  ;;  %v5964_v44 = vpop.f32.mrb[10].mxu0 }
 0x21d   : > { %v8208_v3 = vadd.f32 %v5964_v44, %v5794_v24  ;;  %v4588_v51 = vpop.f32.mrb[11].mxu0 }
 0x21e   : > { %v8210_v28 = vadd.f32 %v4588_v51, %v1834_v19 }
 0x222   : > { %v5967_v45 = vpop.f32.mrb[12].mxu0 }
 0x223   : > { %v8212_v27 = vadd.f32 %v5967_v45, %v5797_v41  ;;  %v4601_v53 = vpop.f32.mrb[13].mxu0 }
 0x224   : > { %v8214_v21 = vadd.f32 %v4601_v53, %v1847_v52  ;;  %v5968_v47 = vpop.f32.mrb[14].mxu0 }
 0x225   : > { %v8216_v46 = vadd.f32 %v5968_v47, %v5798_v5  ;;  %v4604_v15 = vpop.f32.mrb[15].mxu0 }
 0x226   : > { %v8218_v60 = vadd.f32 %v4604_v15, %v1850_v55 }
 0x22a   : > { %v5971_v20 = vpop.f32.mrb[16].mxu0 }
 0x22b   : > { %v5835_v42 = vpop.f32.mrb[16].mxu1  ;;  %v4617_v33 = vpop.f32.mrb[17].mxu0 }
 0x22c   : > { %v8220_v12 = vadd.f32 %v5971_v20, %v5835_v42  ;;  %v2589_v31 = vpop.f32.mrb[17].mxu1  ;;  %v5972_v57 = vpop.f32.mrb[18].mxu0  ;;  %v6447_v20 = vmov (%p4712_p5), 0.0  }
 0x22d   : > { %v8222_v8 = vadd.f32 %v4617_v33, %v2589_v31  ;;  %v5836_v48 = vpop.f32.mrb[18].mxu1  ;;  %v4620_v62 = vpop.f32.mrb[19].mxu0  ;;  %4719 = vst.msk [vmem:[#allocation2] sm:$0x3] (%p4712_p5), %vm4718_vm8, %v6447_v20 }
 0x22e   : > { %v8224_v56 = vadd.f32 %v5972_v57, %v5836_v48  ;;  %v2592_v40 = vpop.f32.mrb[19].mxu1 }
 0x22f   : > { %v8226_v13 = vadd.f32 %v4620_v62, %v2592_v40 }
 0x232   : > { %v5975_v17 = vpop.f32.mrb[20].mxu0 }
 0x233   : > { %v5839_v30 = vpop.f32.mrb[20].mxu1  ;;  %v4633_v9 = vpop.f32.mrb[21].mxu0 }
 0x234   : > { %v8228_v14 = vadd.f32 %v5975_v17, %v5839_v30  ;;  %v2605_v63 = vpop.f32.mrb[21].mxu1  ;;  %v5976_v4 = vpop.f32.mrb[22].mxu0 }
 0x235   : > { %v8230_v43 = vadd.f32 %v4633_v9, %v2605_v63  ;;  %v5840_v16 = vpop.f32.mrb[22].mxu1  ;;  %v4636_v58 = vpop.f32.mrb[23].mxu0 }
 0x236   : > { %v8232_v50 = vadd.f32 %v5976_v4, %v5840_v16  ;;  %v2608_v54 = vpop.f32.mrb[23].mxu1 }
 0x237   : > { %v8234_v18 = vadd.f32 %v4636_v58, %v2608_v54 }
 0x23a   : > { %v5979_v11 = vpop.f32.mrb[24].mxu0 }
 0x23b   : > { %v5843_v32 = vpop.f32.mrb[24].mxu1  ;;  %v4649_v24 = vpop.f32.mrb[25].mxu0 }
 0x23c   : > { %v8236_v19 = vadd.f32 %v5979_v11, %v5843_v32  ;;  %v2621_v41 = vpop.f32.mrb[25].mxu1  ;;  %v5980_v52 = vpop.f32.mrb[26].mxu0 }
 0x23d   : > { %v8238_v5 = vadd.f32 %v4649_v24, %v2621_v41  ;;  %v5844_v55 = vpop.f32.mrb[26].mxu1  ;;  %v4652_v29 = vpop.f32.mrb[27].mxu0 }
 0x23e   : > { %v8240_v39 = vadd.f32 %v5980_v52, %v5844_v55  ;;  %v2624_v36 = vpop.f32.mrb[27].mxu1 }
 0x23f   : > { %v8242_v59 = vadd.f32 %v4652_v29, %v2624_v36 }
 0x241   : > { %4717 = sbr.rel (!%p4712_p5) target bundleno = 584 (0x248), region = 32 }
 0x242   : > { %v5983_v37 = vpop.f32.mrb[28].mxu0 }
 0x243   : > { %v5847_v35 = vpop.f32.mrb[28].mxu1  ;;  %v4665_v6 = vpop.f32.mrb[29].mxu0 }
 0x244   : > { %v8244_v23 = vadd.f32 %v5983_v37, %v5847_v35  ;;  %v2637_v1 = vpop.f32.mrb[29].mxu1  ;;  %v5984_v61 = vpop.f32.mrb[30].mxu0 }
 0x245   : > { %v8246_v44 = vadd.f32 %v4665_v6, %v2637_v1  ;;  %v5848_v51 = vpop.f32.mrb[30].mxu1  ;;  %v4668_v45 = vpop.f32.mrb[31].mxu0 }
 0x246   : > { %v8248_v53 = vadd.f32 %v5984_v61, %v5848_v51  ;;  %v2640_v47 = vpop.f32.mrb[31].mxu1 }
 0x247   : > { %v8250_v15 = vadd.f32 %v4668_v45, %v2640_v47 }
 0x248 PF: > { %v4721_v42 = vsel %vm633_vm3, %v8190_v0, 0.0  ;;  %v4722_v33 = vsel %vm633_vm3, %v8194_v38, 0.0  ;;  %v4724_v31 = vsel %vm633_vm3, %v8188_v2, 0.0  ;;  %p4897_p6 = scmp.eq.s32.totalorder %s6437_s9, 1  ;;  %v4726_v48 = vsel %vm633_vm3, %v8192_v10, 0.0 }
 0x249   : > { %v4723_v57 = vadd.f32 %v4722_v33, %v4721_v42  ;;  %v4728_v40 = vsel %vm633_vm3, %v8198_v34, 0.0  ;;  %v4730_v30 = vsel %vm633_vm3, %v8202_v25, 0.0  ;;  %v4732_v63 = vsel %vm633_vm3, %v8196_v26, 0.0 }
 0x24a   : > { %v4734_v16 = vsel %vm633_vm3, %v8200_v49, 0.0  ;;  %v4736_v54 = vsel %vm633_vm3, %v8206_v22, 0.0  ;;  %v4738_v32 = vsel %vm633_vm3, %v8210_v28, 0.0  ;;  %v4794_v24 = vmul.f32 %v8190_v0, %v8190_v0 }
 0x24b   : > { %v4725_v62 = vadd.f32 %v4724_v31, %v4723_v57  ;;  %v4795_v41 = vmul.f32 %v8194_v38, %v8194_v38  ;;  %v4796_v55 = vmul.f32 %v8188_v2, %v8188_v2  ;;  %v4740_v29 = vsel %vm633_vm3, %v8204_v7, 0.0 }
 0x24c   : > { %v4797_v36 = vmul.f32 %v8192_v10, %v8192_v10  ;;  %v4742_v35 = vsel %vm633_vm3, %v8208_v3, 0.0  ;;  %v4798_v0 = vmul.f32 %v8198_v34, %v8198_v34  ;;  %v4826_v6 = vsel %vm633_vm3, %v4794_v24, 0.0 }
 0x24d   : > { %v4727_v17 = vadd.f32 %v4726_v48, %v4725_v62  ;;  %v4827_v38 = vsel %vm633_vm3, %v4795_v41, 0.0  ;;  %v4829_v2 = vsel %vm633_vm3, %v4796_v55, 0.0  ;;  %v4744_v51 = vsel %vm633_vm3, %v8214_v21, 0.0 }
 0x24e   : > { %v4828_v61 = vadd.f32 %v4827_v38, %v4826_v6  ;;  %v4799_v10 = vmul.f32 %v8202_v25, %v8202_v25  ;;  %v4831_v45 = vsel %vm633_vm3, %v4797_v36, 0.0  ;;  %v4746_v34 = vsel %vm633_vm3, %v8218_v60, 0.0 }
 0x24f   : > { %v4729_v9 = vadd.f32 %v4728_v40, %v4727_v17  ;;  %v4800_v42 = vmul.f32 %v8196_v26, %v8196_v26  ;;  %v4833_v33 = vsel %vm633_vm3, %v4798_v0, 0.0  ;;  %v4748_v48 = vsel %vm633_vm3, %v8212_v27, 0.0 }
 0x250   : > { %v4830_v20 = vadd.f32 %v4829_v2, %v4828_v61  ;;  %v4801_v25 = vmul.f32 %v8200_v49, %v8200_v49  ;;  %v4835_v62 = vsel %vm633_vm3, %v4799_v10, 0.0  ;;  %v4802_v26 = vmul.f32 %v8206_v22, %v8206_v22 }
 0x251   : > { %v4731_v4 = vadd.f32 %v4730_v30, %v4729_v9  ;;  %v4750_v30 = vsel %vm633_vm3, %v8216_v46, 0.0  ;;  %v4837_v9 = vsel %vm633_vm3, %v4800_v42, 0.0  ;;  %v4803_v49 = vmul.f32 %v8210_v28, %v8210_v28 }
 0x252   : > { %v4832_v57 = vadd.f32 %v4831_v45, %v4830_v20  ;;  %v4804_v22 = vmul.f32 %v8204_v7, %v8204_v7  ;;  %v4841_v24 = vsel %vm633_vm3, %v4802_v26, 0.0  ;;  %v4756_v55 = vsel %vm633_vm3, %v8220_v12, 0.0 }
 0x253   : > { %v4733_v58 = vadd.f32 %v4732_v63, %v4731_v4  ;;  %v4805_v28 = vmul.f32 %v8208_v3, %v8208_v3  ;;  %v4806_v7 = vmul.f32 %v8214_v21, %v8214_v21  ;;  %v4807_v3 = vmul.f32 %v8218_v60, %v8218_v60 }
 0x254   : > { %v4834_v17 = vadd.f32 %v4833_v33, %v4832_v57  ;;  %v4845_v0 = vsel %vm633_vm3, %v4804_v22, 0.0  ;;  %v4762_v10 = vsel %vm633_vm3, %v8234_v18, 0.0  ;;  %v4808_v21 = vmul.f32 %v8212_v27, %v8212_v27 }
 0x255   : > { %v4735_v11 = vadd.f32 %v4734_v16, %v4733_v58  ;;  %v4752_v16 = vsel %vm633_vm3, %v8222_v8, 0.0  ;;  %v4839_v58 = vsel %vm633_vm3, %v4801_v25, 0.0  ;;  %v4847_v61 = vsel %vm633_vm3, %v4805_v28, 0.0 }
 0x256   : > { %v4836_v4 = vadd.f32 %v4835_v62, %v4834_v17  ;;  %v4849_v45 = vsel %vm633_vm3, %v4806_v7, 0.0  ;;  %v4809_v60 = vmul.f32 %v8216_v46, %v8216_v46  ;;  %v4851_v42 = vsel %vm633_vm3, %v4807_v3, 0.0 }
 0x257   : > { %v4737_v52 = vadd.f32 %v4736_v54, %v4735_v11  ;;  %v4766_v57 = vsel %vm633_vm3, %v8232_v50, 0.0  ;;  %v4810_v27 = vmul.f32 %v8222_v8, %v8222_v8  ;;  %v4811_v46 = vmul.f32 %v8226_v13, %v8226_v13 }
 0x258   : > { %v4838_v11 = vadd.f32 %v4837_v9, %v4836_v4  ;;  %v4855_v17 = vsel %vm633_vm3, %v4809_v60, 0.0  ;;  %v4770_v9 = vsel %vm633_vm3, %v8242_v59, 0.0  ;;  %v4812_v8 = vmul.f32 %v8220_v12, %v8220_v12 }
 0x259   : > { %v4739_v37 = vadd.f32 %v4738_v32, %v4737_v52  ;;  %v4754_v32 = vsel %vm633_vm3, %v8226_v13, 0.0  ;;  %v4813_v13 = vmul.f32 %v8224_v56, %v8224_v56  ;;  %v4814_v12 = vmul.f32 %v8230_v43, %v8230_v43 }
 0x25a   : > { %v4840_v52 = vadd.f32 %v4839_v58, %v4838_v11  ;;  %v4859_v58 = vsel %vm633_vm3, %v4811_v46, 0.0  ;;  %v4861_v22 = vsel %vm633_vm3, %v4812_v8, 0.0  ;;  %v4782_v3 = vsel %vm633_vm3, %v8248_v53, 0.0 }
 0x25b   : > { %v4741_v1 = vadd.f32 %v4740_v29, %v4739_v37  ;;  %v4843_v29 = vsel %vm633_vm3, %v4803_v49, 0.0  ;;  %v4772_v49 = vsel %vm633_vm3, %v8236_v19, 0.0  ;;  %vm4791_vm9 = vcmask 24576  }
 0x25c   : > { %v4842_v37 = vadd.f32 %v4841_v24, %v4840_v52  ;;  %v4776_v52 = vsel %vm633_vm3, %v8246_v44, 0.0 }
 0x25d   : > { %v4743_v47 = vadd.f32 %v4742_v35, %v4741_v1  ;;  %v4758_v35 = vsel %vm633_vm3, %v8224_v56, 0.0  ;;  %v4760_v1 = vsel %vm633_vm3, %v8230_v43, 0.0  ;;  %v4815_v56 = vmul.f32 %v8234_v18, %v8234_v18 }
 0x25e   : > { %v4844_v38 = vadd.f32 %v4843_v29, %v4842_v37  ;;  %v4816_v43 = vmul.f32 %v8228_v14, %v8228_v14  ;;  %v4865_v37 = vsel %vm633_vm3, %v4814_v12, 0.0  ;;  %v4817_v18 = vmul.f32 %v8232_v50, %v8232_v50  ;;  %v4793_v12 = vld [vmem:[#allocation2 + $0x1] sm:$0x1] }
 0x25f   : > { %v4745_v31 = vadd.f32 %v4744_v51, %v4743_v47 }
 0x260   : > { %v4846_v51 = vadd.f32 %v4845_v0, %v4844_v38  ;;  %v4780_v0 = vsel %vm633_vm3, %v8244_v23, 0.0 }
 0x261   : > { %v4747_v40 = vadd.f32 %v4746_v34, %v4745_v31  ;;  %v4764_v34 = vsel %vm633_vm3, %v8228_v14, 0.0  ;;  %v4818_v14 = vmul.f32 %v8238_v5, %v8238_v5 }
 0x262   : > { %v4848_v20 = vadd.f32 %v4847_v61, %v4846_v51  ;;  %v4869_v61 = vsel %vm633_vm3, %v4816_v43, 0.0 }
 0x263   : > { %v4749_v63 = vadd.f32 %v4748_v48, %v4747_v40  ;;  %v4853_v48 = vsel %vm633_vm3, %v4808_v21, 0.0  ;;  %v4768_v40 = vsel %vm633_vm3, %v8238_v5, 0.0  ;;  %v4871_v21 = vsel %vm633_vm3, %v4817_v18, 0.0 }
 0x264   : > { %v4850_v31 = vadd.f32 %v4849_v45, %v4848_v20  ;;  %v4873_v20 = vsel %vm633_vm3, %v4818_v14, 0.0  ;;  %v4821_v5 = vmul.f32 %v8240_v39, %v8240_v39 }
 0x265   : > { %v4751_v54 = vadd.f32 %v4750_v30, %v4749_v63  ;;  %v4857_v63 = vsel %vm633_vm3, %v4810_v27, 0.0 }
 0x266   : > { %v4852_v62 = vadd.f32 %v4851_v42, %v4850_v31 }
 0x267   : > { %v4753_v41 = vadd.f32 %v4752_v16, %v4751_v54 }
 0x268   : > { %v4854_v26 = vadd.f32 %v4853_v48, %v4852_v62 }
 0x269   : > { %v4755_v36 = vadd.f32 %v4754_v32, %v4753_v41  ;;  %v4774_v32 = vsel %vm633_vm3, %v8240_v39, 0.0  ;;  %v4824_v39 = vmul.f32 %v8244_v23, %v8244_v23 }
 0x26a   : > { %v4856_v16 = vadd.f32 %v4855_v17, %v4854_v26  ;;  %v4720_v26 = vld [vmem:[#allocation2] sm:$0x1] }
 0x26b   : > { %v4757_v6 = vadd.f32 %v4756_v55, %v4755_v36  ;;  %v4863_v55 = vsel %vm633_vm3, %v4813_v13, 0.0  ;;  %v4778_v36 = vsel %vm633_vm3, %v8250_v15, 0.0 }
 0x26c   : > { %v4858_v11 = vadd.f32 %v4857_v63, %v4856_v16 }
 0x26d   : > { %v4759_v2 = vadd.f32 %v4758_v35, %v4757_v6  ;;  %v4867_v6 = vsel %vm633_vm3, %v4815_v56, 0.0 }
 0x26e   : > { %v4860_v41 = vadd.f32 %v4859_v58, %v4858_v11 }
 0x26f   : > { %v4761_v47 = vadd.f32 %v4760_v1, %v4759_v2 }
 0x270   : > { %v4862_v29 = vadd.f32 %v4861_v22, %v4860_v41 }
 0x271   : > { %v4763_v33 = vadd.f32 %v4762_v10, %v4761_v47  ;;  %v4819_v10 = vmul.f32 %v8242_v59, %v8242_v59  ;;  %v4820_v47 = vmul.f32 %v8236_v19, %v8236_v19  ;;  %v4822_v59 = vmul.f32 %v8246_v44, %v8246_v44 }
 0x272   : > { %v4864_v7 = vadd.f32 %v4863_v55, %v4862_v29  ;;  %v4823_v19 = vmul.f32 %v8250_v15, %v8250_v15  ;;  %v4825_v44 = vmul.f32 %v8248_v53, %v8248_v53  ;;  %v4885_v15 = vsel %vm633_vm3, %v4824_v39, 0.0 }
 0x273   : > { %v4765_v25 = vadd.f32 %v4764_v34, %v4763_v33  ;;  %v4875_v42 = vsel %vm633_vm3, %v4819_v10, 0.0  ;;  %v4881_v46 = vsel %vm633_vm3, %v4822_v59, 0.0 }
 0x274   : > { %v4866_v1 = vadd.f32 %v4865_v37, %v4864_v7 }
 0x275   : > { %v4767_v30 = vadd.f32 %v4766_v57, %v4765_v25  ;;  %v4877_v57 = vsel %vm633_vm3, %v4820_v47, 0.0  ;;  %v4879_v25 = vsel %vm633_vm3, %v4821_v5, 0.0 }
 0x276   : > { %v4868_v51 = vadd.f32 %v4867_v6, %v4866_v1 }
 0x277   : > { %v4769_v4 = vadd.f32 %v4768_v40, %v4767_v30 }
 0x278   : > { %v4870_v45 = vadd.f32 %v4869_v61, %v4868_v51 }
 0x279   : > { %v4771_v54 = vadd.f32 %v4770_v9, %v4769_v4  ;;  %v4883_v9 = vsel %vm633_vm3, %v4823_v19, 0.0 }
 0x27a   : > { %v4872_v60 = vadd.f32 %v4871_v21, %v4870_v45 }
 0x27b   : > { %v4773_v24 = vadd.f32 %v4772_v49, %v4771_v54  ;;  %v4887_v49 = vsel %vm633_vm3, %v4825_v44, 0.0 }
 0x27c   : > { %v4874_v31 = vadd.f32 %v4873_v20, %v4872_v60 }
 0x27d   : > { %v4775_v28 = vadd.f32 %v4774_v32, %v4773_v24 }
 0x27e   : > { %v4876_v48 = vadd.f32 %v4875_v42, %v4874_v31 }
 0x27f   : > { %v4777_v35 = vadd.f32 %v4776_v52, %v4775_v28 }
 0x280   : > { %v4878_v40 = vadd.f32 %v4877_v57, %v4876_v48 }
 0x281   : > { %v4779_v38 = vadd.f32 %v4778_v36, %v4777_v35 }
 0x282   : > { %v4880_v30 = vadd.f32 %v4879_v25, %v4878_v40 }
 0x283   : > { %v4781_v2 = vadd.f32 %v4780_v0, %v4779_v38 }
 0x284   : > { %v4882_v63 = vadd.f32 %v4881_v46, %v4880_v30 }
 0x285   : > { %v4783_v50 = vadd.f32 %v4782_v3, %v4781_v2 }
 0x286   : > { %v4884_v16 = vadd.f32 %v4883_v9, %v4882_v63 }
 0x287   : > { %v4784_v34 = vrot.slane %v4783_v50, 4 }
 0x288   : > { %v4886_v23 = vadd.f32 %v4885_v15, %v4884_v16 }
 0x289   : > { %v4785_v33 = vadd.f32 %v4784_v34, %v4783_v50 }
 0x28a   : > { %v4888_v13 = vadd.f32 %v4887_v49, %v4886_v23 }
 0x28b   : > { %v4786_v27 = vrot.slane %v4785_v33, 2 }
 0x28c   : > { %v4889_v58 = vrot.slane %v4888_v13, 4 }
 0x28d   : > { %v4787_v62 = vadd.f32 %v4786_v27, %v4785_v33 }
 0x28e   : > { %v4890_v54 = vadd.f32 %v4889_v58, %v4888_v13 }
 0x28f   : > { %v4788_v17 = vrot.slane %v4787_v62, 1 }
 0x290   : > { %v4891_v11 = vrot.slane %v4890_v54, 2 }
 0x291   : > { %v4789_v8 = vadd.f32 %v4788_v17, %v4787_v62 }
 0x292   : > { %v4892_v32 = vadd.f32 %v4891_v11, %v4890_v54 }
 0x293   : > { %v4790_v4 = vadd.f32 %v4789_v8, %v4720_v26 }
 0x294   : > { %v4893_v53 = vrot.slane %v4892_v32, 1  ;;  %4901 = sbr.rel (!%p4897_p6) target bundleno = 692 (0x2b4), region = 36 }
 0x295   : > { %4792 = vst.msk [vmem:[#allocation2] sm:$0x1] %vm4791_vm9, %v4790_v4 }
 0x296   : > { %v4894_v22 = vadd.f32 %v4893_v53, %v4892_v32 }
 0x298   : > { %v4895_v24 = vadd.f32 %v4894_v22, %v4793_v12 }
 0x29a   : > { %4896 = vst.msk [vmem:[#allocation2 + $0x1] sm:$0x1] %vm4791_vm9, %v4895_v24 }
 0x29c   : > { %v4902_v41 = vld [vmem:[#allocation2] sm:$0x1] }
 0x29d   : > { %v4903_v56 = vmul.f32 0.001953125, %v4902_v41 }
 0x29f   : > { %v4906_v28 = vmul.f32 %v4903_v56, %v4903_v56  ;;  %4908 = vst.msk [vmem:[#allocation2] sm:$0x1] %vm4791_vm9, %v4903_v56 }
 0x2a1   : > { %v4904_v52 = vld [vmem:[#allocation2 + $0x1] sm:$0x1] }
 0x2a2   : > { %v4905_v55 = vmul.f32 0.001953125, %v4904_v52 }
 0x2a4   : > { %v4907_v29 = vsub.f32 %v4905_v55, %v4906_v28 }
 0x2a6   : > { %v4909_v36 = vadd.f32 1e-05, %v4907_v29 }
 0x2a8   : > { %6391 = vrsqrt.f32 %v4909_v36 }
 0x2b2   : > { %v6392_v43 = vpop.eup %6391 }
 0x2b3   : > { %4911 = vst.msk [vmem:[#allocation2 + $0x1] sm:$0x1] %vm4791_vm9, %v6392_v43 }
 0x2b4 PF: > { %p8423_p7 = scmp.eq.s32.totalorder %s4977_s12, 1  ;;  %s6448_s9 = smov [#allocation2]  }
 0x2b5   : > { %s4919_s19 = sshll.u32 %s6448_s9, 4  ;;  %s4920_s19 = int_to_ptr.vmem [resolvable:$true] %s4919_s19 }
 0x2b6   : > { %s6393_s20 = scalar_lea.vmem %s4920_s19, 32  ;;  %p6400_p11 = scmp.lt.s32.totalorder %s4920_s19, %s4920_s19 }
 0x2b7   : > { %p6394_p8 = scmp.ne.s32.totalorder %s4920_s19, %s6393_s20  ;;  %p6401_p12 = scmp.lt.s32.totalorder %s6393_s20, %s6393_s20 }
 0x2b9   : > { %p6395_p9 = pnand %p6394_p8, %p8423_p7  ;;  %p6402_p13 = por %p6401_p12, %p6400_p11 }
 0x2bb   : > { %p6396_p10 = pneg %p6395_p9 }
 0x2bd   : > { %p6403_p0 = pnand %p6402_p13, %p6396_p10 }
 0x2bf   : > { %6406 = shalt.err (!%p6403_p0)
}
 0x2c0   : > { %s6407_s12 = scalar_lea.hbm %s8460_s2, 32 }
 0x2c1   : > { %p6408_p1 = scmp.ne.s32.totalorder %s8460_s2, %s6407_s12  ;;  %p6413_p4 = scmp.lt.u32.totalorder %s6407_s12, %s8460_s2 }
 0x2c3   : > { %p6409_p2 = pnand %p6408_p1, %p8423_p7 }
 0x2c5   : > { %p6410_p3 = pneg %p6409_p2 }
 0x2c7   : > { %p6415_p5 = pnand %p6413_p4, %p6410_p3 }
 0x2c9   : > { %6418 = shalt.err (!%p6415_p5)
}
 0x2ca   : > { %6255 = dma.vmem_to_hbm [thread:$0]  (%p8423_p7), %s4920_s19, 32, %s8460_s2, [#allocation3]  }
 0x2cb   : > { %6432 = dma.done.wait (%p8423_p7), [#allocation3], 32  }
 0x2cc   : > { %6434 = vsyncadd (%p8423_p7), [#allocation3], 4294967264 }
 0x2cd PF: > { %s13_s11 = sadd.s32 1, %s6445_s11   ;;  %s8529_s9 = smov %s6441_s10 }
 0x2ce   : > { %p10_p6 = scmp.ge.s32.totalorder %s13_s11, 4   ;;  %s8530_s10 = smov %s8532_s13 }
 0x2d0   :  { %12 = sbr.rel (!%p10_p6) target bundleno = 2 (0x2), region = 74 }
 0x2d7   :  { %4932 = vsyncpa [#allocation3], 1 }
 0x2d8   :  { %4934 = vsyncpa [#allocation3 + $0x1], 1 }

</bundles_post_ra>
